<compile_context>
chip_gen: v5e
topology: v5e:2x2
jax: 0.10.0
libtpu: 0.0.40
codegen_flags: <defaults>
</compile_context>

<pallas_src>
import functools

import jax
import jax.numpy as jnp
from jax.experimental import pallas as pl
from jax.experimental.pallas import tpu as pltpu


# Static Netv6 geometry: 16x16 single-channel input.
H0 = W0 = 16
C1, C2, C3 = 16, 32, 64
H1 = W1 = 16      # after conv1 (stride 1, pad 1)
H2 = W2 = 8       # after conv2 (stride 2, pad 1)
H3 = W3 = 4       # after conv3 (stride 2, pad 1)


def _h_stride2_pick(win, kh, n, ho, wcols, c):
    """Keep rows 2*oh + kh of an H-dense window slice.

    `win` is (n, 2*ho, wcols, c), sliced from a padded buffer at H offset
    2*(kh//2).  Only leading-dim reshape/indexing is used, and the final merge
    folds leading dims onto a minor-2 extent of `wcols` (a multiple of 8), so
    every step is layout-preserving (no relayout, no strided sublane access).
    """
    win = win.reshape(n, ho, 2, wcols, c)[:, :, kh % 2]
    return win.reshape(n * ho * wcols, c)


def _netv6_kernel(p1_ref, w1_ref, b1_ref, w2_ref, b2_ref, w3_ref, b3_ref,
                  s3_ref, o_ref, be_ref, bo_ref, a2p_ref, *, n):
    f32 = jnp.float32

    # ---- layer 1: conv 1->16, stride 1, pad 1, ReLU (one MXU matmul) ------
    a1 = jnp.dot(p1_ref[...], w1_ref[...], preferred_element_type=f32)
    a1 = jnp.maximum(a1 + b1_ref[...], 0.0)            # (2*n*128, C1)
    half = n * H1 * (W1 // 2)
    a1_even = a1[:half]        # output columns 0,2,...,14  rows (n, oh, m)
    a1_odd = a1[half:]         # output columns 1,3,...,15  rows (n, oh, m)

    # ---- layer-2 input: padded a1 with W split by padded-column parity ----
    # BE[b,hp,u,:] = a1pad[b,hp,2u,:]   (u=0 is the left zero-pad column)
    # BO[b,hp,u,:] = a1pad[b,hp,2u+1,:]
    # so every stride-2 tap below becomes a plain offset slice.
    be_ref[:, 0:1, :, :] = jnp.zeros((n, 1, W2 + 1, C1), f32)          # halo
    be_ref[:, H1 + 1:H1 + 2, :, :] = jnp.zeros((n, 1, W2 + 1, C1), f32)
    be_ref[:, :, 0:1, :] = jnp.zeros((n, H1 + 2, 1, C1), f32)          # pad col
    bo_ref[:, 0:1, :, :] = jnp.zeros((n, 1, W2, C1), f32)
    bo_ref[:, H1 + 1:H1 + 2, :, :] = jnp.zeros((n, 1, W2, C1), f32)
    be_ref[:, 1:1 + H1, 1:1 + W2, :] = a1_odd.reshape(n, H1, W2, C1)
    bo_ref[:, 1:1 + H1, 0:W2, :] = a1_even.reshape(n, H1, W2, C1)

    # ---- layer 2: conv 16->32, stride 2, pad 1, ReLU (9 tap matmuls) ------
    acc2 = None
    for kh in range(3):
        hb = 2 * (kh // 2)
        for kw in range(3):
            if kw == 0:      # even padded cols 0,2,...,14
                win = be_ref[:, hb:hb + 2 * H2, 0:W2, :]
            elif kw == 1:    # odd padded cols 1,3,...,15
                win = bo_ref[:, hb:hb + 2 * H2, 0:W2, :]
            else:            # even padded cols 2,4,...,16
                win = be_ref[:, hb:hb + 2 * H2, 1:1 + W2, :]
            win = _h_stride2_pick(win, kh, n, H2, W2, C1)     # (n*64, C1)
            d = jnp.dot(win, w2_ref[kh * 3 + kw], preferred_element_type=f32)
            acc2 = d if acc2 is None else acc2 + d
    a2 = jnp.maximum(acc2 + b2_ref[...], 0.0)      # (n*64, C2) rows (n,oh2,ow2)

    # ---- layer-3 input: single padded NHWC buffer --------------------------
    a2p_ref[...] = jnp.zeros(a2p_ref.shape, f32)
    a2p_ref[:, 1:1 + H2, 1:1 + W2, :] = a2.reshape(n, H2, W2, C2)

    # ---- layer 3: conv 32->64, stride 2, pad 1, ReLU -----------------------
    # Evaluated at all W2=8 input columns; the stride-2 column pick (and row
    # reorder to (ow3, n, oh3)) is one tiny constant 0/1 matmul from s3_ref.
    acc3 = None
    for kh in range(3):
        hb = 2 * (kh // 2)
        for kw in range(3):
            win = a2p_ref[:, hb:hb + 2 * H3, kw:kw + W2, :]
            win = _h_stride2_pick(win, kh, n, H3, W2, C2)     # (n*32, C2)
            d = jnp.dot(win, w3_ref[kh * 3 + kw], preferred_element_type=f32)
            acc3 = d if acc3 is None else acc3 + d
    a3 = jnp.dot(s3_ref[...], acc3, preferred_element_type=f32)
    a3 = jnp.maximum(a3 + b3_ref[...], 0.0)        # (n*16, C3) rows (ow3,n,oh3)

    # ---- lane-dense output: (n*H3, W3*C3), lanes ordered (ow3, c3) ---------
    g = n * H3
    o_ref[...] = jnp.concatenate(
        [a3[i * g:(i + 1) * g] for i in range(W3)], axis=1)


def _netv6_pallas(p1, w1k, b1, w2k, b2, w3k, b3, s3, n):
    m1 = 2 * n * H1 * (W1 // 2)                   # layer-1 im2col rows
    kernel = functools.partial(_netv6_kernel, n=n)
    return pl.pallas_call(
        kernel,
        out_shape=jax.ShapeDtypeStruct((n * H3, W3 * C3), jnp.float32),
        grid_spec=pltpu.PrefetchScalarGridSpec(
            num_scalar_prefetch=0,
            grid=(1,),
            in_specs=[
                pl.BlockSpec((m1, 9), lambda i: (0, 0)),                 # P1
                pl.BlockSpec((9, C1), lambda i: (0, 0)),                 # W1
                pl.BlockSpec((1, C1), lambda i: (0, 0)),                 # b1
                pl.BlockSpec((9, C1, C2), lambda i: (0, 0, 0)),          # W2
                pl.BlockSpec((1, C2), lambda i: (0, 0)),                 # b2
                pl.BlockSpec((9, C2, C3), lambda i: (0, 0, 0)),          # W3
                pl.BlockSpec((1, C3), lambda i: (0, 0)),                 # b3
                pl.BlockSpec((n * H3 * W3, n * H3 * W2), lambda i: (0, 0)),  # S3
            ],
            out_specs=pl.BlockSpec((n * H3, W3 * C3), lambda i: (0, 0)),
            scratch_shapes=[
                pltpu.VMEM((n, H1 + 2, W2 + 1, C1), jnp.float32),  # BE (even cols)
                pltpu.VMEM((n, H1 + 2, W2, C1), jnp.float32),      # BO (odd cols)
                pltpu.VMEM((n, H2 + 2, W2 + 2, C2), jnp.float32),  # padded a2
            ],
        ),
        compiler_params=pltpu.CompilerParams(
            dimension_semantics=("arbitrary",)),
    )(p1, w1k, b1, w2k, b2, w3k, b3, s3)


def _build_layer1_patches(x_nhw):
    """im2col for conv1 (pure layout plumbing done by XLA in the wrapper).

    Rows ordered (parity of ow1, n, oh1, ow1 // 2); columns t = kh*3 + kw.
    The parity-major row order is what lets the kernel split layer-1's output
    into even/odd columns with free row slices.
    """
    n = x_nhw.shape[0]
    xp = jnp.pad(x_nhw, ((0, 0), (1, 1), (1, 1)))
    taps = [xp[:, kh:kh + H1, kw:kw + W1] for kh in range(3) for kw in range(3)]
    p = jnp.stack(taps, axis=-1)                     # (n, 16, 16, 9)
    p = p.reshape(n, H1, W1 // 2, 2, 9)              # ow1 = 2*m + g
    p = p.transpose(3, 0, 1, 2, 4)                   # (g, n, oh, m, t)
    return p.reshape(2 * n * H1 * (W1 // 2), 9)


def _build_w_selector(n):
    """(n*H3*W3, n*H3*W2) 0/1 matrix.

    Row r = (ow3, b, oh3) picks the w' = 2*ow3 column candidate out of the
    layer-3 pre-activation rows (b, oh3, w'); the (ow3-major) row order makes
    the final lane-packed (n*H3, W3*C3) output a pure lane concatenation.
    """
    m, k = n * H3 * W3, n * H3 * W2
    r = jnp.arange(m)
    ow3 = r // (n * H3)
    rem = r % (n * H3)                               # = b*H3 + oh3
    tgt = rem * W2 + 2 * ow3
    return (jnp.arange(k)[None, :] == tgt[:, None]).astype(jnp.float32)


def init_params(key):
    """PyTorch-layout Conv2d params: weight (Cout, Cin, 3, 3), bias (Cout,)."""
    dims = [(1, C1), (C1, C2), (C2, C3)]
    params = []
    for i, (cin, cout) in enumerate(dims):
        kw_key, kb_key = jax.random.split(jax.random.fold_in(key, i))
        bound = 1.0 / (9.0 * cin) ** 0.5
        w = jax.random.uniform(kw_key, (cout, cin, 3, 3), jnp.float32,
                               -bound, bound)
        b = jax.random.uniform(kb_key, (cout,), jnp.float32, -bound, bound)
        params.append((w, b))
    return params


@jax.jit
def netv6_forward(x_nchw, params):
    # TODO(synk): reference forward() calls `self.layer` (a typo); we implement
    # the intended `self.layers` Sequential.
    n = x_nchw.shape[0]
    (w1, b1), (w2, b2), (w3, b3) = params
    p1 = _build_layer1_patches(x_nchw[:, 0])            # (n*256, 9)
    w1k = w1.transpose(2, 3, 1, 0).reshape(9, C1)       # (kh,kw,cin=1,cout)
    w2k = w2.transpose(2, 3, 1, 0).reshape(9, C1, C2)   # [t][cin, cout]
    w3k = w3.transpose(2, 3, 1, 0).reshape(9, C2, C3)
    s3 = _build_w_selector(n)
    flat = _netv6_pallas(p1, w1k, b1.reshape(1, C1), w2k, b2.reshape(1, C2),
                         w3k, b3.reshape(1, C3), s3, n)  # (n*4, 256)
    y = flat.reshape(n, H3, W3, C3)                      # lanes were (ow3, c3)
    return jnp.transpose(y, (0, 3, 1, 2))                # NCHW (n, 64, 4, 4)


@jax.jit
def _reference_forward(x_nchw, params):
    """Pure-XLA reference used only for the in-script correctness check."""
    def conv(x, w, b, s):
        y = jax.lax.conv_general_dilated(
            x, w, window_strides=(s, s), padding=((1, 1), (1, 1)),
            dimension_numbers=("NCHW", "OIHW", "NCHW"))
        return jnp.maximum(y + b.reshape(1, -1, 1, 1), 0.0)
    (w1, b1), (w2, b2), (w3, b3) = params
    return conv(conv(conv(x_nchw, w1, b1, 1), w2, b2, 2), w3, b3, 2)


if __name__ == "__main__":
    key = jax.random.PRNGKey(0)
    k_x, k_p = jax.random.split(key)
    x = jax.random.normal(k_x, (2, 1, 16, 16), jnp.float32)   # NCHW, Cin=1
    params = init_params(k_p)

    y = jax.block_until_ready(netv6_forward(x, params))
    y_ref = jax.block_until_ready(_reference_forward(x, params))

    assert y.shape == (2, 64, 4, 4), y.shape
    assert y.dtype == jnp.float32
    assert bool(jnp.all(y >= 0.0))              # ReLU output
    assert bool(jnp.isfinite(y).all())
    max_err = float(jnp.max(jnp.abs(y - y_ref)))
    assert max_err < 5e-2, f"mismatch vs XLA reference: max |diff| = {max_err}"
    print("KERNEL_OK")
</pallas_src>

<mosaic_0001>
module attributes {stable_mosaic.version = 11 : i64} {
  func.func @_netv6_kernel(%arg0: i32, %arg1: memref<512x9xf32, #tpu.memory_space<vmem>>, %arg2: memref<9x16xf32, #tpu.memory_space<vmem>>, %arg3: memref<1x16xf32, #tpu.memory_space<vmem>>, %arg4: memref<9x16x32xf32, #tpu.memory_space<vmem>>, %arg5: memref<1x32xf32, #tpu.memory_space<vmem>>, %arg6: memref<9x32x64xf32, #tpu.memory_space<vmem>>, %arg7: memref<1x64xf32, #tpu.memory_space<vmem>>, %arg8: memref<32x64xf32, #tpu.memory_space<vmem>>, %arg9: memref<8x256xf32, #tpu.memory_space<vmem>>, %arg10: memref<2x18x9x16xf32, #tpu.memory_space<vmem>>, %arg11: memref<2x18x8x16xf32, #tpu.memory_space<vmem>>, %arg12: memref<2x10x10x32xf32, #tpu.memory_space<vmem>>) attributes {dimension_semantics = [#tpu.dimension_semantics<arbitrary>], iteration_bounds = array<i64: 1>, scalar_prefetch = 0 : i64, scratch_operands = 3 : i64, tpu.core_type = #tpu.core_type<tc>, window_params = [{pipeline_mode = #tpu.pipeline_mode<synchronous>, transform_indices = @transform_0, window_bounds = array<i64: 512, 9>}, {pipeline_mode = #tpu.pipeline_mode<synchronous>, transform_indices = @transform_1, window_bounds = array<i64: 9, 16>}, {pipeline_mode = #tpu.pipeline_mode<synchronous>, transform_indices = @transform_2, window_bounds = array<i64: 1, 16>}, {pipeline_mode = #tpu.pipeline_mode<synchronous>, transform_indices = @transform_3, window_bounds = array<i64: 9, 16, 32>}, {pipeline_mode = #tpu.pipeline_mode<synchronous>, transform_indices = @transform_4, window_bounds = array<i64: 1, 32>}, {pipeline_mode = #tpu.pipeline_mode<synchronous>, transform_indices = @transform_5, window_bounds = array<i64: 9, 32, 64>}, {pipeline_mode = #tpu.pipeline_mode<synchronous>, transform_indices = @transform_6, window_bounds = array<i64: 1, 64>}, {pipeline_mode = #tpu.pipeline_mode<synchronous>, transform_indices = @transform_7, window_bounds = array<i64: 32, 64>}, {pipeline_mode = #tpu.pipeline_mode<synchronous>, transform_indices = @transform_8, window_bounds = array<i64: 8, 256>}]} {
    %c0 = arith.constant 0 : index
    %c0_0 = arith.constant 0 : index
    %0 = vector.load %arg1[%c0, %c0_0] : memref<512x9xf32, #tpu.memory_space<vmem>>, vector<512x9xf32>
    %c0_1 = arith.constant 0 : index
    %c0_2 = arith.constant 0 : index
    %1 = vector.load %arg2[%c0_1, %c0_2] : memref<9x16xf32, #tpu.memory_space<vmem>>, vector<9x16xf32>
    %cst = arith.constant dense<0.000000e+00> : vector<512x16xf32>
    %2 = tpu.matmul %0, %1, %cst {dimension_numbers = #tpu.dot_dimension_numbers<[1], [0], [0], [1], [0, 0, 1, 1], [], []>} : vector<512x9xf32>, vector<9x16xf32>, vector<512x16xf32> -> vector<512x16xf32>
    %c0_3 = arith.constant 0 : index
    %c0_4 = arith.constant 0 : index
    %3 = vector.load %arg3[%c0_3, %c0_4] : memref<1x16xf32, #tpu.memory_space<vmem>>, vector<1x16xf32>
    %4 = vector.broadcast %3 : vector<1x16xf32> to vector<512x16xf32>
    %5 = arith.addf %2, %4 : vector<512x16xf32>
    %cst_5 = arith.constant 0.000000e+00 : f32
    %6 = vector.broadcast %cst_5 : f32 to vector<512x16xf32>
    %7 = arith.maximumf %5, %6 : vector<512x16xf32>
    %8 = vector.extract_strided_slice %7 {offsets = [0, 0], sizes = [256, 16], strides = [1, 1]} : vector<512x16xf32> to vector<256x16xf32>
    %9 = vector.extract_strided_slice %7 {offsets = [256, 0], sizes = [256, 16], strides = [1, 1]} : vector<512x16xf32> to vector<256x16xf32>
    %cst_6 = arith.constant 0.000000e+00 : f32
    %10 = vector.broadcast %cst_6 : f32 to vector<2x1x9x16xf32>
    %c0_7 = arith.constant 0 : index
    %c0_8 = arith.constant 0 : index
    %c0_9 = arith.constant 0 : index
    %c0_10 = arith.constant 0 : index
    %11 = vector.load %arg10[%c0_7, %c0_8, %c0_9, %c0_10] : memref<2x18x9x16xf32, #tpu.memory_space<vmem>>, vector<2x1x9x16xf32>
    tpu.vector_store %arg10[%c0_7, %c0_8, %c0_9, %c0_10], %10 {strides = array<i32>} : memref<2x18x9x16xf32, #tpu.memory_space<vmem>>, vector<2x1x9x16xf32>,
    %cst_11 = arith.constant 0.000000e+00 : f32
    %12 = vector.broadcast %cst_11 : f32 to vector<2x1x9x16xf32>
    %c0_12 = arith.constant 0 : index
    %c17 = arith.constant 17 : index
    %c0_13 = arith.constant 0 : index
    %c0_14 = arith.constant 0 : index
    %13 = vector.load %arg10[%c0_12, %c17, %c0_13, %c0_14] : memref<2x18x9x16xf32, #tpu.memory_space<vmem>>, vector<2x1x9x16xf32>
    tpu.vector_store %arg10[%c0_12, %c17, %c0_13, %c0_14], %12 {strides = array<i32>} : memref<2x18x9x16xf32, #tpu.memory_space<vmem>>, vector<2x1x9x16xf32>,
    %cst_15 = arith.constant 0.000000e+00 : f32
    %14 = vector.broadcast %cst_15 : f32 to vector<2x18x1x16xf32>
    %c0_16 = arith.constant 0 : index
    %c0_17 = arith.constant 0 : index
    %c0_18 = arith.constant 0 : index
    %c0_19 = arith.constant 0 : index
    %15 = vector.load %arg10[%c0_16, %c0_17, %c0_18, %c0_19] : memref<2x18x9x16xf32, #tpu.memory_space<vmem>>, vector<2x18x1x16xf32>
    tpu.vector_store %arg10[%c0_16, %c0_17, %c0_18, %c0_19], %14 {strides = array<i32>} : memref<2x18x9x16xf32, #tpu.memory_space<vmem>>, vector<2x18x1x16xf32>,
    %cst_20 = arith.constant 0.000000e+00 : f32
    %16 = vector.broadcast %cst_20 : f32 to vector<2x1x8x16xf32>
    %c0_21 = arith.constant 0 : index
    %c0_22 = arith.constant 0 : index
    %c0_23 = arith.constant 0 : index
    %c0_24 = arith.constant 0 : index
    %17 = vector.load %arg11[%c0_21, %c0_22, %c0_23, %c0_24] : memref<2x18x8x16xf32, #tpu.memory_space<vmem>>, vector<2x1x8x16xf32>
    tpu.vector_store %arg11[%c0_21, %c0_22, %c0_23, %c0_24], %16 {strides = array<i32>} : memref<2x18x8x16xf32, #tpu.memory_space<vmem>>, vector<2x1x8x16xf32>,
    %cst_25 = arith.constant 0.000000e+00 : f32
    %18 = vector.broadcast %cst_25 : f32 to vector<2x1x8x16xf32>
    %c0_26 = arith.constant 0 : index
    %c17_27 = arith.constant 17 : index
    %c0_28 = arith.constant 0 : index
    %c0_29 = arith.constant 0 : index
    %19 = vector.load %arg11[%c0_26, %c17_27, %c0_28, %c0_29] : memref<2x18x8x16xf32, #tpu.memory_space<vmem>>, vector<2x1x8x16xf32>
    tpu.vector_store %arg11[%c0_26, %c17_27, %c0_28, %c0_29], %18 {strides = array<i32>} : memref<2x18x8x16xf32, #tpu.memory_space<vmem>>, vector<2x1x8x16xf32>,
    %20 = vector.shape_cast %9 : vector<256x16xf32> to vector<2x16x8x16xf32>
    %c0_30 = arith.constant 0 : index
    %c1 = arith.constant 1 : index
    %c1_31 = arith.constant 1 : index
    %c0_32 = arith.constant 0 : index
    %21 = vector.load %arg10[%c0_30, %c1, %c1_31, %c0_32] : memref<2x18x9x16xf32, #tpu.memory_space<vmem>>, vector<2x16x8x16xf32>
    tpu.vector_store %arg10[%c0_30, %c1, %c1_31, %c0_32], %20 {strides = array<i32>} : memref<2x18x9x16xf32, #tpu.memory_space<vmem>>, vector<2x16x8x16xf32>,
    %22 = vector.shape_cast %8 : vector<256x16xf32> to vector<2x16x8x16xf32>
    %c0_33 = arith.constant 0 : index
    %c1_34 = arith.constant 1 : index
    %c0_35 = arith.constant 0 : index
    %c0_36 = arith.constant 0 : index
    %23 = vector.load %arg11[%c0_33, %c1_34, %c0_35, %c0_36] : memref<2x18x8x16xf32, #tpu.memory_space<vmem>>, vector<2x16x8x16xf32>
    tpu.vector_store %arg11[%c0_33, %c1_34, %c0_35, %c0_36], %22 {strides = array<i32>} : memref<2x18x8x16xf32, #tpu.memory_space<vmem>>, vector<2x16x8x16xf32>,
    %c0_37 = arith.constant 0 : index
    %c0_38 = arith.constant 0 : index
    %c0_39 = arith.constant 0 : index
    %c0_40 = arith.constant 0 : index
    %24 = vector.load %arg10[%c0_37, %c0_38, %c0_39, %c0_40] : memref<2x18x9x16xf32, #tpu.memory_space<vmem>>, vector<2x16x8x16xf32>
    %25 = vector.shape_cast %24 : vector<2x16x8x16xf32> to vector<2x8x2x8x16xf32>
    %26 = vector.extract_strided_slice %25 {offsets = [0, 0, 0, 0, 0], sizes = [2, 8, 1, 8, 16], strides = [1, 1, 1, 1, 1]} : vector<2x8x2x8x16xf32> to vector<2x8x1x8x16xf32>
    %27 = vector.shape_cast %26 : vector<2x8x1x8x16xf32> to vector<2x8x8x16xf32>
    %28 = vector.shape_cast %27 : vector<2x8x8x16xf32> to vector<128x16xf32>
    %c0_41 = arith.constant 0 : index
    %c0_42 = arith.constant 0 : index
    %c0_43 = arith.constant 0 : index
    %29 = vector.load %arg4[%c0_41, %c0_42, %c0_43] : memref<9x16x32xf32, #tpu.memory_space<vmem>>, vector<1x16x32xf32>
    %30 = vector.shape_cast %29 : vector<1x16x32xf32> to vector<16x32xf32>
    %cst_44 = arith.constant dense<0.000000e+00> : vector<128x32xf32>
    %31 = tpu.matmul %28, %30, %cst_44 {dimension_numbers = #tpu.dot_dimension_numbers<[1], [0], [0], [1], [0, 0, 1, 1], [], []>} : vector<128x16xf32>, vector<16x32xf32>, vector<128x32xf32> -> vector<128x32xf32>
    %c0_45 = arith.constant 0 : index
    %c0_46 = arith.constant 0 : index
    %c0_47 = arith.constant 0 : index
    %c0_48 = arith.constant 0 : index
    %32 = vector.load %arg11[%c0_45, %c0_46, %c0_47, %c0_48] : memref<2x18x8x16xf32, #tpu.memory_space<vmem>>, vector<2x16x8x16xf32>
    %33 = vector.shape_cast %32 : vector<2x16x8x16xf32> to vector<2x8x2x8x16xf32>
    %34 = vector.extract_strided_slice %33 {offsets = [0, 0, 0, 0, 0], sizes = [2, 8, 1, 8, 16], strides = [1, 1, 1, 1, 1]} : vector<2x8x2x8x16xf32> to vector<2x8x1x8x16xf32>
    %35 = vector.shape_cast %34 : vector<2x8x1x8x16xf32> to vector<2x8x8x16xf32>
    %36 = vector.shape_cast %35 : vector<2x8x8x16xf32> to vector<128x16xf32>
    %c1_49 = arith.constant 1 : index
    %c0_50 = arith.constant 0 : index
    %c0_51 = arith.constant 0 : index
    %37 = vector.load %arg4[%c1_49, %c0_50, %c0_51] : memref<9x16x32xf32, #tpu.memory_space<vmem>>, vector<1x16x32xf32>
    %38 = vector.shape_cast %37 : vector<1x16x32xf32> to vector<16x32xf32>
    %cst_52 = arith.constant dense<0.000000e+00> : vector<128x32xf32>
    %39 = tpu.matmul %36, %38, %cst_52 {dimension_numbers = #tpu.dot_dimension_numbers<[1], [0], [0], [1], [0, 0, 1, 1], [], []>} : vector<128x16xf32>, vector<16x32xf32>, vector<128x32xf32> -> vector<128x32xf32>
    %40 = arith.addf %31, %39 : vector<128x32xf32>
    %c0_53 = arith.constant 0 : index
    %c0_54 = arith.constant 0 : index
    %c1_55 = arith.constant 1 : index
    %c0_56 = arith.constant 0 : index
    %41 = vector.load %arg10[%c0_53, %c0_54, %c1_55, %c0_56] : memref<2x18x9x16xf32, #tpu.memory_space<vmem>>, vector<2x16x8x16xf32>
    %42 = vector.shape_cast %41 : vector<2x16x8x16xf32> to vector<2x8x2x8x16xf32>
    %43 = vector.extract_strided_slice %42 {offsets = [0, 0, 0, 0, 0], sizes = [2, 8, 1, 8, 16], strides = [1, 1, 1, 1, 1]} : vector<2x8x2x8x16xf32> to vector<2x8x1x8x16xf32>
    %44 = vector.shape_cast %43 : vector<2x8x1x8x16xf32> to vector<2x8x8x16xf32>
    %45 = vector.shape_cast %44 : vector<2x8x8x16xf32> to vector<128x16xf32>
    %c2 = arith.constant 2 : index
    %c0_57 = arith.constant 0 : index
    %c0_58 = arith.constant 0 : index
    %46 = vector.load %arg4[%c2, %c0_57, %c0_58] : memref<9x16x32xf32, #tpu.memory_space<vmem>>, vector<1x16x32xf32>
    %47 = vector.shape_cast %46 : vector<1x16x32xf32> to vector<16x32xf32>
    %cst_59 = arith.constant dense<0.000000e+00> : vector<128x32xf32>
    %48 = tpu.matmul %45, %47, %cst_59 {dimension_numbers = #tpu.dot_dimension_numbers<[1], [0], [0], [1], [0, 0, 1, 1], [], []>} : vector<128x16xf32>, vector<16x32xf32>, vector<128x32xf32> -> vector<128x32xf32>
    %49 = arith.addf %40, %48 : vector<128x32xf32>
    %c0_60 = arith.constant 0 : index
    %c0_61 = arith.constant 0 : index
    %c0_62 = arith.constant 0 : index
    %c0_63 = arith.constant 0 : index
    %50 = vector.load %arg10[%c0_60, %c0_61, %c0_62, %c0_63] : memref<2x18x9x16xf32, #tpu.memory_space<vmem>>, vector<2x16x8x16xf32>
    %51 = vector.shape_cast %50 : vector<2x16x8x16xf32> to vector<2x8x2x8x16xf32>
    %52 = vector.extract_strided_slice %51 {offsets = [0, 0, 1, 0, 0], sizes = [2, 8, 1, 8, 16], strides = [1, 1, 1, 1, 1]} : vector<2x8x2x8x16xf32> to vector<2x8x1x8x16xf32>
    %53 = vector.shape_cast %52 : vector<2x8x1x8x16xf32> to vector<2x8x8x16xf32>
    %54 = vector.shape_cast %53 : vector<2x8x8x16xf32> to vector<128x16xf32>
    %c3 = arith.constant 3 : index
    %c0_64 = arith.constant 0 : index
    %c0_65 = arith.constant 0 : index
    %55 = vector.load %arg4[%c3, %c0_64, %c0_65] : memref<9x16x32xf32, #tpu.memory_space<vmem>>, vector<1x16x32xf32>
    %56 = vector.shape_cast %55 : vector<1x16x32xf32> to vector<16x32xf32>
    %cst_66 = arith.constant dense<0.000000e+00> : vector<128x32xf32>
    %57 = tpu.matmul %54, %56, %cst_66 {dimension_numbers = #tpu.dot_dimension_numbers<[1], [0], [0], [1], [0, 0, 1, 1], [], []>} : vector<128x16xf32>, vector<16x32xf32>, vector<128x32xf32> -> vector<128x32xf32>
    %58 = arith.addf %49, %57 : vector<128x32xf32>
    %c0_67 = arith.constant 0 : index
    %c0_68 = arith.constant 0 : index
    %c0_69 = arith.constant 0 : index
    %c0_70 = arith.constant 0 : index
    %59 = vector.load %arg11[%c0_67, %c0_68, %c0_69, %c0_70] : memref<2x18x8x16xf32, #tpu.memory_space<vmem>>, vector<2x16x8x16xf32>
    %60 = vector.shape_cast %59 : vector<2x16x8x16xf32> to vector<2x8x2x8x16xf32>
    %61 = vector.extract_strided_slice %60 {offsets = [0, 0, 1, 0, 0], sizes = [2, 8, 1, 8, 16], strides = [1, 1, 1, 1, 1]} : vector<2x8x2x8x16xf32> to vector<2x8x1x8x16xf32>
    %62 = vector.shape_cast %61 : vector<2x8x1x8x16xf32> to vector<2x8x8x16xf32>
    %63 = vector.shape_cast %62 : vector<2x8x8x16xf32> to vector<128x16xf32>
    %c4 = arith.constant 4 : index
    %c0_71 = arith.constant 0 : index
    %c0_72 = arith.constant 0 : index
    %64 = vector.load %arg4[%c4, %c0_71, %c0_72] : memref<9x16x32xf32, #tpu.memory_space<vmem>>, vector<1x16x32xf32>
    %65 = vector.shape_cast %64 : vector<1x16x32xf32> to vector<16x32xf32>
    %cst_73 = arith.constant dense<0.000000e+00> : vector<128x32xf32>
    %66 = tpu.matmul %63, %65, %cst_73 {dimension_numbers = #tpu.dot_dimension_numbers<[1], [0], [0], [1], [0, 0, 1, 1], [], []>} : vector<128x16xf32>, vector<16x32xf32>, vector<128x32xf32> -> vector<128x32xf32>
    %67 = arith.addf %58, %66 : vector<128x32xf32>
    %c0_74 = arith.constant 0 : index
    %c0_75 = arith.constant 0 : index
    %c1_76 = arith.constant 1 : index
    %c0_77 = arith.constant 0 : index
    %68 = vector.load %arg10[%c0_74, %c0_75, %c1_76, %c0_77] : memref<2x18x9x16xf32, #tpu.memory_space<vmem>>, vector<2x16x8x16xf32>
    %69 = vector.shape_cast %68 : vector<2x16x8x16xf32> to vector<2x8x2x8x16xf32>
    %70 = vector.extract_strided_slice %69 {offsets = [0, 0, 1, 0, 0], sizes = [2, 8, 1, 8, 16], strides = [1, 1, 1, 1, 1]} : vector<2x8x2x8x16xf32> to vector<2x8x1x8x16xf32>
    %71 = vector.shape_cast %70 : vector<2x8x1x8x16xf32> to vector<2x8x8x16xf32>
    %72 = vector.shape_cast %71 : vector<2x8x8x16xf32> to vector<128x16xf32>
    %c5 = arith.constant 5 : index
    %c0_78 = arith.constant 0 : index
    %c0_79 = arith.constant 0 : index
    %73 = vector.load %arg4[%c5, %c0_78, %c0_79] : memref<9x16x32xf32, #tpu.memory_space<vmem>>, vector<1x16x32xf32>
    %74 = vector.shape_cast %73 : vector<1x16x32xf32> to vector<16x32xf32>
    %cst_80 = arith.constant dense<0.000000e+00> : vector<128x32xf32>
    %75 = tpu.matmul %72, %74, %cst_80 {dimension_numbers = #tpu.dot_dimension_numbers<[1], [0], [0], [1], [0, 0, 1, 1], [], []>} : vector<128x16xf32>, vector<16x32xf32>, vector<128x32xf32> -> vector<128x32xf32>
    %76 = arith.addf %67, %75 : vector<128x32xf32>
    %c0_81 = arith.constant 0 : index
    %c2_82 = arith.constant 2 : index
    %c0_83 = arith.constant 0 : index
    %c0_84 = arith.constant 0 : index
    %77 = vector.load %arg10[%c0_81, %c2_82, %c0_83, %c0_84] : memref<2x18x9x16xf32, #tpu.memory_space<vmem>>, vector<2x16x8x16xf32>
    %78 = vector.shape_cast %77 : vector<2x16x8x16xf32> to vector<2x8x2x8x16xf32>
    %79 = vector.extract_strided_slice %78 {offsets = [0, 0, 0, 0, 0], sizes = [2, 8, 1, 8, 16], strides = [1, 1, 1, 1, 1]} : vector<2x8x2x8x16xf32> to vector<2x8x1x8x16xf32>
    %80 = vector.shape_cast %79 : vector<2x8x1x8x16xf32> to vector<2x8x8x16xf32>
    %81 = vector.shape_cast %80 : vector<2x8x8x16xf32> to vector<128x16xf32>
    %c6 = arith.constant 6 : index
    %c0_85 = arith.constant 0 : index
    %c0_86 = arith.constant 0 : index
    %82 = vector.load %arg4[%c6, %c0_85, %c0_86] : memref<9x16x32xf32, #tpu.memory_space<vmem>>, vector<1x16x32xf32>
    %83 = vector.shape_cast %82 : vector<1x16x32xf32> to vector<16x32xf32>
    %cst_87 = arith.constant dense<0.000000e+00> : vector<128x32xf32>
    %84 = tpu.matmul %81, %83, %cst_87 {dimension_numbers = #tpu.dot_dimension_numbers<[1], [0], [0], [1], [0, 0, 1, 1], [], []>} : vector<128x16xf32>, vector<16x32xf32>, vector<128x32xf32> -> vector<128x32xf32>
    %85 = arith.addf %76, %84 : vector<128x32xf32>
    %c0_88 = arith.constant 0 : index
    %c2_89 = arith.constant 2 : index
    %c0_90 = arith.constant 0 : index
    %c0_91 = arith.constant 0 : index
    %86 = vector.load %arg11[%c0_88, %c2_89, %c0_90, %c0_91] : memref<2x18x8x16xf32, #tpu.memory_space<vmem>>, vector<2x16x8x16xf32>
    %87 = vector.shape_cast %86 : vector<2x16x8x16xf32> to vector<2x8x2x8x16xf32>
    %88 = vector.extract_strided_slice %87 {offsets = [0, 0, 0, 0, 0], sizes = [2, 8, 1, 8, 16], strides = [1, 1, 1, 1, 1]} : vector<2x8x2x8x16xf32> to vector<2x8x1x8x16xf32>
    %89 = vector.shape_cast %88 : vector<2x8x1x8x16xf32> to vector<2x8x8x16xf32>
    %90 = vector.shape_cast %89 : vector<2x8x8x16xf32> to vector<128x16xf32>
    %c7 = arith.constant 7 : index
    %c0_92 = arith.constant 0 : index
    %c0_93 = arith.constant 0 : index
    %91 = vector.load %arg4[%c7, %c0_92, %c0_93] : memref<9x16x32xf32, #tpu.memory_space<vmem>>, vector<1x16x32xf32>
    %92 = vector.shape_cast %91 : vector<1x16x32xf32> to vector<16x32xf32>
    %cst_94 = arith.constant dense<0.000000e+00> : vector<128x32xf32>
    %93 = tpu.matmul %90, %92, %cst_94 {dimension_numbers = #tpu.dot_dimension_numbers<[1], [0], [0], [1], [0, 0, 1, 1], [], []>} : vector<128x16xf32>, vector<16x32xf32>, vector<128x32xf32> -> vector<128x32xf32>
    %94 = arith.addf %85, %93 : vector<128x32xf32>
    %c0_95 = arith.constant 0 : index
    %c2_96 = arith.constant 2 : index
    %c1_97 = arith.constant 1 : index
    %c0_98 = arith.constant 0 : index
    %95 = vector.load %arg10[%c0_95, %c2_96, %c1_97, %c0_98] : memref<2x18x9x16xf32, #tpu.memory_space<vmem>>, vector<2x16x8x16xf32>
    %96 = vector.shape_cast %95 : vector<2x16x8x16xf32> to vector<2x8x2x8x16xf32>
    %97 = vector.extract_strided_slice %96 {offsets = [0, 0, 0, 0, 0], sizes = [2, 8, 1, 8, 16], strides = [1, 1, 1, 1, 1]} : vector<2x8x2x8x16xf32> to vector<2x8x1x8x16xf32>
    %98 = vector.shape_cast %97 : vector<2x8x1x8x16xf32> to vector<2x8x8x16xf32>
    %99 = vector.shape_cast %98 : vector<2x8x8x16xf32> to vector<128x16xf32>
    %c8 = arith.constant 8 : index
    %c0_99 = arith.constant 0 : index
    %c0_100 = arith.constant 0 : index
    %100 = vector.load %arg4[%c8, %c0_99, %c0_100] : memref<9x16x32xf32, #tpu.memory_space<vmem>>, vector<1x16x32xf32>
    %101 = vector.shape_cast %100 : vector<1x16x32xf32> to vector<16x32xf32>
    %cst_101 = arith.constant dense<0.000000e+00> : vector<128x32xf32>
    %102 = tpu.matmul %99, %101, %cst_101 {dimension_numbers = #tpu.dot_dimension_numbers<[1], [0], [0], [1], [0, 0, 1, 1], [], []>} : vector<128x16xf32>, vector<16x32xf32>, vector<128x32xf32> -> vector<128x32xf32>
    %103 = arith.addf %94, %102 : vector<128x32xf32>
    %c0_102 = arith.constant 0 : index
    %c0_103 = arith.constant 0 : index
    %104 = vector.load %arg5[%c0_102, %c0_103] : memref<1x32xf32, #tpu.memory_space<vmem>>, vector<1x32xf32>
    %105 = vector.broadcast %104 : vector<1x32xf32> to vector<128x32xf32>
    %106 = arith.addf %103, %105 : vector<128x32xf32>
    %cst_104 = arith.constant 0.000000e+00 : f32
    %107 = vector.broadcast %cst_104 : f32 to vector<128x32xf32>
    %108 = arith.maximumf %106, %107 : vector<128x32xf32>
    %cst_105 = arith.constant 0.000000e+00 : f32
    %109 = vector.broadcast %cst_105 : f32 to vector<2x10x10x32xf32>
    %c0_106 = arith.constant 0 : index
    %c0_107 = arith.constant 0 : index
    %c0_108 = arith.constant 0 : index
    %c0_109 = arith.constant 0 : index
    %110 = vector.load %arg12[%c0_106, %c0_107, %c0_108, %c0_109] : memref<2x10x10x32xf32, #tpu.memory_space<vmem>>, vector<2x10x10x32xf32>
    tpu.vector_store %arg12[%c0_106, %c0_107, %c0_108, %c0_109], %109 {strides = array<i32>} : memref<2x10x10x32xf32, #tpu.memory_space<vmem>>, vector<2x10x10x32xf32>,
    %111 = vector.shape_cast %108 : vector<128x32xf32> to vector<2x8x8x32xf32>
    %c0_110 = arith.constant 0 : index
    %c1_111 = arith.constant 1 : index
    %c1_112 = arith.constant 1 : index
    %c0_113 = arith.constant 0 : index
    %112 = vector.load %arg12[%c0_110, %c1_111, %c1_112, %c0_113] : memref<2x10x10x32xf32, #tpu.memory_space<vmem>>, vector<2x8x8x32xf32>
    tpu.vector_store %arg12[%c0_110, %c1_111, %c1_112, %c0_113], %111 {strides = array<i32>} : memref<2x10x10x32xf32, #tpu.memory_space<vmem>>, vector<2x8x8x32xf32>,
    %c0_114 = arith.constant 0 : index
    %c0_115 = arith.constant 0 : index
    %c0_116 = arith.constant 0 : index
    %c0_117 = arith.constant 0 : index
    %113 = vector.load %arg12[%c0_114, %c0_115, %c0_116, %c0_117] : memref<2x10x10x32xf32, #tpu.memory_space<vmem>>, vector<2x8x8x32xf32>
    %114 = vector.shape_cast %113 : vector<2x8x8x32xf32> to vector<2x4x2x8x32xf32>
    %115 = vector.extract_strided_slice %114 {offsets = [0, 0, 0, 0, 0], sizes = [2, 4, 1, 8, 32], strides = [1, 1, 1, 1, 1]} : vector<2x4x2x8x32xf32> to vector<2x4x1x8x32xf32>
    %116 = vector.shape_cast %115 : vector<2x4x1x8x32xf32> to vector<2x4x8x32xf32>
    %117 = vector.shape_cast %116 : vector<2x4x8x32xf32> to vector<64x32xf32>
    %c0_118 = arith.constant 0 : index
    %c0_119 = arith.constant 0 : index
    %c0_120 = arith.constant 0 : index
    %118 = vector.load %arg6[%c0_118, %c0_119, %c0_120] : memref<9x32x64xf32, #tpu.memory_space<vmem>>, vector<1x32x64xf32>
    %119 = vector.shape_cast %118 : vector<1x32x64xf32> to vector<32x64xf32>
    %cst_121 = arith.constant dense<0.000000e+00> : vector<64x64xf32>
    %120 = tpu.matmul %117, %119, %cst_121 {dimension_numbers = #tpu.dot_dimension_numbers<[1], [0], [0], [1], [0, 0, 1, 1], [], []>} : vector<64x32xf32>, vector<32x64xf32>, vector<64x64xf32> -> vector<64x64xf32>
    %c0_122 = arith.constant 0 : index
    %c0_123 = arith.constant 0 : index
    %c1_124 = arith.constant 1 : index
    %c0_125 = arith.constant 0 : index
    %121 = vector.load %arg12[%c0_122, %c0_123, %c1_124, %c0_125] : memref<2x10x10x32xf32, #tpu.memory_space<vmem>>, vector<2x8x8x32xf32>
    %122 = vector.shape_cast %121 : vector<2x8x8x32xf32> to vector<2x4x2x8x32xf32>
    %123 = vector.extract_strided_slice %122 {offsets = [0, 0, 0, 0, 0], sizes = [2, 4, 1, 8, 32], strides = [1, 1, 1, 1, 1]} : vector<2x4x2x8x32xf32> to vector<2x4x1x8x32xf32>
    %124 = vector.shape_cast %123 : vector<2x4x1x8x32xf32> to vector<2x4x8x32xf32>
    %125 = vector.shape_cast %124 : vector<2x4x8x32xf32> to vector<64x32xf32>
    %c1_126 = arith.constant 1 : index
    %c0_127 = arith.constant 0 : index
    %c0_128 = arith.constant 0 : index
    %126 = vector.load %arg6[%c1_126, %c0_127, %c0_128] : memref<9x32x64xf32, #tpu.memory_space<vmem>>, vector<1x32x64xf32>
    %127 = vector.shape_cast %126 : vector<1x32x64xf32> to vector<32x64xf32>
    %cst_129 = arith.constant dense<0.000000e+00> : vector<64x64xf32>
    %128 = tpu.matmul %125, %127, %cst_129 {dimension_numbers = #tpu.dot_dimension_numbers<[1], [0], [0], [1], [0, 0, 1, 1], [], []>} : vector<64x32xf32>, vector<32x64xf32>, vector<64x64xf32> -> vector<64x64xf32>
    %129 = arith.addf %120, %128 : vector<64x64xf32>
    %c0_130 = arith.constant 0 : index
    %c0_131 = arith.constant 0 : index
    %c2_132 = arith.constant 2 : index
    %c0_133 = arith.constant 0 : index
    %130 = vector.load %arg12[%c0_130, %c0_131, %c2_132, %c0_133] : memref<2x10x10x32xf32, #tpu.memory_space<vmem>>, vector<2x8x8x32xf32>
    %131 = vector.shape_cast %130 : vector<2x8x8x32xf32> to vector<2x4x2x8x32xf32>
    %132 = vector.extract_strided_slice %131 {offsets = [0, 0, 0, 0, 0], sizes = [2, 4, 1, 8, 32], strides = [1, 1, 1, 1, 1]} : vector<2x4x2x8x32xf32> to vector<2x4x1x8x32xf32>
    %133 = vector.shape_cast %132 : vector<2x4x1x8x32xf32> to vector<2x4x8x32xf32>
    %134 = vector.shape_cast %133 : vector<2x4x8x32xf32> to vector<64x32xf32>
    %c2_134 = arith.constant 2 : index
    %c0_135 = arith.constant 0 : index
    %c0_136 = arith.constant 0 : index
    %135 = vector.load %arg6[%c2_134, %c0_135, %c0_136] : memref<9x32x64xf32, #tpu.memory_space<vmem>>, vector<1x32x64xf32>
    %136 = vector.shape_cast %135 : vector<1x32x64xf32> to vector<32x64xf32>
    %cst_137 = arith.constant dense<0.000000e+00> : vector<64x64xf32>
    %137 = tpu.matmul %134, %136, %cst_137 {dimension_numbers = #tpu.dot_dimension_numbers<[1], [0], [0], [1], [0, 0, 1, 1], [], []>} : vector<64x32xf32>, vector<32x64xf32>, vector<64x64xf32> -> vector<64x64xf32>
    %138 = arith.addf %129, %137 : vector<64x64xf32>
    %c0_138 = arith.constant 0 : index
    %c0_139 = arith.constant 0 : index
    %c0_140 = arith.constant 0 : index
    %c0_141 = arith.constant 0 : index
    %139 = vector.load %arg12[%c0_138, %c0_139, %c0_140, %c0_141] : memref<2x10x10x32xf32, #tpu.memory_space<vmem>>, vector<2x8x8x32xf32>
    %140 = vector.shape_cast %139 : vector<2x8x8x32xf32> to vector<2x4x2x8x32xf32>
    %141 = vector.extract_strided_slice %140 {offsets = [0, 0, 1, 0, 0], sizes = [2, 4, 1, 8, 32], strides = [1, 1, 1, 1, 1]} : vector<2x4x2x8x32xf32> to vector<2x4x1x8x32xf32>
    %142 = vector.shape_cast %141 : vector<2x4x1x8x32xf32> to vector<2x4x8x32xf32>
    %143 = vector.shape_cast %142 : vector<2x4x8x32xf32> to vector<64x32xf32>
    %c3_142 = arith.constant 3 : index
    %c0_143 = arith.constant 0 : index
    %c0_144 = arith.constant 0 : index
    %144 = vector.load %arg6[%c3_142, %c0_143, %c0_144] : memref<9x32x64xf32, #tpu.memory_space<vmem>>, vector<1x32x64xf32>
    %145 = vector.shape_cast %144 : vector<1x32x64xf32> to vector<32x64xf32>
    %cst_145 = arith.constant dense<0.000000e+00> : vector<64x64xf32>
    %146 = tpu.matmul %143, %145, %cst_145 {dimension_numbers = #tpu.dot_dimension_numbers<[1], [0], [0], [1], [0, 0, 1, 1], [], []>} : vector<64x32xf32>, vector<32x64xf32>, vector<64x64xf32> -> vector<64x64xf32>
    %147 = arith.addf %138, %146 : vector<64x64xf32>
    %c0_146 = arith.constant 0 : index
    %c0_147 = arith.constant 0 : index
    %c1_148 = arith.constant 1 : index
    %c0_149 = arith.constant 0 : index
    %148 = vector.load %arg12[%c0_146, %c0_147, %c1_148, %c0_149] : memref<2x10x10x32xf32, #tpu.memory_space<vmem>>, vector<2x8x8x32xf32>
    %149 = vector.shape_cast %148 : vector<2x8x8x32xf32> to vector<2x4x2x8x32xf32>
    %150 = vector.extract_strided_slice %149 {offsets = [0, 0, 1, 0, 0], sizes = [2, 4, 1, 8, 32], strides = [1, 1, 1, 1, 1]} : vector<2x4x2x8x32xf32> to vector<2x4x1x8x32xf32>
    %151 = vector.shape_cast %150 : vector<2x4x1x8x32xf32> to vector<2x4x8x32xf32>
    %152 = vector.shape_cast %151 : vector<2x4x8x32xf32> to vector<64x32xf32>
    %c4_150 = arith.constant 4 : index
    %c0_151 = arith.constant 0 : index
    %c0_152 = arith.constant 0 : index
    %153 = vector.load %arg6[%c4_150, %c0_151, %c0_152] : memref<9x32x64xf32, #tpu.memory_space<vmem>>, vector<1x32x64xf32>
    %154 = vector.shape_cast %153 : vector<1x32x64xf32> to vector<32x64xf32>
    %cst_153 = arith.constant dense<0.000000e+00> : vector<64x64xf32>
    %155 = tpu.matmul %152, %154, %cst_153 {dimension_numbers = #tpu.dot_dimension_numbers<[1], [0], [0], [1], [0, 0, 1, 1], [], []>} : vector<64x32xf32>, vector<32x64xf32>, vector<64x64xf32> -> vector<64x64xf32>
    %156 = arith.addf %147, %155 : vector<64x64xf32>
    %c0_154 = arith.constant 0 : index
    %c0_155 = arith.constant 0 : index
    %c2_156 = arith.constant 2 : index
    %c0_157 = arith.constant 0 : index
    %157 = vector.load %arg12[%c0_154, %c0_155, %c2_156, %c0_157] : memref<2x10x10x32xf32, #tpu.memory_space<vmem>>, vector<2x8x8x32xf32>
    %158 = vector.shape_cast %157 : vector<2x8x8x32xf32> to vector<2x4x2x8x32xf32>
    %159 = vector.extract_strided_slice %158 {offsets = [0, 0, 1, 0, 0], sizes = [2, 4, 1, 8, 32], strides = [1, 1, 1, 1, 1]} : vector<2x4x2x8x32xf32> to vector<2x4x1x8x32xf32>
    %160 = vector.shape_cast %159 : vector<2x4x1x8x32xf32> to vector<2x4x8x32xf32>
    %161 = vector.shape_cast %160 : vector<2x4x8x32xf32> to vector<64x32xf32>
    %c5_158 = arith.constant 5 : index
    %c0_159 = arith.constant 0 : index
    %c0_160 = arith.constant 0 : index
    %162 = vector.load %arg6[%c5_158, %c0_159, %c0_160] : memref<9x32x64xf32, #tpu.memory_space<vmem>>, vector<1x32x64xf32>
    %163 = vector.shape_cast %162 : vector<1x32x64xf32> to vector<32x64xf32>
    %cst_161 = arith.constant dense<0.000000e+00> : vector<64x64xf32>
    %164 = tpu.matmul %161, %163, %cst_161 {dimension_numbers = #tpu.dot_dimension_numbers<[1], [0], [0], [1], [0, 0, 1, 1], [], []>} : vector<64x32xf32>, vector<32x64xf32>, vector<64x64xf32> -> vector<64x64xf32>
    %165 = arith.addf %156, %164 : vector<64x64xf32>
    %c0_162 = arith.constant 0 : index
    %c2_163 = arith.constant 2 : index
    %c0_164 = arith.constant 0 : index
    %c0_165 = arith.constant 0 : index
    %166 = vector.load %arg12[%c0_162, %c2_163, %c0_164, %c0_165] : memref<2x10x10x32xf32, #tpu.memory_space<vmem>>, vector<2x8x8x32xf32>
    %167 = vector.shape_cast %166 : vector<2x8x8x32xf32> to vector<2x4x2x8x32xf32>
    %168 = vector.extract_strided_slice %167 {offsets = [0, 0, 0, 0, 0], sizes = [2, 4, 1, 8, 32], strides = [1, 1, 1, 1, 1]} : vector<2x4x2x8x32xf32> to vector<2x4x1x8x32xf32>
    %169 = vector.shape_cast %168 : vector<2x4x1x8x32xf32> to vector<2x4x8x32xf32>
    %170 = vector.shape_cast %169 : vector<2x4x8x32xf32> to vector<64x32xf32>
    %c6_166 = arith.constant 6 : index
    %c0_167 = arith.constant 0 : index
    %c0_168 = arith.constant 0 : index
    %171 = vector.load %arg6[%c6_166, %c0_167, %c0_168] : memref<9x32x64xf32, #tpu.memory_space<vmem>>, vector<1x32x64xf32>
    %172 = vector.shape_cast %171 : vector<1x32x64xf32> to vector<32x64xf32>
    %cst_169 = arith.constant dense<0.000000e+00> : vector<64x64xf32>
    %173 = tpu.matmul %170, %172, %cst_169 {dimension_numbers = #tpu.dot_dimension_numbers<[1], [0], [0], [1], [0, 0, 1, 1], [], []>} : vector<64x32xf32>, vector<32x64xf32>, vector<64x64xf32> -> vector<64x64xf32>
    %174 = arith.addf %165, %173 : vector<64x64xf32>
    %c0_170 = arith.constant 0 : index
    %c2_171 = arith.constant 2 : index
    %c1_172 = arith.constant 1 : index
    %c0_173 = arith.constant 0 : index
    %175 = vector.load %arg12[%c0_170, %c2_171, %c1_172, %c0_173] : memref<2x10x10x32xf32, #tpu.memory_space<vmem>>, vector<2x8x8x32xf32>
    %176 = vector.shape_cast %175 : vector<2x8x8x32xf32> to vector<2x4x2x8x32xf32>
    %177 = vector.extract_strided_slice %176 {offsets = [0, 0, 0, 0, 0], sizes = [2, 4, 1, 8, 32], strides = [1, 1, 1, 1, 1]} : vector<2x4x2x8x32xf32> to vector<2x4x1x8x32xf32>
    %178 = vector.shape_cast %177 : vector<2x4x1x8x32xf32> to vector<2x4x8x32xf32>
    %179 = vector.shape_cast %178 : vector<2x4x8x32xf32> to vector<64x32xf32>
    %c7_174 = arith.constant 7 : index
    %c0_175 = arith.constant 0 : index
    %c0_176 = arith.constant 0 : index
    %180 = vector.load %arg6[%c7_174, %c0_175, %c0_176] : memref<9x32x64xf32, #tpu.memory_space<vmem>>, vector<1x32x64xf32>
    %181 = vector.shape_cast %180 : vector<1x32x64xf32> to vector<32x64xf32>
    %cst_177 = arith.constant dense<0.000000e+00> : vector<64x64xf32>
    %182 = tpu.matmul %179, %181, %cst_177 {dimension_numbers = #tpu.dot_dimension_numbers<[1], [0], [0], [1], [0, 0, 1, 1], [], []>} : vector<64x32xf32>, vector<32x64xf32>, vector<64x64xf32> -> vector<64x64xf32>
    %183 = arith.addf %174, %182 : vector<64x64xf32>
    %c0_178 = arith.constant 0 : index
    %c2_179 = arith.constant 2 : index
    %c2_180 = arith.constant 2 : index
    %c0_181 = arith.constant 0 : index
    %184 = vector.load %arg12[%c0_178, %c2_179, %c2_180, %c0_181] : memref<2x10x10x32xf32, #tpu.memory_space<vmem>>, vector<2x8x8x32xf32>
    %185 = vector.shape_cast %184 : vector<2x8x8x32xf32> to vector<2x4x2x8x32xf32>
    %186 = vector.extract_strided_slice %185 {offsets = [0, 0, 0, 0, 0], sizes = [2, 4, 1, 8, 32], strides = [1, 1, 1, 1, 1]} : vector<2x4x2x8x32xf32> to vector<2x4x1x8x32xf32>
    %187 = vector.shape_cast %186 : vector<2x4x1x8x32xf32> to vector<2x4x8x32xf32>
    %188 = vector.shape_cast %187 : vector<2x4x8x32xf32> to vector<64x32xf32>
    %c8_182 = arith.constant 8 : index
    %c0_183 = arith.constant 0 : index
    %c0_184 = arith.constant 0 : index
    %189 = vector.load %arg6[%c8_182, %c0_183, %c0_184] : memref<9x32x64xf32, #tpu.memory_space<vmem>>, vector<1x32x64xf32>
    %190 = vector.shape_cast %189 : vector<1x32x64xf32> to vector<32x64xf32>
    %cst_185 = arith.constant dense<0.000000e+00> : vector<64x64xf32>
    %191 = tpu.matmul %188, %190, %cst_185 {dimension_numbers = #tpu.dot_dimension_numbers<[1], [0], [0], [1], [0, 0, 1, 1], [], []>} : vector<64x32xf32>, vector<32x64xf32>, vector<64x64xf32> -> vector<64x64xf32>
    %192 = arith.addf %183, %191 : vector<64x64xf32>
    %c0_186 = arith.constant 0 : index
    %c0_187 = arith.constant 0 : index
    %193 = vector.load %arg8[%c0_186, %c0_187] : memref<32x64xf32, #tpu.memory_space<vmem>>, vector<32x64xf32>
    %cst_188 = arith.constant dense<0.000000e+00> : vector<32x64xf32>
    %194 = tpu.matmul %193, %192, %cst_188 {dimension_numbers = #tpu.dot_dimension_numbers<[1], [0], [0], [1], [0, 0, 1, 1], [], []>} : vector<32x64xf32>, vector<64x64xf32>, vector<32x64xf32> -> vector<32x64xf32>
    %c0_189 = arith.constant 0 : index
    %c0_190 = arith.constant 0 : index
    %195 = vector.load %arg7[%c0_189, %c0_190] : memref<1x64xf32, #tpu.memory_space<vmem>>, vector<1x64xf32>
    %196 = vector.broadcast %195 : vector<1x64xf32> to vector<32x64xf32>
    %197 = arith.addf %194, %196 : vector<32x64xf32>
    %cst_191 = arith.constant 0.000000e+00 : f32
    %198 = vector.broadcast %cst_191 : f32 to vector<32x64xf32>
    %199 = arith.maximumf %197, %198 : vector<32x64xf32>
    %200 = vector.extract_strided_slice %199 {offsets = [0, 0], sizes = [8, 64], strides = [1, 1]} : vector<32x64xf32> to vector<8x64xf32>
    %201 = vector.extract_strided_slice %199 {offsets = [8, 0], sizes = [8, 64], strides = [1, 1]} : vector<32x64xf32> to vector<8x64xf32>
    %202 = vector.extract_strided_slice %199 {offsets = [16, 0], sizes = [8, 64], strides = [1, 1]} : vector<32x64xf32> to vector<8x64xf32>
    %203 = vector.extract_strided_slice %199 {offsets = [24, 0], sizes = [8, 64], strides = [1, 1]} : vector<32x64xf32> to vector<8x64xf32>
    %204 = tpu.concatenate %200, %201, %202, %203 in 1 : vector<8x64xf32>, vector<8x64xf32>, vector<8x64xf32>, vector<8x64xf32> -> vector<8x256xf32>
    %c0_192 = arith.constant 0 : index
    %c0_193 = arith.constant 0 : index
    %205 = vector.load %arg9[%c0_192, %c0_193] : memref<8x256xf32, #tpu.memory_space<vmem>>, vector<8x256xf32>
    tpu.vector_store %arg9[%c0_192, %c0_193], %204 {strides = array<i32>} : memref<8x256xf32, #tpu.memory_space<vmem>>, vector<8x256xf32>,
    return
  }
  func.func @transform_0(%arg0: i32) -> (i32, i32) {
    %c0_i32 = arith.constant 0 : i32
    %c0_i32_0 = arith.constant 0 : i32
    %c0_i32_1 = arith.constant 0 : i32
    return %c0_i32, %c0_i32_0 : i32, i32
  }
  func.func @transform_1(%arg0: i32) -> (i32, i32) {
    %c0_i32 = arith.constant 0 : i32
    %c0_i32_0 = arith.constant 0 : i32
    %c0_i32_1 = arith.constant 0 : i32
    return %c0_i32, %c0_i32_0 : i32, i32
  }
  func.func @transform_2(%arg0: i32) -> (i32, i32) {
    %c0_i32 = arith.constant 0 : i32
    %c0_i32_0 = arith.constant 0 : i32
    %c0_i32_1 = arith.constant 0 : i32
    return %c0_i32, %c0_i32_0 : i32, i32
  }
  func.func @transform_3(%arg0: i32) -> (i32, i32, i32) {
    %c0_i32 = arith.constant 0 : i32
    %c0_i32_0 = arith.constant 0 : i32
    %c0_i32_1 = arith.constant 0 : i32
    %c0_i32_2 = arith.constant 0 : i32
    return %c0_i32, %c0_i32_0, %c0_i32_1 : i32, i32, i32
  }
  func.func @transform_4(%arg0: i32) -> (i32, i32) {
    %c0_i32 = arith.constant 0 : i32
    %c0_i32_0 = arith.constant 0 : i32
    %c0_i32_1 = arith.constant 0 : i32
    return %c0_i32, %c0_i32_0 : i32, i32
  }
  func.func @transform_5(%arg0: i32) -> (i32, i32, i32) {
    %c0_i32 = arith.constant 0 : i32
    %c0_i32_0 = arith.constant 0 : i32
    %c0_i32_1 = arith.constant 0 : i32
    %c0_i32_2 = arith.constant 0 : i32
    return %c0_i32, %c0_i32_0, %c0_i32_1 : i32, i32, i32
  }
  func.func @transform_6(%arg0: i32) -> (i32, i32) {
    %c0_i32 = arith.constant 0 : i32
    %c0_i32_0 = arith.constant 0 : i32
    %c0_i32_1 = arith.constant 0 : i32
    return %c0_i32, %c0_i32_0 : i32, i32
  }
  func.func @transform_7(%arg0: i32) -> (i32, i32) {
    %c0_i32 = arith.constant 0 : i32
    %c0_i32_0 = arith.constant 0 : i32
    %c0_i32_1 = arith.constant 0 : i32
    return %c0_i32, %c0_i32_0 : i32, i32
  }
  func.func @transform_8(%arg0: i32) -> (i32, i32) {
    %c0_i32 = arith.constant 0 : i32
    %c0_i32_0 = arith.constant 0 : i32
    %c0_i32_1 = arith.constant 0 : i32
    return %c0_i32, %c0_i32_0 : i32, i32
  }
}

</mosaic_0001>

<bundles_post_ra>
// kernel: netv6_forward.1
= control target key start
LH: loop header
LB: loop body
LE: loop exit
PB: predicated region body
PF: predicated region fallthrough
CT: control target
= control target key end

     0   :  { %vm292_vm0 = vcmask 1040384   ;;  %vm99_vm1 = vcmask 72704   ;;  %vm569_vm2 = vcmask 130048   ;;  %v4754_v15 = vmov 0.0   ;;  %s3256_s9 = smov 64   ;;  %s4745_s1 = inlined_call_operand.vmem [shape: f32[9,16], index: 1, kind: input, shape index: {}]   ;;  %s4746_s0 = inlined_call_operand.vmem [shape: f32[512,9], index: 0, kind: input, shape index: {}]   ;;  %s4747_s2 = inlined_call_operand.vmem [shape: f32[1,16], index: 2, kind: input, shape index: {}]   ;;  %s4748_s3 = inlined_call_operand.vmem [shape: f32[9,16,32], index: 3, kind: input, shape index: {}]   ;;  %s4749_s5 = inlined_call_operand.vmem [shape: f32[9,32,64], index: 5, kind: input, shape index: {}]   ;;  %s4750_s4 = inlined_call_operand.vmem [shape: f32[1,32], index: 4, kind: input, shape index: {}]   ;;  %s4751_s6 = inlined_call_operand.vmem [shape: f32[1,64], index: 6, kind: input, shape index: {}]   ;;  %s4752_s7 = inlined_call_operand.vmem [shape: f32[32,64], index: 7, kind: input, shape index: {}]   ;;  %s4753_s8 = inlined_call_operand.vmem [shape: f32[8,256], index: 8, kind: output, shape index: {}]  }
   0x1   :  { %v94_v0 = vld [vmem:[%s4745_s1 + $0x8] sm:$0x1]  ;;  %v93_v1 = vld [vmem:[%s4745_s1] sm:$0xff]  ;;  %v31_v4 = vld [vmem:[%s4746_s0 + $0x10] sm:$0xff]  ;;  %616 = vst.msk [vmem:[#allocation3] sm:$0xff] %vm569_vm2, %v4754_v15  ;;  %vm571_vm3 = vcmask 122880  }
   0x2   :  { %2911 = vmatpush.msk.msra.mxu0 %vm292_vm0, %v94_v0  ;;  %v29_v2 = vld [vmem:[%s4746_s0] sm:$0xff]  ;;  %3244 = vmatpush.msk.msra.mxu3 %vm292_vm0, %v94_v0  ;;  %v30_v3 = vld [vmem:[%s4746_s0 + $0x8] sm:$0xff]  ;;  %v32_v5 = vld [vmem:[%s4746_s0 + $0x18] sm:$0xff]  ;;  %570 = vst.msk [vmem:[#allocation2] sm:$0xff] %vm569_vm2, %v4754_v15  ;;  %vm2024_vm4 = vcmask 261120   ;;  %vm2026_vm5 = vcmask 254976  }
   0x3   :  { %v33_v6 = vld [vmem:[%s4746_s0 + $0x20] sm:$0xff]  ;;  %v34_v7 = vld [vmem:[%s4746_s0 + $0x28] sm:$0xff]  ;;  %v35_v8 = vld [vmem:[%s4746_s0 + $0x30] sm:$0xff]  ;;  %573 = vst.msk [vmem:[#allocation2 + $0x120] sm:$0xff] %vm569_vm2, %v4754_v15  ;;  %vm2849_vm6 = vcmask 523264  }
   0x4   :  { %311 = vmatpush.msra.mxu0 %v93_v1  ;;  %3245 = vmatpush.msra.mxu3 %v93_v1  ;;  %v36_v9 = vld [vmem:[%s4746_s0 + $0x38] sm:$0xff]  ;;  %v37_v10 = vld [vmem:[%s4746_s0 + $0x40] sm:$0xff]  ;;  %v38_v11 = vld [vmem:[%s4746_s0 + $0x48] sm:$0xff]  ;;  %617 = vst.msk [vmem:[#allocation3 + $0x90] sm:$0xff] %vm569_vm2, %v4754_v15 }
   0x5   :  { %2912 = vmatmul.msk.f32.vlgmr.msra.gmra.mxu0 %vm99_vm1, %v29_v2  ;;  %v39_v12 = vld [vmem:[%s4746_s0 + $0x50] sm:$0xff]  ;;  %v40_v13 = vld [vmem:[%s4746_s0 + $0x58] sm:$0xff]  ;;  %v41_v14 = vld [vmem:[%s4746_s0 + $0x60] sm:$0xff]  ;;  %580 = vst.msk [vmem:[#allocation2] sm:$0x1] %vm571_vm3, %v4754_v15 }
   0x6   :  { %v42_v16 = vld [vmem:[%s4746_s0 + $0x68] sm:$0xff]  ;;  %v2977_v17 = vld [vmem:[%s4748_s3 + $0x18] sm:$0xff]  ;;  %v2976_v18 = vld [vmem:[%s4748_s3 + $0x10] sm:$0xff]  ;;  %572 = vst.msk [vmem:[#allocation2 + $0x8] sm:$0x1] %vm571_vm3, %v4754_v15 }
   0x7   :  { %818 = vmatpush.msra.mxu1 %v2977_v17  ;;  %3246 = vmatpush.msrb.mxu3 %v2977_v17  ;;  %v43_v20 = vld [vmem:[%s4746_s0 + $0x70] sm:$0xff]  ;;  %v44_v21 = vld [vmem:[%s4746_s0 + $0x78] sm:$0xff]  ;;  %v3390_v22 = vld [vmem:[%s4747_s2] ss:$0 sm:$0xff]  ;;  %574 = vst.msk [vmem:[#allocation2 + $0x128] sm:$0x1] %vm571_vm3, %v4754_v15 }
   0x8   :  { %v721_v19 = vld [vmem:[#allocation3] sm:$0xff]  ;;  %v46_v28 = vld [vmem:[%s4746_s0 + $0x88] sm:$0xff]  ;;  %v47_v32 = vld [vmem:[%s4746_s0 + $0x90] sm:$0xff]  ;;  %581 = vst.msk [vmem:[#allocation2 + $0x10] sm:$0x1] %vm571_vm3, %v4754_v15 }
   0x9   :  { %819 = vmatpush.msra.mxu1 %v2976_v18  ;;  %3247 = vmatpush.msrb.mxu3 %v2976_v18  ;;  %v45_v24 = vld [vmem:[%s4746_s0 + $0x80] sm:$0xff]  ;;  %v48_v37 = vld [vmem:[%s4746_s0 + $0x98] sm:$0xff]  ;;  %v50_v46 = vld [vmem:[%s4746_s0 + $0xa8] sm:$0xff]  ;;  %582 = vst.msk [vmem:[#allocation2 + $0x20] sm:$0x1] %vm571_vm3, %v4754_v15 }
   0xa   :  { %2978 = vmatmul.msk.f32.vlgmr.msra.gmra.mxu1 %vm569_vm2, %v721_v19  ;;  %v49_v41 = vld [vmem:[%s4746_s0 + $0xa0] sm:$0xff]  ;;  %v51_v50 = vld [vmem:[%s4746_s0 + $0xb0] sm:$0xff]  ;;  %v52_v55 = vld [vmem:[%s4746_s0 + $0xb8] sm:$0xff]  ;;  %583 = vst.msk [vmem:[#allocation2 + $0x30] sm:$0x1] %vm571_vm3, %v4754_v15 }
   0xb   :  { %v53_v59 = vld [vmem:[%s4746_s0 + $0xc0] sm:$0xff]  ;;  %v54_v0 = vld [vmem:[%s4746_s0 + $0xc8] sm:$0xff]  ;;  %584 = vst.msk [vmem:[#allocation2 + $0x40] sm:$0x1] %vm571_vm3, %v4754_v15 }
   0xc   :  { %v58_v19 = vld [vmem:[%s4746_s0 + $0xe8] sm:$0xff]  ;;  %585 = vst.msk [vmem:[#allocation2 + $0x50] sm:$0x1] %vm571_vm3, %v4754_v15 }
   0xd   :  { %2913 = vmatmul.msk.f32.gmra.mxu0 %vm99_vm1, %v30_v3  ;;  %586 = vst.msk [vmem:[#allocation2 + $0x60] sm:$0x1] %vm571_vm3, %v4754_v15 }
   0xe   :  { %587 = vst.msk [vmem:[#allocation2 + $0x70] sm:$0x1] %vm571_vm3, %v4754_v15 }
   0xf   :  { %588 = vst.msk [vmem:[#allocation2 + $0x80] sm:$0x1] %vm571_vm3, %v4754_v15 }
  0x10   :  { %589 = vst.msk [vmem:[#allocation2 + $0x90] sm:$0x1] %vm571_vm3, %v4754_v15 }
  0x11   :  { %590 = vst.msk [vmem:[#allocation2 + $0xa0] sm:$0x1] %vm571_vm3, %v4754_v15 }
  0x12   :  { %591 = vst.msk [vmem:[#allocation2 + $0xb0] sm:$0x1] %vm571_vm3, %v4754_v15 }
  0x13   :  { %592 = vst.msk [vmem:[#allocation2 + $0xc0] sm:$0x1] %vm571_vm3, %v4754_v15 }
  0x14   :  { %593 = vst.msk [vmem:[#allocation2 + $0xd0] sm:$0x1] %vm571_vm3, %v4754_v15 }
  0x15   :  { %2914 = vmatmul.msk.f32.gmra.mxu0 %vm99_vm1, %v31_v4  ;;  %v55_v4 = vld [vmem:[%s4746_s0 + $0xd0] sm:$0xff]  ;;  %594 = vst.msk [vmem:[#allocation2 + $0xe0] sm:$0x1] %vm571_vm3, %v4754_v15 }
  0x16   :  { %595 = vst.msk [vmem:[#allocation2 + $0xf0] sm:$0x1] %vm571_vm3, %v4754_v15 }
  0x17   :  { %596 = vst.msk [vmem:[#allocation2 + $0x100] sm:$0x1] %vm571_vm3, %v4754_v15 }
  0x18   :  { %598 = vst.msk [vmem:[#allocation2 + $0x120] sm:$0x1] %vm571_vm3, %v4754_v15 }
  0x19   :  { %599 = vst.msk [vmem:[#allocation2 + $0x130] sm:$0x1] %vm571_vm3, %v4754_v15 }
  0x1a   :  { %600 = vst.msk [vmem:[#allocation2 + $0x140] sm:$0x1] %vm571_vm3, %v4754_v15 }
  0x1b   :  { %601 = vst.msk [vmem:[#allocation2 + $0x150] sm:$0x1] %vm571_vm3, %v4754_v15 }
  0x1c   :  { %602 = vst.msk [vmem:[#allocation2 + $0x160] sm:$0x1] %vm571_vm3, %v4754_v15 }
  0x1d   :  { %2915 = vmatmul.msk.f32.gmra.mxu0 %vm99_vm1, %v32_v5  ;;  %603 = vst.msk [vmem:[#allocation2 + $0x170] sm:$0x1] %vm571_vm3, %v4754_v15 }
  0x1e   :  { %604 = vst.msk [vmem:[#allocation2 + $0x180] sm:$0x1] %vm571_vm3, %v4754_v15 }
  0x1f   :  { %605 = vst.msk [vmem:[#allocation2 + $0x190] sm:$0x1] %vm571_vm3, %v4754_v15 }
  0x20   :  { %606 = vst.msk [vmem:[#allocation2 + $0x1a0] sm:$0x1] %vm571_vm3, %v4754_v15 }
  0x21   :  { %607 = vst.msk [vmem:[#allocation2 + $0x1b0] sm:$0x1] %vm571_vm3, %v4754_v15 }
  0x22   :  { %608 = vst.msk [vmem:[#allocation2 + $0x1c0] sm:$0x1] %vm571_vm3, %v4754_v15 }
  0x23   :  { %609 = vst.msk [vmem:[#allocation2 + $0x1d0] sm:$0x1] %vm571_vm3, %v4754_v15 }
  0x24   :  { %610 = vst.msk [vmem:[#allocation2 + $0x1e0] sm:$0x1] %vm571_vm3, %v4754_v15 }
  0x25   :  { %2916 = vmatmul.msk.f32.gmra.mxu0 %vm99_vm1, %v33_v6  ;;  %611 = vst.msk [vmem:[#allocation2 + $0x1f0] sm:$0x1] %vm571_vm3, %v4754_v15 }
  0x26   :  { %612 = vst.msk [vmem:[#allocation2 + $0x200] sm:$0x1] %vm571_vm3, %v4754_v15 }
  0x27   :  { %613 = vst.msk [vmem:[#allocation2 + $0x210] sm:$0x1] %vm571_vm3, %v4754_v15 }
  0x28   :  { %614 = vst.msk [vmem:[#allocation2 + $0x220] sm:$0x1] %vm571_vm3, %v4754_v15 }
  0x2d   :  { %2917 = vmatmul.msk.f32.gmra.mxu0 %vm99_vm1, %v34_v7 }
  0x35   :  { %2918 = vmatmul.msk.f32.gmra.mxu0 %vm99_vm1, %v35_v8 }
  0x3d   :  { %2919 = vmatmul.msk.f32.gmra.mxu0 %vm99_vm1, %v36_v9  ;;  %v56_v9 = vld [vmem:[%s4746_s0 + $0xd8] sm:$0xff] }
  0x45   :  { %2920 = vmatmul.msk.f32.gmra.mxu0 %vm99_vm1, %v37_v10 }
  0x4d   :  { %2921 = vmatmul.msk.f32.gmra.mxu0 %vm99_vm1, %v38_v11 }
  0x55   :  { %2922 = vmatmul.msk.f32.gmra.mxu0 %vm99_vm1, %v39_v12 }
  0x5d   :  { %2923 = vmatmul.msk.f32.gmra.mxu0 %vm99_vm1, %v40_v13  ;;  %v57_v13 = vld [vmem:[%s4746_s0 + $0xe0] sm:$0xff] }
  0x65   :  { %2924 = vmatmul.msk.f32.gmra.mxu0 %vm99_vm1, %v41_v14 }
  0x6d   :  { %2925 = vmatmul.msk.f32.gmra.mxu0 %vm99_vm1, %v42_v16 }
  0x75   :  { %2926 = vmatmul.msk.f32.gmra.mxu0 %vm99_vm1, %v43_v20 }
  0x7d   :  { %2927 = vmatmul.msk.f32.gmra.mxu0 %vm99_vm1, %v44_v21 }
  0x82   :  { %v313_v23 = vpop.f32.mrf.mxu0 }
  0x83   :  { %v314_v25 = vadd.f32 %v3390_v22, %v313_v23 }
  0x85   :  { %v505_v26 = vmax.f32 %v314_v25, 0.0  ;;  %2928 = vmatmul.msk.f32.gmra.mxu0 %vm99_vm1, %v45_v24  ;;  %v59_v24 = vld [vmem:[%s4746_s0 + $0xf0] sm:$0xff] }
  0x87   :  { %655 = vst.msk [vmem:[#allocation3 + $0x8] sm:$0xff] %vm569_vm2, %v505_v26 }
  0x8a   :  { %v316_v27 = vpop.f32.mrf.mxu0 }
  0x8b   :  { %v317_v29 = vadd.f32 %v3390_v22, %v316_v27 }
  0x8d   :  { %v506_v30 = vmax.f32 %v317_v29, 0.0  ;;  %2929 = vmatmul.msk.f32.gmra.mxu0 %vm99_vm1, %v46_v28  ;;  %v60_v29 = vld [vmem:[%s4746_s0 + $0xf8] sm:$0xff] }
  0x8f   :  { %656 = vst.msk [vmem:[#allocation3 + $0x10] sm:$0xff] %vm569_vm2, %v506_v30 }
  0x92   :  { %v319_v31 = vpop.f32.mrf.mxu0 }
  0x93   :  { %v320_v33 = vadd.f32 %v3390_v22, %v319_v31  ;;  %v737_v31 = vld [vmem:[#allocation3 + $0x90] sm:$0xff] }
  0x95   :  { %v507_v34 = vmax.f32 %v320_v33, 0.0  ;;  %2930 = vmatmul.msk.f32.gmra.mxu0 %vm99_vm1, %v47_v32 }
  0x96   :  { %v723_v35 = vld [vmem:[#allocation3 + $0x10] sm:$0xff] }
  0x97   :  { %657 = vst.msk [vmem:[#allocation3 + $0x18] sm:$0xff] %vm569_vm2, %v507_v34  ;;  %2979 = vmatmul.msk.f32.gmra.mxu1 %vm569_vm2, %v723_v35  ;;  %v61_v34 = vld [vmem:[%s4746_s0 + $0x100] sm:$0xff] }
  0x9a   :  { %v322_v36 = vpop.f32.mrf.mxu0 }
  0x9b   :  { %v323_v38 = vadd.f32 %v3390_v22, %v322_v36 }
  0x9d   :  { %v508_v39 = vmax.f32 %v323_v38, 0.0  ;;  %2931 = vmatmul.msk.f32.gmra.mxu0 %vm99_vm1, %v48_v37  ;;  %v62_v38 = vld [vmem:[%s4746_s0 + $0x108] sm:$0xff] }
  0x9f   :  { %658 = vst.msk [vmem:[#allocation3 + $0x20] sm:$0xff] %vm569_vm2, %v508_v39 }
  0xa2   :  { %v325_v40 = vpop.f32.mrf.mxu0 }
  0xa3   :  { %v326_v42 = vadd.f32 %v3390_v22, %v325_v40 }
  0xa5   :  { %v509_v43 = vmax.f32 %v326_v42, 0.0  ;;  %2932 = vmatmul.msk.f32.gmra.mxu0 %vm99_vm1, %v49_v41  ;;  %v63_v42 = vld [vmem:[%s4746_s0 + $0x110] sm:$0xff] }
  0xa6   :  { %v725_v44 = vld [vmem:[#allocation3 + $0x20] sm:$0xff] }
  0xa7   :  { %659 = vst.msk [vmem:[#allocation3 + $0x28] sm:$0xff] %vm569_vm2, %v509_v43  ;;  %2980 = vmatmul.msk.f32.gmra.mxu1 %vm569_vm2, %v725_v44 }
  0xaa   :  { %v328_v45 = vpop.f32.mrf.mxu0 }
  0xab   :  { %v329_v47 = vadd.f32 %v3390_v22, %v328_v45 }
  0xad   :  { %v510_v48 = vmax.f32 %v329_v47, 0.0  ;;  %2933 = vmatmul.msk.f32.gmra.mxu0 %vm99_vm1, %v50_v46  ;;  %v64_v47 = vld [vmem:[%s4746_s0 + $0x118] sm:$0xff] }
  0xaf   :  { %660 = vst.msk [vmem:[#allocation3 + $0x30] sm:$0xff] %vm569_vm2, %v510_v48 }
  0xb2   :  { %v331_v49 = vpop.f32.mrf.mxu0 }
  0xb3   :  { %v332_v51 = vadd.f32 %v3390_v22, %v331_v49 }
  0xb5   :  { %v511_v52 = vmax.f32 %v332_v51, 0.0  ;;  %2934 = vmatmul.msk.f32.gmra.mxu0 %vm99_vm1, %v51_v50  ;;  %v65_v51 = vld [vmem:[%s4746_s0 + $0x120] sm:$0xff] }
  0xb6   :  { %v727_v53 = vld [vmem:[#allocation3 + $0x30] sm:$0xff] }
  0xb7   :  { %661 = vst.msk [vmem:[#allocation3 + $0x38] sm:$0xff] %vm569_vm2, %v511_v52  ;;  %2981 = vmatmul.msk.f32.gmra.mxu1 %vm569_vm2, %v727_v53 }
  0xba   :  { %v334_v54 = vpop.f32.mrf.mxu0 }
  0xbb   :  { %v335_v56 = vadd.f32 %v3390_v22, %v334_v54 }
  0xbd   :  { %v512_v57 = vmax.f32 %v335_v56, 0.0  ;;  %2935 = vmatmul.msk.f32.gmra.mxu0 %vm99_vm1, %v52_v55  ;;  %v66_v56 = vld [vmem:[%s4746_s0 + $0x128] sm:$0xff] }
  0xbf   :  { %662 = vst.msk [vmem:[#allocation3 + $0x40] sm:$0xff] %vm569_vm2, %v512_v57 }
  0xc2   :  { %v337_v58 = vpop.f32.mrf.mxu0 }
  0xc3   :  { %v338_v60 = vadd.f32 %v3390_v22, %v337_v58 }
  0xc5   :  { %v513_v61 = vmax.f32 %v338_v60, 0.0  ;;  %2936 = vmatmul.msk.f32.gmra.mxu0 %vm99_vm1, %v53_v59  ;;  %v67_v60 = vld [vmem:[%s4746_s0 + $0x130] sm:$0xff] }
  0xc6   :  { %v729_v62 = vld [vmem:[#allocation3 + $0x40] sm:$0xff] }
  0xc7   :  { %663 = vst.msk [vmem:[#allocation3 + $0x48] sm:$0xff] %vm569_vm2, %v513_v61  ;;  %2982 = vmatmul.msk.f32.gmra.mxu1 %vm569_vm2, %v729_v62  ;;  %v1695_v15 = vld [vmem:[#allocation3 + $0x40] sm:$0xff] }
  0xca   :  { %v340_v63 = vpop.f32.mrf.mxu0 }
  0xcb   :  { %v341_v1 = vadd.f32 %v3390_v22, %v340_v63 }
  0xcd   :  { %v514_v2 = vmax.f32 %v341_v1, 0.0  ;;  %2937 = vmatmul.msk.f32.gmra.mxu0 %vm99_vm1, %v54_v0  ;;  %v68_v1 = vld [vmem:[%s4746_s0 + $0x138] sm:$0xff] }
  0xcf   :  { %664 = vst.msk [vmem:[#allocation3 + $0x50] sm:$0xff] %vm569_vm2, %v514_v2 }
  0xd2   :  { %v343_v3 = vpop.f32.mrf.mxu0 }
  0xd3   :  { %v344_v5 = vadd.f32 %v3390_v22, %v343_v3 }
  0xd5   :  { %v515_v6 = vmax.f32 %v344_v5, 0.0  ;;  %2938 = vmatmul.msk.f32.gmra.mxu0 %vm99_vm1, %v55_v4  ;;  %v69_v5 = vld [vmem:[%s4746_s0 + $0x140] sm:$0xff] }
  0xd6   :  { %v731_v7 = vld [vmem:[#allocation3 + $0x50] sm:$0xff] }
  0xd7   :  { %665 = vst.msk [vmem:[#allocation3 + $0x58] sm:$0xff] %vm569_vm2, %v515_v6  ;;  %2983 = vmatmul.msk.f32.gmra.mxu1 %vm569_vm2, %v731_v7 }
  0xda   :  { %v346_v8 = vpop.f32.mrf.mxu0 }
  0xdb   :  { %v347_v10 = vadd.f32 %v3390_v22, %v346_v8 }
  0xdd   :  { %v516_v11 = vmax.f32 %v347_v10, 0.0  ;;  %2939 = vmatmul.msk.f32.gmra.mxu0 %vm99_vm1, %v56_v9  ;;  %v70_v10 = vld [vmem:[%s4746_s0 + $0x148] sm:$0xff] }
  0xdf   :  { %666 = vst.msk [vmem:[#allocation3 + $0x60] sm:$0xff] %vm569_vm2, %v516_v11 }
  0xe2   :  { %v349_v12 = vpop.f32.mrf.mxu0 }
  0xe3   :  { %v350_v14 = vadd.f32 %v3390_v22, %v349_v12 }
  0xe5   :  { %v517_v16 = vmax.f32 %v350_v14, 0.0  ;;  %2940 = vmatmul.msk.f32.gmra.mxu0 %vm99_vm1, %v57_v13  ;;  %v92_v13 = vld [vmem:[%s4746_s0 + $0x1f8] sm:$0xff] }
  0xe6   :  { %v733_v17 = vld [vmem:[#allocation3 + $0x60] sm:$0xff]  ;;  %2975 = vmatmul.msk.f32.vlgmr.msra.gmra.mxu3 %vm99_vm1, %v92_v13 }
  0xe7   :  { %667 = vst.msk [vmem:[#allocation3 + $0x68] sm:$0xff] %vm569_vm2, %v517_v16  ;;  %2984 = vmatmul.msk.f32.gmra.mxu1 %vm569_vm2, %v733_v17  ;;  %v71_v16 = vld [vmem:[%s4746_s0 + $0x150] sm:$0xff] }
  0xea   :  { %v352_v18 = vpop.f32.mrf.mxu0 }
  0xeb   :  { %v353_v20 = vadd.f32 %v3390_v22, %v352_v18 }
  0xed   :  { %v518_v21 = vmax.f32 %v353_v20, 0.0  ;;  %2941 = vmatmul.msk.f32.gmra.mxu0 %vm99_vm1, %v58_v19 }
  0xef   :  { %668 = vst.msk [vmem:[#allocation3 + $0x70] sm:$0xff] %vm569_vm2, %v518_v21  ;;  %v72_v21 = vld [vmem:[%s4746_s0 + $0x158] sm:$0xff] }
  0xf2   :  { %v355_v23 = vpop.f32.mrf.mxu0 }
  0xf3   :  { %v356_v25 = vadd.f32 %v3390_v22, %v355_v23 }
  0xf5   :  { %v519_v26 = vmax.f32 %v356_v25, 0.0  ;;  %2942 = vmatmul.msk.f32.gmra.mxu0 %vm99_vm1, %v59_v24 }
  0xf6   :  { %v735_v27 = vld [vmem:[#allocation3 + $0x70] sm:$0xff] }
  0xf7   :  { %669 = vst.msk [vmem:[#allocation3 + $0x78] sm:$0xff] %vm569_vm2, %v519_v26  ;;  %2985 = vmatmul.msk.f32.gmra.mxu1 %vm569_vm2, %v735_v27  ;;  %v73_v26 = vld [vmem:[%s4746_s0 + $0x160] sm:$0xff] }
  0xfa   :  { %v358_v28 = vpop.f32.mrf.mxu0 }
  0xfb   :  { %v359_v30 = vadd.f32 %v3390_v22, %v358_v28 }
  0xfd   :  { %v520_v32 = vmax.f32 %v359_v30, 0.0  ;;  %2943 = vmatmul.msk.f32.gmra.mxu0 %vm99_vm1, %v60_v29 }
  0xff   :  { %670 = vst.msk [vmem:[#allocation3 + $0x80] sm:$0xff] %vm569_vm2, %v520_v32  ;;  %2986 = vmatmul.msk.f32.gmra.mxu1 %vm569_vm2, %v737_v31  ;;  %v74_v31 = vld [vmem:[%s4746_s0 + $0x168] sm:$0xff] }
 0x102   :  { %v361_v33 = vpop.f32.mrf.mxu0 }
 0x103   :  { %v362_v35 = vadd.f32 %v3390_v22, %v361_v33  ;;  %v720_v33 = vld [vmem:[%s4748_s3 + $0x8] sm:$0xff] }
 0x104   :  { %931 = vmatpush.msra.mxu2 %v720_v33  ;;  %3248 = vmatpush.msra.mxu3 %v720_v33 }
 0x105   :  { %v521_v36 = vmax.f32 %v362_v35, 0.0  ;;  %2944 = vmatmul.msk.f32.gmra.mxu0 %vm99_vm1, %v61_v34  ;;  %v3029_v34 = vld [vmem:[%s4748_s3 + $0x38] sm:$0xff] }
 0x106   :  { %1211 = vmatpush.msrb.mxu1 %v3029_v34 }
 0x107   :  { %671 = vst.msk [vmem:[#allocation3 + $0x98] sm:$0xff] %vm569_vm2, %v521_v36  ;;  %v719_v36 = vld [vmem:[%s4748_s3] sm:$0xff] }
 0x108   :  { %932 = vmatpush.msra.mxu2 %v719_v36  ;;  %3249 = vmatpush.msra.mxu3 %v719_v36  ;;  %v87_v36 = vld [vmem:[%s4746_s0 + $0x1d0] sm:$0xff] }
 0x10a   :  { %v364_v37 = vpop.f32.mrf.mxu0 }
 0x10b   :  { %v365_v39 = vadd.f32 %v3390_v22, %v364_v37  ;;  %v3028_v37 = vld [vmem:[%s4748_s3 + $0x30] sm:$0xff] }
 0x10c   :  { %1212 = vmatpush.msrb.mxu1 %v3028_v37 }
 0x10d   :  { %v522_v40 = vmax.f32 %v365_v39, 0.0  ;;  %2945 = vmatmul.msk.f32.gmra.mxu0 %vm99_vm1, %v62_v38  ;;  %v687_v38 = vld [vmem:[#allocation2] sm:$0xff] }
 0x10e   :  { %2994 = vmatmul.msk.f32.vlgmr.msra.gmra.mxu2 %vm569_vm2, %v687_v38 }
 0x10f   :  { %672 = vst.msk [vmem:[#allocation3 + $0xa0] sm:$0xff] %vm569_vm2, %v522_v40  ;;  %v75_v40 = vld [vmem:[%s4746_s0 + $0x170] sm:$0xff] }
 0x112   :  { %v367_v41 = vpop.f32.mrf.mxu0 }
 0x113   :  { %v368_v43 = vadd.f32 %v3390_v22, %v367_v41 }
 0x115   :  { %v523_v44 = vmax.f32 %v368_v43, 0.0  ;;  %2946 = vmatmul.msk.f32.gmra.mxu0 %vm99_vm1, %v63_v42 }
 0x116   :  { %v739_v45 = vld [vmem:[#allocation3 + $0xa0] sm:$0xff] }
 0x117   :  { %673 = vst.msk [vmem:[#allocation3 + $0xa8] sm:$0xff] %vm569_vm2, %v523_v44  ;;  %2987 = vmatmul.msk.f32.gmra.mxu1 %vm569_vm2, %v739_v45  ;;  %v76_v45 = vld [vmem:[%s4746_s0 + $0x178] sm:$0xff] }
 0x11a   :  { %v370_v46 = vpop.f32.mrf.mxu0 }
 0x11b   :  { %v371_v48 = vadd.f32 %v3390_v22, %v370_v46 }
 0x11d   :  { %v524_v49 = vmax.f32 %v371_v48, 0.0  ;;  %2947 = vmatmul.msk.f32.gmra.mxu0 %vm99_vm1, %v64_v47 }
 0x11f   :  { %674 = vst.msk [vmem:[#allocation3 + $0xb0] sm:$0xff] %vm569_vm2, %v524_v49  ;;  %v77_v49 = vld [vmem:[%s4746_s0 + $0x180] sm:$0xff] }
 0x122   :  { %v373_v50 = vpop.f32.mrf.mxu0 }
 0x123   :  { %v374_v52 = vadd.f32 %v3390_v22, %v373_v50 }
 0x125   :  { %v525_v53 = vmax.f32 %v374_v52, 0.0  ;;  %2948 = vmatmul.msk.f32.gmra.mxu0 %vm99_vm1, %v65_v51 }
 0x126   :  { %v741_v54 = vld [vmem:[#allocation3 + $0xb0] sm:$0xff] }
 0x127   :  { %675 = vst.msk [vmem:[#allocation3 + $0xb8] sm:$0xff] %vm569_vm2, %v525_v53  ;;  %2988 = vmatmul.msk.f32.gmra.mxu1 %vm569_vm2, %v741_v54  ;;  %v78_v53 = vld [vmem:[%s4746_s0 + $0x188] sm:$0xff] }
 0x12a   :  { %v376_v55 = vpop.f32.mrf.mxu0 }
 0x12b   :  { %v377_v57 = vadd.f32 %v3390_v22, %v376_v55 }
 0x12d   :  { %v526_v58 = vmax.f32 %v377_v57, 0.0  ;;  %2949 = vmatmul.msk.f32.gmra.mxu0 %vm99_vm1, %v66_v56 }
 0x12f   :  { %676 = vst.msk [vmem:[#allocation3 + $0xc0] sm:$0xff] %vm569_vm2, %v526_v58  ;;  %v79_v58 = vld [vmem:[%s4746_s0 + $0x190] sm:$0xff] }
 0x132   :  { %v379_v59 = vpop.f32.mrf.mxu0 }
 0x133   :  { %v380_v61 = vadd.f32 %v3390_v22, %v379_v59 }
 0x135   :  { %v527_v62 = vmax.f32 %v380_v61, 0.0  ;;  %2950 = vmatmul.msk.f32.gmra.mxu0 %vm99_vm1, %v67_v60 }
 0x136   :  { %v743_v63 = vld [vmem:[#allocation3 + $0xc0] sm:$0xff] }
 0x137   :  { %677 = vst.msk [vmem:[#allocation3 + $0xc8] sm:$0xff] %vm569_vm2, %v527_v62  ;;  %2989 = vmatmul.msk.f32.gmra.mxu1 %vm569_vm2, %v743_v63  ;;  %v80_v63 = vld [vmem:[%s4746_s0 + $0x198] sm:$0xff] }
 0x13a   :  { %v382_v0 = vpop.f32.mrf.mxu0 }
 0x13b   :  { %v383_v2 = vadd.f32 %v3390_v22, %v382_v0 }
 0x13d   :  { %v528_v3 = vmax.f32 %v383_v2, 0.0  ;;  %2951 = vmatmul.msk.f32.gmra.mxu0 %vm99_vm1, %v68_v1 }
 0x13f   :  { %678 = vst.msk [vmem:[#allocation3 + $0xd0] sm:$0xff] %vm569_vm2, %v528_v3 }
 0x142   :  { %v385_v4 = vpop.f32.mrf.mxu0 }
 0x143   :  { %v386_v6 = vadd.f32 %v3390_v22, %v385_v4  ;;  %v81_v4 = vld [vmem:[%s4746_s0 + $0x1a0] sm:$0xff] }
 0x145   :  { %v529_v7 = vmax.f32 %v386_v6, 0.0  ;;  %2952 = vmatmul.msk.f32.gmra.mxu0 %vm99_vm1, %v69_v5 }
 0x146   :  { %v745_v8 = vld [vmem:[#allocation3 + $0xd0] sm:$0xff] }
 0x147   :  { %679 = vst.msk [vmem:[#allocation3 + $0xd8] sm:$0xff] %vm569_vm2, %v529_v7  ;;  %2990 = vmatmul.msk.f32.gmra.mxu1 %vm569_vm2, %v745_v8 }
 0x14a   :  { %v388_v9 = vpop.f32.mrf.mxu0 }
 0x14b   :  { %v389_v11 = vadd.f32 %v3390_v22, %v388_v9  ;;  %v82_v9 = vld [vmem:[%s4746_s0 + $0x1a8] sm:$0xff] }
 0x14d   :  { %v530_v12 = vmax.f32 %v389_v11, 0.0  ;;  %2953 = vmatmul.msk.f32.gmra.mxu0 %vm99_vm1, %v70_v10 }
 0x14f   :  { %680 = vst.msk [vmem:[#allocation3 + $0xe0] sm:$0xff] %vm569_vm2, %v530_v12 }
 0x152   :  { %v391_v14 = vpop.f32.mrf.mxu0 }
 0x153   :  { %v392_v17 = vadd.f32 %v3390_v22, %v391_v14  ;;  %v83_v14 = vld [vmem:[%s4746_s0 + $0x1b0] sm:$0xff] }
 0x155   :  { %v531_v18 = vmax.f32 %v392_v17, 0.0  ;;  %2954 = vmatmul.msk.f32.gmra.mxu0 %vm99_vm1, %v71_v16 }
 0x156   :  { %v747_v19 = vld [vmem:[#allocation3 + $0xe0] sm:$0xff] }
 0x157   :  { %681 = vst.msk [vmem:[#allocation3 + $0xe8] sm:$0xff] %vm569_vm2, %v531_v18  ;;  %2991 = vmatmul.msk.f32.gmra.mxu1 %vm569_vm2, %v747_v19 }
 0x15a   :  { %v394_v20 = vpop.f32.mrf.mxu0 }
 0x15b   :  { %v395_v23 = vadd.f32 %v3390_v22, %v394_v20  ;;  %v84_v20 = vld [vmem:[%s4746_s0 + $0x1b8] sm:$0xff] }
 0x15d   :  { %v532_v24 = vmax.f32 %v395_v23, 0.0  ;;  %2955 = vmatmul.msk.f32.gmra.mxu0 %vm99_vm1, %v72_v21 }
 0x15f   :  { %682 = vst.msk [vmem:[#allocation3 + $0xf0] sm:$0xff] %vm569_vm2, %v532_v24 }
 0x162   :  { %v397_v25 = vpop.f32.mrf.mxu0 }
 0x163   :  { %v398_v27 = vadd.f32 %v3390_v22, %v397_v25 }
 0x165   :  { %v533_v28 = vmax.f32 %v398_v27, 0.0  ;;  %2956 = vmatmul.msk.f32.gmra.mxu0 %vm99_vm1, %v73_v26  ;;  %v85_v26 = vld [vmem:[%s4746_s0 + $0x1c0] sm:$0xff] }
 0x166   :  { %v749_v29 = vld [vmem:[#allocation3 + $0xf0] sm:$0xff] }
 0x167   :  { %683 = vst.msk [vmem:[#allocation3 + $0xf8] sm:$0xff] %vm569_vm2, %v533_v28  ;;  %2992 = vmatmul.msk.f32.gmra.mxu1 %vm569_vm2, %v749_v29 }
 0x16a   :  { %v400_v30 = vpop.f32.mrf.mxu0 }
 0x16b   :  { %v401_v32 = vadd.f32 %v3390_v22, %v400_v30 }
 0x16d   :  { %v534_v35 = vmax.f32 %v401_v32, 0.0  ;;  %2957 = vmatmul.msk.f32.gmra.mxu0 %vm99_vm1, %v74_v31  ;;  %v86_v31 = vld [vmem:[%s4746_s0 + $0x1c8] sm:$0xff] }
 0x16f   :  { %684 = vst.msk [vmem:[#allocation3 + $0x100] sm:$0xff] %vm569_vm2, %v534_v35 }
 0x172   :  { %v403_v39 = vpop.f32.mrf.mxu0 }
 0x173   :  { %v404_v41 = vadd.f32 %v3390_v22, %v403_v39 }
 0x175   :  { %v535_v42 = vmax.f32 %v404_v41, 0.0  ;;  %2958 = vmatmul.msk.f32.gmra.mxu0 %vm99_vm1, %v75_v40  ;;  %v502_v40 = vpop.f32.mrf.mxu3 }
 0x176   :  { %v751_v43 = vld [vmem:[#allocation3 + $0x100] sm:$0xff]  ;;  %v503_v41 = vadd.f32 %v3390_v22, %v502_v40 }
 0x177   :  { %685 = vst.msk [vmem:[#allocation3 + $0x108] sm:$0xff] %vm569_vm2, %v535_v42  ;;  %2993 = vmatmul.msk.f32.vlgmr.msrb.gmra.mxu3 %vm569_vm2, %v751_v43 }
 0x178   :  { %v568_v42 = vmax.f32 %v503_v41, 0.0 }
 0x17a   :  { %v406_v44 = vpop.f32.mrf.mxu0  ;;  %653 = vst.msk [vmem:[#allocation2 + $0x221] sm:$0xff] %vm569_vm2, %v568_v42 }
 0x17b   :  { %v407_v46 = vadd.f32 %v3390_v22, %v406_v44  ;;  %v88_v44 = vld [vmem:[%s4746_s0 + $0x1d8] sm:$0xff] }
 0x17d   :  { %v536_v47 = vmax.f32 %v407_v46, 0.0  ;;  %2959 = vmatmul.msk.f32.gmra.mxu0 %vm99_vm1, %v76_v45 }
 0x17f   :  { %686 = vst.msk [vmem:[#allocation3 + $0x110] sm:$0xff] %vm569_vm2, %v536_v47 }
 0x182   :  { %v409_v48 = vpop.f32.mrf.mxu0 }
 0x183   :  { %v410_v50 = vadd.f32 %v3390_v22, %v409_v48 }
 0x185   :  { %v537_v51 = vmax.f32 %v410_v50, 0.0  ;;  %2960 = vmatmul.msk.f32.gmra.mxu0 %vm99_vm1, %v77_v49  ;;  %v89_v49 = vld [vmem:[%s4746_s0 + $0x1e0] sm:$0xff] }
 0x187   :  { %622 = vst.msk [vmem:[#allocation2 + $0x11] sm:$0xff] %vm569_vm2, %v537_v51 }
 0x18a   :  { %v412_v52 = vpop.f32.mrf.mxu0 }
 0x18b   :  { %v413_v54 = vadd.f32 %v3390_v22, %v412_v52 }
 0x18d   :  { %v538_v55 = vmax.f32 %v413_v54, 0.0  ;;  %2961 = vmatmul.msk.f32.gmra.mxu0 %vm99_vm1, %v78_v53  ;;  %v90_v54 = vld [vmem:[%s4746_s0 + $0x1e8] sm:$0xff] }
 0x18e   :  { %v688_v56 = vld [vmem:[#allocation2 + $0x10] sm:$0xff] }
 0x18f   :  { %623 = vst.msk [vmem:[#allocation2 + $0x21] sm:$0xff] %vm569_vm2, %v538_v55  ;;  %3030 = vmatmul.msk.f32.vlgmr.msrb.gmra.mxu1 %vm569_vm2, %v688_v56 }
 0x192   :  { %v415_v57 = vpop.f32.mrf.mxu0 }
 0x193   :  { %v416_v59 = vadd.f32 %v3390_v22, %v415_v57 }
 0x195   :  { %v539_v60 = vmax.f32 %v416_v59, 0.0  ;;  %2962 = vmatmul.msk.f32.gmra.mxu0 %vm99_vm1, %v79_v58  ;;  %v91_v59 = vld [vmem:[%s4746_s0 + $0x1f0] sm:$0xff] }
 0x196   :  { %v3706_v61 = vld [vmem:[#allocation2 + $0x20] sm:$0xff] }
 0x197   :  { %624 = vst.msk [vmem:[#allocation2 + $0x31] sm:$0xff] %vm569_vm2, %v539_v60  ;;  %2995 = vmatmul.msk.f32.gmra.mxu2 %vm569_vm2, %v3706_v61 }
 0x19a   :  { %v418_v62 = vpop.f32.mrf.mxu0 }
 0x19b   :  { %v419_v0 = vadd.f32 %v3390_v22, %v418_v62 }
 0x19d   :  { %v540_v1 = vmax.f32 %v419_v0, 0.0  ;;  %2963 = vmatmul.msk.f32.gmra.mxu0 %vm99_vm1, %v80_v63 }
 0x19e   :  { %v690_v2 = vld [vmem:[#allocation2 + $0x30] sm:$0xff] }
 0x19f   :  { %625 = vst.msk [vmem:[#allocation2 + $0x41] sm:$0xff] %vm569_vm2, %v540_v1  ;;  %3031 = vmatmul.msk.f32.gmra.mxu1 %vm569_vm2, %v690_v2  ;;  %v703_v2 = vld [vmem:[#allocation2 + $0x120] sm:$0xff] }
 0x1a2   :  { %v421_v3 = vpop.f32.mrf.mxu0 }
 0x1a3   :  { %v422_v5 = vadd.f32 %v3390_v22, %v421_v3 }
 0x1a5   :  { %v541_v6 = vmax.f32 %v422_v5, 0.0  ;;  %2964 = vmatmul.msk.f32.gmra.mxu0 %vm99_vm1, %v81_v4 }
 0x1a6   :  { %v3723_v7 = vld [vmem:[#allocation2 + $0x40] sm:$0xff] }
 0x1a7   :  { %626 = vst.msk [vmem:[#allocation2 + $0x51] sm:$0xff] %vm569_vm2, %v541_v6  ;;  %2996 = vmatmul.msk.f32.gmra.mxu2 %vm569_vm2, %v3723_v7 }
 0x1aa   :  { %v424_v8 = vpop.f32.mrf.mxu0 }
 0x1ab   :  { %v425_v10 = vadd.f32 %v3390_v22, %v424_v8 }
 0x1ad   :  { %v542_v11 = vmax.f32 %v425_v10, 0.0  ;;  %2965 = vmatmul.msk.f32.gmra.mxu0 %vm99_vm1, %v82_v9 }
 0x1ae   :  { %v692_v12 = vld [vmem:[#allocation2 + $0x50] sm:$0xff] }
 0x1af   :  { %627 = vst.msk [vmem:[#allocation2 + $0x61] sm:$0xff] %vm569_vm2, %v542_v11  ;;  %3032 = vmatmul.msk.f32.gmra.mxu1 %vm569_vm2, %v692_v12 }
 0x1b2   :  { %v427_v13 = vpop.f32.mrf.mxu0 }
 0x1b3   :  { %v428_v16 = vadd.f32 %v3390_v22, %v427_v13 }
 0x1b5   :  { %v543_v17 = vmax.f32 %v428_v16, 0.0  ;;  %2966 = vmatmul.msk.f32.gmra.mxu0 %vm99_vm1, %v83_v14 }
 0x1b6   :  { %v3740_v18 = vld [vmem:[#allocation2 + $0x60] sm:$0xff] }
 0x1b7   :  { %628 = vst.msk [vmem:[#allocation2 + $0x71] sm:$0xff] %vm569_vm2, %v543_v17  ;;  %2997 = vmatmul.msk.f32.gmra.mxu2 %vm569_vm2, %v3740_v18 }
 0x1ba   :  { %v430_v19 = vpop.f32.mrf.mxu0 }
 0x1bb   :  { %v431_v21 = vadd.f32 %v3390_v22, %v430_v19 }
 0x1bd   :  { %v544_v23 = vmax.f32 %v431_v21, 0.0  ;;  %2967 = vmatmul.msk.f32.gmra.mxu0 %vm99_vm1, %v84_v20 }
 0x1be   :  { %v694_v24 = vld [vmem:[#allocation2 + $0x70] sm:$0xff] }
 0x1bf   :  { %629 = vst.msk [vmem:[#allocation2 + $0x81] sm:$0xff] %vm569_vm2, %v544_v23  ;;  %3033 = vmatmul.msk.f32.gmra.mxu1 %vm569_vm2, %v694_v24  ;;  %v3831_v24 = vpop.f32.mrf.mxu1 }
 0x1c2   :  { %v433_v25 = vpop.f32.mrf.mxu0 }
 0x1c3   :  { %v434_v27 = vadd.f32 %v3390_v22, %v433_v25 }
 0x1c5   :  { %v545_v28 = vmax.f32 %v434_v27, 0.0  ;;  %2968 = vmatmul.msk.f32.gmra.mxu0 %vm99_vm1, %v85_v26 }
 0x1c6   :  { %v3757_v29 = vld [vmem:[#allocation2 + $0x80] sm:$0xff] }
 0x1c7   :  { %630 = vst.msk [vmem:[#allocation2 + $0x91] sm:$0xff] %vm569_vm2, %v545_v28  ;;  %2998 = vmatmul.msk.f32.gmra.mxu2 %vm569_vm2, %v3757_v29 }
 0x1ca   :  { %v436_v30 = vpop.f32.mrf.mxu0 }
 0x1cb   :  { %v437_v32 = vadd.f32 %v3390_v22, %v436_v30 }
 0x1cd   :  { %v546_v33 = vmax.f32 %v437_v32, 0.0  ;;  %2969 = vmatmul.msk.f32.gmra.mxu0 %vm99_vm1, %v86_v31 }
 0x1ce   :  { %v696_v34 = vld [vmem:[#allocation2 + $0x90] sm:$0xff] }
 0x1cf   :  { %631 = vst.msk [vmem:[#allocation2 + $0xa1] sm:$0xff] %vm569_vm2, %v546_v33  ;;  %3034 = vmatmul.msk.f32.gmra.mxu1 %vm569_vm2, %v696_v34  ;;  %v3842_v34 = vpop.f32.mrf.mxu1 }
 0x1d2   :  { %v439_v35 = vpop.f32.mrf.mxu0 }
 0x1d3   :  { %v440_v37 = vadd.f32 %v3390_v22, %v439_v35 }
 0x1d5   :  { %v547_v38 = vmax.f32 %v440_v37, 0.0  ;;  %2970 = vmatmul.msk.f32.gmra.mxu0 %vm99_vm1, %v87_v36 }
 0x1d6   :  { %v3774_v39 = vld [vmem:[#allocation2 + $0xa0] sm:$0xff] }
 0x1d7   :  { %632 = vst.msk [vmem:[#allocation2 + $0xb1] sm:$0xff] %vm569_vm2, %v547_v38  ;;  %2999 = vmatmul.msk.f32.gmra.mxu2 %vm569_vm2, %v3774_v39 }
 0x1da   :  { %v442_v43 = vpop.f32.mrf.mxu0 }
 0x1db   :  { %v443_v45 = vadd.f32 %v3390_v22, %v442_v43 }
 0x1dd   :  { %v548_v46 = vmax.f32 %v443_v45, 0.0  ;;  %2971 = vmatmul.msk.f32.gmra.mxu0 %vm99_vm1, %v88_v44  ;;  %v3853_v44 = vpop.f32.mrf.mxu1 }
 0x1de   :  { %v698_v47 = vld [vmem:[#allocation2 + $0xb0] sm:$0xff] }
 0x1df   :  { %633 = vst.msk [vmem:[#allocation2 + $0xc1] sm:$0xff] %vm569_vm2, %v548_v46  ;;  %3035 = vmatmul.msk.f32.gmra.mxu1 %vm569_vm2, %v698_v47 }
 0x1e2   :  { %v445_v48 = vpop.f32.mrf.mxu0 }
 0x1e3   :  { %v446_v50 = vadd.f32 %v3390_v22, %v445_v48 }
 0x1e5   :  { %v549_v51 = vmax.f32 %v446_v50, 0.0  ;;  %2972 = vmatmul.msk.f32.gmra.mxu0 %vm99_vm1, %v89_v49 }
 0x1e6   :  { %v3793_v52 = vld [vmem:[#allocation2 + $0xc0] sm:$0xff] }
 0x1e7   :  { %634 = vst.msk [vmem:[#allocation2 + $0xd1] sm:$0xff] %vm569_vm2, %v549_v51  ;;  %3000 = vmatmul.msk.f32.gmra.mxu2 %vm569_vm2, %v3793_v52  ;;  %v3047_v51 = vld [vmem:[%s4748_s3 + $0x48] sm:$0xff] }
 0x1e8   :  { %1343 = vmatpush.msrb.mxu2 %v3047_v51  ;;  %v732_v51 = vld [vmem:[#allocation3 + $0x58] sm:$0xff] }
 0x1ea   :  { %v448_v53 = vpop.f32.mrf.mxu0 }
 0x1eb   :  { %v449_v55 = vadd.f32 %v3390_v22, %v448_v53 }
 0x1ed   :  { %v550_v56 = vmax.f32 %v449_v55, 0.0  ;;  %2973 = vmatmul.msk.f32.gmra.mxu0 %vm99_vm1, %v90_v54  ;;  %v3046_v54 = vld [vmem:[%s4748_s3 + $0x40] sm:$0xff] }
 0x1ee   :  { %v700_v57 = vld [vmem:[#allocation2 + $0xd0] sm:$0xff]  ;;  %1344 = vmatpush.msrb.mxu2 %v3046_v54 }
 0x1ef   :  { %635 = vst.msk [vmem:[#allocation2 + $0xe1] sm:$0xff] %vm569_vm2, %v550_v56  ;;  %3036 = vmatmul.msk.f32.gmra.mxu1 %vm569_vm2, %v700_v57  ;;  %v3870_v56 = vpop.f32.mrf.mxu1 }
 0x1f2   :  { %v451_v58 = vpop.f32.mrf.mxu0 }
 0x1f3   :  { %v452_v60 = vadd.f32 %v3390_v22, %v451_v58 }
 0x1f5   :  { %v551_v62 = vmax.f32 %v452_v60, 0.0  ;;  %2974 = vmatmul.msk.f32.gmra.mxu0 %vm99_vm1, %v91_v59 }
 0x1f6   :  { %v3810_v63 = vld [vmem:[#allocation2 + $0xe0] sm:$0xff] }
 0x1f7   :  { %636 = vst.msk [vmem:[#allocation2 + $0xf1] sm:$0xff] %vm569_vm2, %v551_v62  ;;  %3001 = vmatmul.msk.f32.gmra.mxu2 %vm569_vm2, %v3810_v63 }
 0x1fa   :  { %v454_v0 = vpop.f32.mrf.mxu0 }
 0x1fb   :  { %v455_v1 = vadd.f32 %v3390_v22, %v454_v0 }
 0x1fd   :  { %v552_v3 = vmax.f32 %v455_v1, 0.0  ;;  %v3011_v1 = vld [vmem:[%s4748_s3 + $0x28] sm:$0xff] }
 0x1fe   :  { %v702_v4 = vld [vmem:[#allocation2 + $0xf0] sm:$0xff]  ;;  %1079 = vmatpush.msrb.mxu3 %v3011_v1  ;;  %v738_v1 = vld [vmem:[#allocation3 + $0x98] sm:$0xff] }
 0x1ff   :  { %637 = vst.msk [vmem:[#allocation2 + $0x101] sm:$0xff] %vm569_vm2, %v552_v3  ;;  %3037 = vmatmul.msk.f32.gmra.mxu1 %vm569_vm2, %v702_v4  ;;  %3002 = vmatmul.msk.f32.gmra.mxu2 %vm569_vm2, %v703_v2  ;;  %v3010_v2 = vld [vmem:[%s4748_s3 + $0x20] sm:$0xff] }
 0x200   :  { %1080 = vmatpush.msrb.mxu3 %v3010_v2 }
 0x202   :  { %v457_v5 = vpop.f32.mrf.mxu0 }
 0x203   :  { %v458_v6 = vadd.f32 %v3390_v22, %v457_v5  ;;  %v3887_v5 = vpop.f32.mrf.mxu1 }
 0x205   :  { %v553_v8 = vmax.f32 %v458_v6, 0.0  ;;  %v3083_v6 = vld [vmem:[%s4748_s3 + $0x68] sm:$0xff] }
 0x206   :  { %1624 = vmatpush.msra.mxu1 %v3083_v6 }
 0x207   :  { %638 = vst.msk [vmem:[#allocation2 + $0x131] sm:$0xff] %vm569_vm2, %v553_v8  ;;  %v3082_v8 = vld [vmem:[%s4748_s3 + $0x60] sm:$0xff] }
 0x208   :  { %1625 = vmatpush.msra.mxu1 %v3082_v8  ;;  %v1550_v8 = vld [vmem:[#allocation2 + $0x100] sm:$0xff] }
 0x20a   :  { %v460_v9 = vpop.f32.mrf.mxu0 }
 0x20b   :  { %v461_v10 = vadd.f32 %v3390_v22, %v460_v9 }
 0x20d   :  { %v554_v11 = vmax.f32 %v461_v10, 0.0 }
 0x20e   :  { %v704_v12 = vld [vmem:[#allocation2 + $0x130] sm:$0xff] }
 0x20f   :  { %639 = vst.msk [vmem:[#allocation2 + $0x141] sm:$0xff] %vm569_vm2, %v554_v11  ;;  %3038 = vmatmul.msk.f32.gmra.mxu1 %vm569_vm2, %v704_v12 }
 0x212   :  { %v463_v13 = vpop.f32.mrf.mxu0 }
 0x213   :  { %v464_v14 = vadd.f32 %v3390_v22, %v463_v13 }
 0x215   :  { %v555_v16 = vmax.f32 %v464_v14, 0.0 }
 0x216   :  { %v3825_v17 = vld [vmem:[#allocation2 + $0x140] sm:$0xff] }
 0x217   :  { %640 = vst.msk [vmem:[#allocation2 + $0x151] sm:$0xff] %vm569_vm2, %v555_v16  ;;  %3003 = vmatmul.msk.f32.gmra.mxu2 %vm569_vm2, %v3825_v17 }
 0x21a   :  { %v466_v19 = vpop.f32.mrf.mxu0 }
 0x21b   :  { %v467_v20 = vadd.f32 %v3390_v22, %v466_v19 }
 0x21d   :  { %v556_v21 = vmax.f32 %v467_v20, 0.0  ;;  %v722_v20 = vld [vmem:[#allocation3 + $0x8] sm:$0xff] }
 0x21e   :  { %v706_v23 = vld [vmem:[#allocation2 + $0x150] sm:$0xff] }
 0x21f   :  { %641 = vst.msk [vmem:[#allocation2 + $0x161] sm:$0xff] %vm569_vm2, %v556_v21  ;;  %3039 = vmatmul.msk.f32.gmra.mxu1 %vm569_vm2, %v706_v23  ;;  %v3904_v21 = vpop.f32.mrf.mxu1 }
 0x222   :  { %v469_v25 = vpop.f32.mrf.mxu0 }
 0x223   :  { %v470_v26 = vadd.f32 %v3390_v22, %v469_v25 }
 0x225   :  { %v557_v27 = vmax.f32 %v470_v26, 0.0 }
 0x226   :  { %v3836_v28 = vld [vmem:[#allocation2 + $0x160] sm:$0xff] }
 0x227   :  { %642 = vst.msk [vmem:[#allocation2 + $0x171] sm:$0xff] %vm569_vm2, %v557_v27  ;;  %3004 = vmatmul.msk.f32.gmra.mxu2 %vm569_vm2, %v3836_v28 }
 0x22a   :  { %v472_v30 = vpop.f32.mrf.mxu0 }
 0x22b   :  { %v473_v31 = vadd.f32 %v3390_v22, %v472_v30  ;;  %v724_v30 = vld [vmem:[#allocation3 + $0x18] sm:$0xff] }
 0x22d   :  { %v558_v32 = vmax.f32 %v473_v31, 0.0  ;;  %v3916_v31 = vpop.f32.mrf.mxu2 }
 0x22e   :  { %v708_v33 = vld [vmem:[#allocation2 + $0x170] sm:$0xff] }
 0x22f   :  { %643 = vst.msk [vmem:[#allocation2 + $0x181] sm:$0xff] %vm569_vm2, %v558_v32  ;;  %3040 = vmatmul.msk.f32.gmra.mxu1 %vm569_vm2, %v708_v33  ;;  %v982_v32 = vld [vmem:[#allocation2 + $0x1] sm:$0xff]  ;;  %v3918_v33 = vpop.f32.mrf.mxu1 }
 0x232   :  { %v475_v35 = vpop.f32.mrf.mxu0 }
 0x233   :  { %v476_v36 = vadd.f32 %v3390_v22, %v475_v35 }
 0x235   :  { %v559_v37 = vmax.f32 %v476_v36, 0.0  ;;  %v3923_v36 = vpop.f32.mrf.mxu2 }
 0x236   :  { %v3847_v38 = vld [vmem:[#allocation2 + $0x180] sm:$0xff] }
 0x237   :  { %644 = vst.msk [vmem:[#allocation2 + $0x191] sm:$0xff] %vm569_vm2, %v559_v37  ;;  %3005 = vmatmul.msk.f32.gmra.mxu2 %vm569_vm2, %v3847_v38  ;;  %v3925_v37 = vpop.f32.mrf.mxu1 }
 0x23a   :  { %v478_v40 = vpop.f32.mrf.mxu0 }
 0x23b   :  { %v479_v41 = vadd.f32 %v3390_v22, %v478_v40  ;;  %v3927_v40 = vld [vmem:[#allocation2 + $0x21] sm:$0xff] }
 0x23d   :  { %v560_v42 = vmax.f32 %v479_v41, 0.0  ;;  %v728_v41 = vld [vmem:[#allocation3 + $0x38] sm:$0xff] }
 0x23e   :  { %v710_v43 = vld [vmem:[#allocation2 + $0x190] sm:$0xff] }
 0x23f   :  { %645 = vst.msk [vmem:[#allocation2 + $0x1a1] sm:$0xff] %vm569_vm2, %v560_v42  ;;  %3041 = vmatmul.msk.f32.gmra.mxu1 %vm569_vm2, %v710_v43  ;;  %v3934_v42 = vpop.f32.mrf.mxu2  ;;  %v3936_v43 = vpop.f32.mrf.mxu1 }
 0x242   :  { %v481_v45 = vpop.f32.mrf.mxu0 }
 0x243   :  { %v482_v46 = vadd.f32 %v3390_v22, %v481_v45  ;;  %v3938_v45 = vld [vmem:[#allocation2 + $0x41] sm:$0xff] }
 0x245   :  { %v561_v47 = vmax.f32 %v482_v46, 0.0  ;;  %v730_v46 = vld [vmem:[#allocation3 + $0x48] sm:$0xff] }
 0x246   :  { %v3858_v48 = vld [vmem:[#allocation2 + $0x1a0] sm:$0xff] }
 0x247   :  { %646 = vst.msk [vmem:[#allocation2 + $0x1b1] sm:$0xff] %vm569_vm2, %v561_v47  ;;  %3006 = vmatmul.msk.f32.gmra.mxu2 %vm569_vm2, %v3858_v48  ;;  %v3948_v47 = vpop.f32.mrf.mxu2 }
 0x24a   :  { %v484_v49 = vpop.f32.mrf.mxu0 }
 0x24b   :  { %v485_v50 = vadd.f32 %v3390_v22, %v484_v49  ;;  %v3950_v49 = vld [vmem:[#allocation2 + $0x61] sm:$0xff] }
 0x24d   :  { %v562_v53 = vmax.f32 %v485_v50, 0.0  ;;  %v3952_v50 = vpop.f32.mrf.mxu1 }
 0x24e   :  { %v712_v55 = vld [vmem:[#allocation2 + $0x1b0] sm:$0xff] }
 0x24f   :  { %647 = vst.msk [vmem:[#allocation2 + $0x1c1] sm:$0xff] %vm569_vm2, %v562_v53  ;;  %3042 = vmatmul.msk.f32.gmra.mxu1 %vm569_vm2, %v712_v55  ;;  %v3961_v53 = vld [vmem:[#allocation2 + $0x81] sm:$0xff] }
 0x250   :  { %v734_v55 = vld [vmem:[#allocation3 + $0x68] sm:$0xff] }
 0x252   :  { %v487_v57 = vpop.f32.mrf.mxu0 }
 0x253   :  { %v488_v58 = vadd.f32 %v3390_v22, %v487_v57 }
 0x255   :  { %v563_v59 = vmax.f32 %v488_v58, 0.0  ;;  %v3963_v54 = vpop.f32.mrf.mxu1 }
 0x256   :  { %v3875_v60 = vld [vmem:[#allocation2 + $0x1c0] sm:$0xff] }
 0x257   :  { %648 = vst.msk [vmem:[#allocation2 + $0x1d1] sm:$0xff] %vm569_vm2, %v563_v59  ;;  %3007 = vmatmul.msk.f32.gmra.mxu2 %vm569_vm2, %v3875_v60  ;;  %v736_v59 = vld [vmem:[#allocation3 + $0x78] sm:$0xff] }
 0x25a   :  { %v490_v62 = vpop.f32.mrf.mxu0 }
 0x25b   :  { %v491_v0 = vadd.f32 %v3390_v22, %v490_v62 }
 0x25d   :  { %v564_v3 = vmax.f32 %v491_v0, 0.0  ;;  %v3974_v58 = vpop.f32.mrf.mxu1 }
 0x25e   :  { %v714_v4 = vld [vmem:[#allocation2 + $0x1d0] sm:$0xff] }
 0x25f   :  { %649 = vst.msk [vmem:[#allocation2 + $0x1e1] sm:$0xff] %vm569_vm2, %v564_v3  ;;  %3043 = vmatmul.msk.f32.gmra.mxu1 %vm569_vm2, %v714_v4  ;;  %v740_v4 = vld [vmem:[#allocation3 + $0xa8] sm:$0xff] }
 0x262   :  { %v493_v9 = vpop.f32.mrf.mxu0 }
 0x263   :  { %v494_v10 = vadd.f32 %v3390_v22, %v493_v9 }
 0x265   :  { %v565_v11 = vmax.f32 %v494_v10, 0.0  ;;  %v3985_v0 = vpop.f32.mrf.mxu1  ;;  %v742_v10 = vld [vmem:[#allocation3 + $0xb8] sm:$0xff] }
 0x266   :  { %v3898_v12 = vld [vmem:[#allocation2 + $0x1e0] sm:$0xff] }
 0x267   :  { %650 = vst.msk [vmem:[#allocation2 + $0x1f1] sm:$0xff] %vm569_vm2, %v565_v11  ;;  %3008 = vmatmul.msk.f32.gmra.mxu2 %vm569_vm2, %v3898_v12 }
 0x26a   :  { %v496_v13 = vpop.f32.mrf.mxu0 }
 0x26b   :  { %v497_v14 = vadd.f32 %v3390_v22, %v496_v13  ;;  %v4012_v13 = vld [vmem:[#allocation2 + $0x141] sm:$0xff] }
 0x26d   :  { %v566_v16 = vmax.f32 %v497_v14, 0.0  ;;  %v3996_v3 = vpop.f32.mrf.mxu1  ;;  %v744_v14 = vld [vmem:[#allocation3 + $0xc8] sm:$0xff] }
 0x26e   :  { %v716_v19 = vld [vmem:[#allocation2 + $0x1f0] sm:$0xff]  ;;  %4757 = vst [vmem:[#allocation5_spill] sm:$0xff] %v3996_v3 }
 0x26f   :  { %651 = vst.msk [vmem:[#allocation2 + $0x201] sm:$0xff] %vm569_vm2, %v566_v16  ;;  %3044 = vmatmul.msk.f32.gmra.mxu1 %vm569_vm2, %v716_v19  ;;  %3048 = vmatmul.msk.f32.vlgmr.msrb.gmra.mxu2 %vm569_vm2, %v722_v20  ;;  %v3101_v16 = vld [vmem:[%s4748_s3 + $0x78] sm:$0xff]  ;;  %v4026_v20 = vld [vmem:[#allocation2 + $0x161] sm:$0xff] }
 0x270   :  { %1773 = vmatpush.msra.mxu2 %v3101_v16  ;;  %v1693_v16 = vld [vmem:[#allocation3 + $0x20] sm:$0xff]  ;;  %v987_v3 = vld [vmem:[#allocation2 + $0x51] sm:$0xff] }
 0x272   :  { %v499_v23 = vpop.f32.mrf.mxu0 }
 0x273   :  { %v500_v25 = vadd.f32 %v3390_v22, %v499_v23  ;;  %v726_v22 = vld [vmem:[#allocation3 + $0x28] sm:$0xff]  ;;  %v3100_v23 = vld [vmem:[%s4748_s3 + $0x70] sm:$0xff] }
 0x274   :  { %1774 = vmatpush.msra.mxu2 %v3100_v23 }
 0x275   :  { %v567_v26 = vmax.f32 %v500_v25, 0.0  ;;  %v4005_v9 = vpop.f32.mrf.mxu1 }
 0x276   :  { %v3910_v27 = vld [vmem:[#allocation2 + $0x200] sm:$0xff] }
 0x277   :  { %652 = vst.msk [vmem:[#allocation2 + $0x211] sm:$0xff] %vm569_vm2, %v567_v26  ;;  %3009 = vmatmul.msk.f32.vlgmr.msra.gmra.mxu3 %vm569_vm2, %v3910_v27  ;;  %3049 = vmatmul.msk.f32.gmra.mxu2 %vm569_vm2, %v724_v30  ;;  %v3064_v26 = vld [vmem:[%s4748_s3 + $0x50] sm:$0xff] }
 0x27e   :  { %v718_v35 = vld [vmem:[#allocation2 + $0x210] sm:$0xff] }
 0x27f   :  { %3012 = vmatmul.msk.f32.vlgmr.msrb.gmra.mxu3 %vm569_vm2, %v982_v32  ;;  %3045 = vmatmul.msk.f32.gmra.mxu1 %vm569_vm2, %v718_v35  ;;  %v4043_v32 = vld [vmem:[#allocation2 + $0x181] sm:$0xff] }
 0x280   :  { %3050 = vmatmul.msk.f32.gmra.mxu2 %vm569_vm2, %v726_v22  ;;  %v748_v22 = vld [vmem:[#allocation3 + $0xe8] sm:$0xff] }
 0x287   :  { %3013 = vmatmul.msk.f32.gmra.mxu3 %vm569_vm2, %v3927_v40  ;;  %3084 = vmatmul.msk.f32.vlgmr.msra.gmra.mxu1 %vm569_vm2, %v3706_v61  ;;  %v3065_v61 = vld [vmem:[%s4748_s3 + $0x58] sm:$0xff] }
 0x288   :  { %3051 = vmatmul.msk.f32.gmra.mxu2 %vm569_vm2, %v728_v41  ;;  %1475 = vmatpush.msra.mxu3 %v3065_v61 }
 0x28a   :  { %1476 = vmatpush.msra.mxu3 %v3064_v26  ;;  %v983_v26 = vld [vmem:[#allocation2 + $0x11] sm:$0xff] }
 0x28f   :  { %3014 = vmatmul.msk.f32.gmra.mxu3 %vm569_vm2, %v3938_v45  ;;  %3085 = vmatmul.msk.f32.gmra.mxu1 %vm569_vm2, %v3723_v7  ;;  %v3959_v7 = vpop.f32.mrf.mxu2 }
 0x290   :  { %3052 = vmatmul.msk.f32.gmra.mxu2 %vm569_vm2, %v730_v46  ;;  %v4057_v46 = vld [vmem:[#allocation2 + $0x1a1] sm:$0xff] }
 0x297   :  { %3015 = vmatmul.msk.f32.gmra.mxu3 %vm569_vm2, %v3950_v49  ;;  %3086 = vmatmul.msk.f32.gmra.mxu1 %vm569_vm2, %v3740_v18  ;;  %v3970_v57 = vpop.f32.mrf.mxu2  ;;  %v3972_v18 = vld [vmem:[#allocation2 + $0xa1] sm:$0xff] }
 0x298   :  { %3053 = vmatmul.msk.f32.gmra.mxu2 %vm569_vm2, %v732_v51  ;;  %v750_v51 = vld [vmem:[#allocation3 + $0xf8] sm:$0xff] }
 0x29f   :  { %3016 = vmatmul.msk.f32.gmra.mxu3 %vm569_vm2, %v3961_v53  ;;  %3087 = vmatmul.msk.f32.gmra.mxu1 %vm569_vm2, %v3757_v29  ;;  %v3981_v62 = vpop.f32.mrf.mxu2  ;;  %v3983_v29 = vld [vmem:[#allocation2 + $0xc1] sm:$0xff] }
 0x2a0   :  { %3054 = vmatmul.msk.f32.gmra.mxu2 %vm569_vm2, %v734_v55  ;;  %v4068_v55 = vld [vmem:[#allocation2 + $0x1c1] sm:$0xff] }
 0x2a7   :  { %3017 = vmatmul.msk.f32.gmra.mxu3 %vm569_vm2, %v3972_v18  ;;  %3088 = vmatmul.msk.f32.gmra.mxu1 %vm569_vm2, %v3774_v39  ;;  %v3992_v2 = vpop.f32.mrf.mxu2  ;;  %v3994_v39 = vld [vmem:[#allocation2 + $0xe1] sm:$0xff] }
 0x2a8   :  { %3055 = vmatmul.msk.f32.gmra.mxu2 %vm569_vm2, %v736_v59 }
 0x2af   :  { %3018 = vmatmul.msk.f32.gmra.mxu3 %vm569_vm2, %v3983_v29  ;;  %3089 = vmatmul.msk.f32.gmra.mxu1 %vm569_vm2, %v3793_v52  ;;  %v4003_v6 = vpop.f32.mrf.mxu2  ;;  %v998_v52 = vld [vmem:[#allocation2 + $0x121] sm:$0xff] }
 0x2b0   :  { %3056 = vmatmul.msk.f32.gmra.mxu2 %vm569_vm2, %v738_v1  ;;  %v752_v1 = vld [vmem:[#allocation3 + $0x108] sm:$0xff] }
 0x2b7   :  { %3019 = vmatmul.msk.f32.gmra.mxu3 %vm569_vm2, %v3994_v39  ;;  %3090 = vmatmul.msk.f32.gmra.mxu1 %vm569_vm2, %v3810_v63  ;;  %v4010_v11 = vpop.f32.mrf.mxu2  ;;  %v4014_v63 = vpop.f32.mrf.mxu1 }
 0x2b8   :  { %3057 = vmatmul.msk.f32.gmra.mxu2 %vm569_vm2, %v740_v4 }
 0x2bf   :  { %3020 = vmatmul.msk.f32.gmra.mxu3 %vm569_vm2, %v998_v52  ;;  %3091 = vmatmul.msk.f32.gmra.mxu1 %vm569_vm2, %v1550_v8  ;;  %v4024_v19 = vpop.f32.mrf.mxu2  ;;  %v4031_v25 = vpop.f32.mrf.mxu1  ;;  %v1692_v8 = vld [vmem:[#allocation3 + $0x10] sm:$0xff] }
 0x2c0   :  { %3058 = vmatmul.msk.f32.gmra.mxu2 %vm569_vm2, %v742_v10  ;;  %v866_v10 = vpop.f32.mrf.mxu3 }
 0x2c7   :  { %3021 = vmatmul.msk.f32.gmra.mxu3 %vm569_vm2, %v4012_v13  ;;  %3092 = vmatmul.msk.f32.gmra.mxu1 %vm569_vm2, %v3825_v17  ;;  %v746_v17 = vld [vmem:[#allocation3 + $0xd8] sm:$0xff]  ;;  %v4041_v30 = vpop.f32.mrf.mxu2  ;;  %v4045_v35 = vpop.f32.mrf.mxu1 }
 0x2c8   :  { %3059 = vmatmul.msk.f32.gmra.mxu2 %vm569_vm2, %v744_v14  ;;  %v4088_v14 = vld [vmem:[#allocation2 + $0x201] sm:$0xff] }
 0x2cf   :  { %3022 = vmatmul.msk.f32.gmra.mxu3 %vm569_vm2, %v4026_v20  ;;  %3093 = vmatmul.msk.f32.gmra.mxu1 %vm569_vm2, %v3836_v28  ;;  %v3207_v28 = vld [vmem:[%s4749_s5 + $0xd8] sm:$0xff]  ;;  %v4055_v41 = vpop.f32.mrf.mxu2  ;;  %v4059_v61 = vpop.f32.mrf.mxu1 }
 0x2d0   :  { %3060 = vmatmul.msk.f32.gmra.mxu2 %vm569_vm2, %v746_v17  ;;  %2632 = vmatpush.msrb.mxu0 %v3207_v28  ;;  %v935_v28 = vadd.f32 %v3916_v31, %v3831_v24  ;;  %v938_v24 = vadd.f32 %v3923_v36, %v3842_v34  ;;  %v941_v34 = vadd.f32 %v3934_v42, %v3853_v44  ;;  %v991_v42 = vld [vmem:[#allocation2 + $0x91] sm:$0xff] }
 0x2d7   :  { %3023 = vmatmul.msk.f32.gmra.mxu3 %vm569_vm2, %v4043_v32  ;;  %3094 = vmatmul.msk.f32.gmra.mxu1 %vm569_vm2, %v3847_v38  ;;  %v4070_v59 = vpop.f32.mrf.mxu1 }
 0x2d8   :  { %3061 = vmatmul.msk.f32.gmra.mxu2 %vm569_vm2, %v748_v22  ;;  %v1558_v22 = vld [vmem:[#allocation2 + $0x220] sm:$0xff] }
 0x2da   :  { %v4066_v38 = vpop.f32.mrf.mxu2 }
 0x2db   :  { %4758 = vst [vmem:[#allocation6_spill] sm:$0xff] %v4066_v38 }
 0x2df   :  { %3024 = vmatmul.msk.f32.gmra.mxu3 %vm569_vm2, %v4057_v46  ;;  %3095 = vmatmul.msk.f32.gmra.mxu1 %vm569_vm2, %v3858_v48  ;;  %v4079_v48 = vld [vmem:[#allocation2 + $0x1e1] sm:$0xff]  ;;  %v4081_v52 = vpop.f32.mrf.mxu1 }
 0x2e0   :  { %3062 = vmatmul.msk.f32.gmra.mxu2 %vm569_vm2, %v750_v51 }
 0x2e7   :  { %3025 = vmatmul.msk.f32.gmra.mxu3 %vm569_vm2, %v4068_v55  ;;  %3096 = vmatmul.msk.f32.gmra.mxu1 %vm569_vm2, %v3875_v60  ;;  %v4090_v60 = vpop.f32.mrf.mxu1 }
 0x2e8   :  { %3063 = vmatmul.msk.f32.gmra.mxu2 %vm569_vm2, %v752_v1  ;;  %v1694_v1 = vld [vmem:[#allocation3 + $0x30] sm:$0xff] }
 0x2ea   :  { %v4077_v4 = vpop.f32.mrf.mxu2 }
 0x2ef   :  { %3026 = vmatmul.msk.f32.gmra.mxu3 %vm569_vm2, %v4079_v48  ;;  %3097 = vmatmul.msk.f32.gmra.mxu1 %vm569_vm2, %v3898_v12  ;;  %v4101_v51 = vpop.f32.mrf.mxu1 }
 0x2f0   :  { %3102 = vmatmul.msk.f32.vlgmr.msra.gmra.mxu2 %vm569_vm2, %v1692_v8 }
 0x2f2   :  { %v1346_v23 = vpop.f32.mrf.mxu2 }
 0x2f7   :  { %3027 = vmatmul.msk.f32.gmra.mxu3 %vm569_vm2, %v4088_v14  ;;  %3098 = vmatmul.msk.f32.gmra.mxu1 %vm569_vm2, %v3910_v27 }
 0x2f8   :  { %3103 = vmatmul.msk.f32.gmra.mxu2 %vm569_vm2, %v1693_v16 }
 0x2fa   :  { %v979_v17 = vpop.f32.mrf.mxu3  ;;  %v1349_v27 = vpop.f32.mrf.mxu2 }
 0x2fb   :  { %v4097_v12 = vadd.f32 %v979_v17, %v866_v10  ;;  %v985_v17 = vld [vmem:[#allocation2 + $0x31] sm:$0xff] }
 0x2ff   :  { %3066 = vmatmul.msk.f32.vlgmr.msra.gmra.mxu3 %vm569_vm2, %v983_v26  ;;  %3099 = vmatmul.msk.f32.gmra.mxu1 %vm569_vm2, %v1558_v22 }
 0x300   :  { %3104 = vmatmul.msk.f32.gmra.mxu2 %vm569_vm2, %v1694_v1 }
 0x302   :  { %v1082_v8 = vpop.f32.mrf.mxu3 }
 0x303   :  { %v1130_v16 = vadd.f32 %v1082_v8, %v935_v28  ;;  %v1352_v22 = vpop.f32.mrf.mxu2 }
 0x305   :  { %v1262_v10 = vadd.f32 %v4014_v63, %v1130_v16  ;;  %v1696_v63 = vld [vmem:[#allocation3 + $0x50] sm:$0xff] }
 0x306   :  { %v989_v16 = vld [vmem:[#allocation2 + $0x71] sm:$0xff] }
 0x307   :  { %3067 = vmatmul.msk.f32.gmra.mxu3 %vm569_vm2, %v985_v17  ;;  %v4108_v38 = vadd.f32 %v1346_v23, %v1262_v10  ;;  %v944_v10 = vadd.f32 %v3948_v47, %v3870_v56  ;;  %v993_v47 = vld [vmem:[#allocation2 + $0xb1] sm:$0xff] }
 0x308   :  { %3105 = vmatmul.msk.f32.gmra.mxu2 %vm569_vm2, %v1695_v15  ;;  %v3119_v15 = vld [vmem:[%s4748_s3 + $0x88] sm:$0xff] }
 0x309   :  { %1921 = vmatpush.msrb.mxu3 %v3119_v15 }
 0x30a   :  { %v1085_v31 = vpop.f32.mrf.mxu3 }
 0x30b   :  { %v1131_v26 = vadd.f32 %v1085_v31, %v938_v24  ;;  %v1355_v8 = vpop.f32.mrf.mxu2 }
 0x30d   :  { %v1263_v1 = vadd.f32 %v4031_v25, %v1131_v26 }
 0x30f   :  { %3068 = vmatmul.msk.f32.gmra.mxu3 %vm569_vm2, %v987_v3  ;;  %v4115_v28 = vadd.f32 %v1349_v27, %v1263_v1  ;;  %v1697_v3 = vld [vmem:[#allocation3 + $0x60] sm:$0xff] }
 0x310   :  { %3106 = vmatmul.msk.f32.gmra.mxu2 %vm569_vm2, %v1696_v63 }
 0x312   :  { %v1088_v36 = vpop.f32.mrf.mxu3 }
 0x313   :  { %v1132_v23 = vadd.f32 %v1088_v36, %v941_v34  ;;  %v1358_v26 = vpop.f32.mrf.mxu2  ;;  %v950_v34 = vadd.f32 %v3970_v57, %v3904_v21  ;;  %v997_v57 = vld [vmem:[#allocation2 + $0xf1] sm:$0xff] }
 0x315   :  { %v1264_v25 = vadd.f32 %v4045_v35, %v1132_v23  ;;  %v1698_v35 = vld [vmem:[#allocation3 + $0x70] sm:$0xff] }
 0x317   :  { %3069 = vmatmul.msk.f32.gmra.mxu3 %vm569_vm2, %v989_v16  ;;  %v4125_v27 = vadd.f32 %v1352_v22, %v1264_v25  ;;  %v947_v22 = vadd.f32 %v3959_v7, %v3887_v5  ;;  %v995_v7 = vld [vmem:[#allocation2 + $0xd1] sm:$0xff]  ;;  %v953_v16 = vadd.f32 %v3981_v62, %v3918_v33 }
 0x318   :  { %3107 = vmatmul.msk.f32.gmra.mxu2 %vm569_vm2, %v1697_v3 }
 0x31a   :  { %v1091_v17 = vpop.f32.mrf.mxu3 }
 0x31b   :  { %v1133_v24 = vadd.f32 %v1091_v17, %v944_v10  ;;  %v1361_v36 = vpop.f32.mrf.mxu2 }
 0x31d   :  { %v1265_v44 = vadd.f32 %v4059_v61, %v1133_v24  ;;  %v1699_v61 = vld [vmem:[#allocation3 + $0x80] sm:$0xff] }
 0x31f   :  { %3070 = vmatmul.msk.f32.gmra.mxu3 %vm569_vm2, %v991_v42  ;;  %v4132_v31 = vadd.f32 %v1355_v8, %v1265_v44  ;;  %v956_v44 = vadd.f32 %v3992_v2, %v3925_v37  ;;  %v1003_v2 = vld [vmem:[#allocation2 + $0x171] sm:$0xff] }
 0x320   :  { %3108 = vmatmul.msk.f32.gmra.mxu2 %vm569_vm2, %v1698_v35 }
 0x322   :  { %v1094_v1 = vpop.f32.mrf.mxu3 }
 0x323   :  { %v1134_v63 = vadd.f32 %v1094_v1, %v947_v22  ;;  %v1364_v17 = vpop.f32.mrf.mxu2 }
 0x325   :  { %v1266_v56 = vadd.f32 %v4070_v59, %v1134_v63  ;;  %v1700_v59 = vld [vmem:[#allocation3 + $0xa0] sm:$0xff]  ;;  %v1001_v63 = vld [vmem:[#allocation2 + $0x151] sm:$0xff] }
 0x327   :  { %3071 = vmatmul.msk.f32.gmra.mxu3 %vm569_vm2, %v993_v47  ;;  %v4139_v15 = vadd.f32 %v1358_v26, %v1266_v56  ;;  %v999_v26 = vld [vmem:[#allocation2 + $0x131] sm:$0xff]  ;;  %v3118_v47 = vld [vmem:[%s4748_s3 + $0x80] sm:$0xff] }
 0x328   :  { %3109 = vmatmul.msk.f32.gmra.mxu2 %vm569_vm2, %v1699_v61  ;;  %v1703_v56 = vld [vmem:[#allocation3 + $0xd0] sm:$0xff]  ;;  %1922 = vmatpush.msrb.mxu3 %v3118_v47 }
 0x32a   :  { %v1097_v23 = vpop.f32.mrf.mxu3 }
 0x32b   :  { %v1135_v25 = vadd.f32 %v1097_v23, %v950_v34  ;;  %v1367_v62 = vpop.f32.mrf.mxu2  ;;  %v1005_v34 = vld [vmem:[#allocation2 + $0x191] sm:$0xff] }
 0x32d   :  { %v1267_v5 = vadd.f32 %v4081_v52, %v1135_v25  ;;  %v1701_v52 = vld [vmem:[#allocation3 + $0xb0] sm:$0xff] }
 0x32e   :  { %v3206_v25 = vld [vmem:[%s4749_s5 + $0xd0] sm:$0xff] }
 0x32f   :  { %3072 = vmatmul.msk.f32.gmra.mxu3 %vm569_vm2, %v995_v7  ;;  %v4146_v8 = vadd.f32 %v1361_v36, %v1267_v5  ;;  %v1705_v36 = vld [vmem:[#allocation3 + $0xf0] sm:$0xff]  ;;  %2633 = vmatpush.msrb.mxu0 %v3206_v25  ;;  %v1706_v7 = vld [vmem:[#allocation3 + $0x100] sm:$0xff] }
 0x330   :  { %3110 = vmatmul.msk.f32.gmra.mxu2 %vm569_vm2, %v1700_v59  ;;  %v1007_v5 = vld [vmem:[#allocation2 + $0x1b1] sm:$0xff] }
 0x332   :  { %v1100_v3 = vpop.f32.mrf.mxu3 }
 0x333   :  { %v1136_v10 = vadd.f32 %v1100_v3, %v953_v16  ;;  %v1009_v16 = vld [vmem:[#allocation2 + $0x1d1] sm:$0xff] }
 0x334   :  { %v1707_v3 = vld [vmem:[#allocation3 + $0x110] sm:$0xff] }
 0x335   :  { %v1268_v21 = vadd.f32 %v4090_v60, %v1136_v10  ;;  %v1702_v60 = vld [vmem:[#allocation3 + $0xc0] sm:$0xff] }
 0x337   :  { %3073 = vmatmul.msk.f32.gmra.mxu3 %vm569_vm2, %v997_v57  ;;  %v4153_v24 = vadd.f32 %v1364_v17, %v1268_v21  ;;  %v1011_v17 = vld [vmem:[#allocation2 + $0x1f1] sm:$0xff]  ;;  %v977_v21 = vadd.f32 %v4077_v4, %v4005_v9  ;;  %v1370_v9 = vpop.f32.mrf.mxu2 }
 0x338   :  { %3111 = vmatmul.msk.f32.gmra.mxu2 %vm569_vm2, %v1701_v52 }
 0x33a   :  { %v1103_v42 = vpop.f32.mrf.mxu3 }
 0x33b   :  { %v1137_v35 = vadd.f32 %v1103_v42, %v956_v44  ;;  %v1013_v44 = vld [vmem:[#allocation2 + $0x211] sm:$0xff] }
 0x33d   :  { %v1269_v33 = vadd.f32 %v4101_v51, %v1137_v35  ;;  %v1704_v51 = vld [vmem:[#allocation3 + $0xe0] sm:$0xff] }
 0x33f   :  { %3074 = vmatmul.msk.f32.gmra.mxu3 %vm569_vm2, %v999_v26  ;;  %v4160_v22 = vadd.f32 %v1367_v62, %v1269_v33 }
 0x340   :  { %3112 = vmatmul.msk.f32.gmra.mxu2 %vm569_vm2, %v1702_v60 }
 0x342   :  { %v4163_v1 = vpop.f32.mrf.mxu3 }
 0x347   :  { %3075 = vmatmul.msk.f32.gmra.mxu3 %vm569_vm2, %v1001_v63  ;;  %v1238_v63 = vpop.f32.mrf.mxu1 }
 0x348   :  { %3113 = vmatmul.msk.f32.gmra.mxu2 %vm569_vm2, %v1703_v56 }
 0x34a   :  { %v4167_v37 = vpop.f32.mrf.mxu3 }
 0x34f   :  { %3076 = vmatmul.msk.f32.gmra.mxu3 %vm569_vm2, %v1003_v2 }
 0x350   :  { %3114 = vmatmul.msk.f32.gmra.mxu2 %vm569_vm2, %v1704_v51 }
 0x352   :  { %v4174_v61 = vpop.f32.mrf.mxu3 }
 0x357   :  { %3077 = vmatmul.msk.f32.gmra.mxu3 %vm569_vm2, %v1005_v34 }
 0x358   :  { %3115 = vmatmul.msk.f32.gmra.mxu2 %vm569_vm2, %v1705_v36  ;;  %v959_v36 = vadd.f32 %v4003_v6, %v3936_v43 }
 0x35a   :  { %v4178_v23 = vpop.f32.mrf.mxu3 }
 0x35f   :  { %3078 = vmatmul.msk.f32.gmra.mxu3 %vm569_vm2, %v1007_v5 }
 0x360   :  { %3116 = vmatmul.msk.f32.gmra.mxu2 %vm569_vm2, %v1706_v7 }
 0x362   :  { %v4185_v59 = vpop.f32.mrf.mxu3 }
 0x367   :  { %3079 = vmatmul.msk.f32.gmra.mxu3 %vm569_vm2, %v1009_v16 }
 0x368   :  { %3117 = vmatmul.msk.f32.gmra.mxu2 %vm569_vm2, %v1707_v3 }
 0x36a   :  { %v4189_v10 = vpop.f32.mrf.mxu3 }
 0x36f   :  { %3080 = vmatmul.msk.f32.gmra.mxu3 %vm569_vm2, %v1011_v17 }
 0x372   :  { %v1124_v57 = vpop.f32.mrf.mxu3 }
 0x373   :  { %v4194_v52 = vadd.f32 %v1124_v57, %v977_v21 }
 0x377   :  { %3081 = vmatmul.msk.f32.gmra.mxu3 %vm569_vm2, %v1013_v44  ;;  %v2102_v44 = vld [vmem:[%s4749_s5 + $0x18] sm:$0xff] }
 0x378   :  { %2225 = vmatpush.msrb.mxu2 %v2102_v44 }
 0x37a   :  { %v1127_v42 = vpop.f32.mrf.mxu3 }
 0x37b   :  { %v4198_v35 = vadd.f32 %v1127_v42, %v4097_v12  ;;  %v4212_v12 = vpop.f32.mrf.mxu2  ;;  %v3139_v42 = vld [vmem:[%s4749_s5 + $0x38] sm:$0xff] }
 0x37c   :  { %2160 = vmatpush.msrb.mxu1 %v3139_v42 }
 0x37f   :  { %3120 = vmatmul.msk.f32.vlgmr.msrb.gmra.mxu3 %vm569_vm2, %v3927_v40 }
 0x382   :  { %v1478_v33 = vpop.f32.mrf.mxu3 }
 0x383   :  { %v4203_v62 = vadd.f32 %v1478_v33, %v4108_v38  ;;  %v4222_v56 = vpop.f32.mrf.mxu2 }
 0x387   :  { %3121 = vmatmul.msk.f32.gmra.mxu3 %vm569_vm2, %v3938_v45 }
 0x38a   :  { %v1481_v4 = vpop.f32.mrf.mxu3 }
 0x38b   :  { %v4208_v26 = vadd.f32 %v1481_v4, %v4115_v28  ;;  %v4224_v28 = vpop.f32.mrf.mxu1  ;;  %v4233_v51 = vpop.f32.mrf.mxu2 }
 0x38f   :  { %3122 = vmatmul.msk.f32.gmra.mxu3 %vm569_vm2, %v3950_v49 }
 0x392   :  { %v1484_v60 = vpop.f32.mrf.mxu3 }
 0x393   :  { %v4215_v40 = vadd.f32 %v1484_v60, %v4125_v27  ;;  %v4231_v27 = vpop.f32.mrf.mxu1 }
 0x397   :  { %3123 = vmatmul.msk.f32.gmra.mxu3 %vm569_vm2, %v3961_v53 }
 0x39a   :  { %v1487_v38 = vpop.f32.mrf.mxu3 }
 0x39b   :  { %v4220_v45 = vadd.f32 %v1487_v38, %v4132_v31  ;;  %v4240_v47 = vpop.f32.mrf.mxu1 }
 0x39f   :  { %3124 = vmatmul.msk.f32.gmra.mxu3 %vm569_vm2, %v3972_v18  ;;  %v4244_v18 = vpop.f32.mrf.mxu2 }
 0x3a2   :  { %v1490_v49 = vpop.f32.mrf.mxu3 }
 0x3a3   :  { %v4229_v2 = vadd.f32 %v1490_v49, %v4139_v15  ;;  %v4251_v25 = vpop.f32.mrf.mxu1 }
 0x3a7   :  { %3125 = vmatmul.msk.f32.gmra.mxu3 %vm569_vm2, %v3983_v29  ;;  %v1847_v29 = vld [vmem:[#allocation2 + $0x101] sm:$0xff]  ;;  %v4255_v5 = vpop.f32.mrf.mxu2 }
 0x3aa   :  { %v1493_v53 = vpop.f32.mrf.mxu3 }
 0x3ab   :  { %v4238_v31 = vadd.f32 %v1493_v53, %v4146_v8  ;;  %v1138_v8 = vadd.f32 %v4163_v1, %v959_v36  ;;  %v4260_v16 = vpop.f32.mrf.mxu1  ;;  %v3138_v53 = vld [vmem:[%s4749_s5 + $0x30] sm:$0xff] }
 0x3ac   :  { %v3158_v36 = vld [vmem:[%s4749_s5 + $0x50] sm:$0xff]  ;;  %2161 = vmatpush.msrb.mxu1 %v3138_v53  ;;  %v1855_v53 = vld [vmem:[#allocation2 + $0x221] sm:$0xff] }
 0x3af   :  { %3126 = vmatmul.msk.f32.gmra.mxu3 %vm569_vm2, %v3994_v39  ;;  %v4266_v17 = vpop.f32.mrf.mxu2 }
 0x3b2   :  { %v1496_v15 = vpop.f32.mrf.mxu3 }
 0x3b3   :  { %v4247_v34 = vadd.f32 %v1496_v15, %v4153_v24  ;;  %v1270_v24 = vadd.f32 %v1238_v63, %v1138_v8  ;;  %v4268_v21 = vpop.f32.mrf.mxu1  ;;  %v2101_v15 = vld [vmem:[%s4749_s5 + $0x10] sm:$0xff]  ;;  %v2100_v8 = vld [vmem:[%s4749_s5 + $0x8] sm:$0xff] }
 0x3b4   :  { %2226 = vmatpush.msrb.mxu2 %v2101_v15  ;;  %v3204_v15 = vld [vmem:[%s4749_s5 + $0xc0] sm:$0xff] }
 0x3b5   :  { %v1402_v43 = vadd.f32 %v1370_v9, %v1270_v24  ;;  %v3136_v24 = vld [vmem:[%s4749_s5 + $0x20] sm:$0xff] }
 0x3b6   :  { %2227 = vmatpush.msrb.mxu2 %v2100_v8 }
 0x3b7   :  { %3127 = vmatmul.msk.f32.gmra.mxu3 %vm569_vm2, %v1847_v29  ;;  %v4276_v57 = vpop.f32.mrf.mxu2  ;;  %v3137_v29 = vld [vmem:[%s4749_s5 + $0x28] sm:$0xff] }
 0x3b8   :  { %2162 = vmatpush.msrb.mxu1 %v3137_v29 }
 0x3ba   :  { %v1499_v7 = vpop.f32.mrf.mxu3  ;;  %2163 = vmatpush.msrb.mxu1 %v3136_v24 }
 0x3bb   :  { %v4258_v39 = vadd.f32 %v1499_v7, %v4160_v22  ;;  %v4274_v22 = vpop.f32.mrf.mxu1  ;;  %v3157_v7 = vld [vmem:[%s4749_s5 + $0x48] sm:$0xff] }
 0x3bf   :  { %3128 = vmatmul.msk.f32.gmra.mxu3 %vm569_vm2, %v4012_v13  ;;  %v4295_v33 = vpop.f32.mrf.mxu2 }
 0x3c2   :  { %v1502_v6 = vpop.f32.mrf.mxu3 }
 0x3c3   :  { %v4264_v3 = vadd.f32 %v1502_v6, %v1402_v43  ;;  %v2099_v43 = vld [vmem:[%s4749_s5] sm:$0xff] }
 0x3c4   :  { %2228 = vmatpush.msrb.mxu2 %v2099_v43 }
 0x3c7   :  { %3129 = vmatmul.msk.f32.gmra.mxu3 %vm569_vm2, %v4026_v20  ;;  %v4288_v20 = vpop.f32.mrf.mxu1  ;;  %v4303_v60 = vpop.f32.mrf.mxu2 }
 0x3c8   :  { %v1675_v8 = vadd.f32 %v4288_v20, %v4203_v62  ;;  %v4412_v62 = vld [vmem:[%s4750_s4] ss:$0 sm:$0xff] }
 0x3ca   :  { %v4272_v1 = vpop.f32.mrf.mxu3  ;;  %v1824_v43 = vadd.f32 %v4295_v33, %v1675_v8 }
 0x3cf   :  { %3130 = vmatmul.msk.f32.gmra.mxu3 %vm569_vm2, %v4043_v32  ;;  %v3205_v32 = vld [vmem:[%s4749_s5 + $0xc8] sm:$0xff]  ;;  %v4301_v4 = vpop.f32.mrf.mxu1 }
 0x3d0   :  { %2634 = vmatpush.msrb.mxu0 %v3205_v32  ;;  %v1676_v33 = vadd.f32 %v4301_v4, %v4208_v26 }
 0x3d2   :  { %v4280_v13 = vpop.f32.mrf.mxu3  ;;  %2635 = vmatpush.msrb.mxu0 %v3204_v15  ;;  %v1825_v26 = vadd.f32 %v4303_v60, %v1676_v33 }
 0x3d7   :  { %3131 = vmatmul.msk.f32.gmra.mxu3 %vm569_vm2, %v4057_v46  ;;  %v4759_v46 = vmov 0.0   ;;  %v4320_v49 = vpop.f32.mrf.mxu1 }
 0x3d8   :  { %2028 = vst.msk [vmem:[#allocation4 + $0x10] sm:$0xff] %vm2024_vm4, %v4759_v46  ;;  %v1677_v8 = vadd.f32 %v4320_v49, %v4215_v40 }
 0x3d9   :  { %2029 = vst.msk [vmem:[#allocation4 + $0x18] sm:$0x3] %vm2026_vm5, %v4759_v46 }
 0x3da   :  { %v4297_v9 = vpop.f32.mrf.mxu3  ;;  %2025 = vst.msk [vmem:[#allocation4] sm:$0xff] %vm2024_vm4, %v4759_v46 }
 0x3db   :  { %2027 = vst.msk [vmem:[#allocation4 + $0x8] sm:$0x3] %vm2026_vm5, %v4759_v46 }
 0x3dc   :  { %2030 = vst.msk [vmem:[#allocation4 + $0x20] sm:$0xff] %vm2024_vm4, %v4759_v46 }
 0x3dd   :  { %2031 = vst.msk [vmem:[#allocation4 + $0x28] sm:$0x3] %vm2026_vm5, %v4759_v46 }
 0x3de   :  { %2032 = vst.msk [vmem:[#allocation4 + $0x30] sm:$0xff] %vm2024_vm4, %v4759_v46 }
 0x3df   :  { %3132 = vmatmul.msk.f32.gmra.mxu3 %vm569_vm2, %v4068_v55  ;;  %v3159_v55 = vld [vmem:[%s4749_s5 + $0x58] sm:$0xff]  ;;  %2033 = vst.msk [vmem:[#allocation4 + $0x38] sm:$0x3] %vm2026_vm5, %v4759_v46  ;;  %v1636_v32 = vpop.f32.mrf.mxu1 }
 0x3e0   :  { %2311 = vmatpush.msra.mxu3 %v3159_v55  ;;  %2034 = vst.msk [vmem:[#allocation4 + $0x40] sm:$0xff] %vm2024_vm4, %v4759_v46 }
 0x3e1   :  { %2035 = vst.msk [vmem:[#allocation4 + $0x48] sm:$0x3] %vm2026_vm5, %v4759_v46  ;;  %v2083_v6 = vld [vmem:[#allocation4] sm:$0xff] }
 0x3e2   :  { %v4305_v63 = vpop.f32.mrf.mxu3  ;;  %2312 = vmatpush.msra.mxu3 %v3158_v36  ;;  %2036 = vst.msk [vmem:[#allocation4 + $0x50] sm:$0xff] %vm2024_vm4, %v4759_v46  ;;  %v2103_v42 = vld [vmem:[#allocation4 + $0x1] sm:$0xff]  ;;  %3148 = vmatmul.msk.f32.vlgmr.msrb.gmra.mxu2 %vm2024_vm4, %v2083_v6 }
 0x3e3   :  { %2037 = vst.msk [vmem:[#allocation4 + $0x58] sm:$0x3] %vm2026_vm5, %v4759_v46  ;;  %3140 = vmatmul.msk.f32.vlgmr.msrb.gmra.mxu1 %vm2024_vm4, %v2103_v42  ;;  %v2254_v29 = vld [vmem:[#allocation4 + $0x2] sm:$0xff] }
 0x3e4   :  { %2313 = vmatpush.msra.mxu3 %v3157_v7  ;;  %2038 = vst.msk [vmem:[#allocation4 + $0x60] sm:$0xff] %vm2024_vm4, %v4759_v46 }
 0x3e5   :  { %2039 = vst.msk [vmem:[#allocation4 + $0x68] sm:$0x3] %vm2026_vm5, %v4759_v46 }
 0x3e6   :  { %2040 = vst.msk [vmem:[#allocation4 + $0x70] sm:$0xff] %vm2024_vm4, %v4759_v46 }
 0x3e7   :  { %3133 = vmatmul.msk.f32.gmra.mxu3 %vm569_vm2, %v4079_v48  ;;  %v4324_v48 = vpop.f32.mrf.mxu2  ;;  %2041 = vst.msk [vmem:[#allocation4 + $0x78] sm:$0x3] %vm2026_vm5, %v4759_v46  ;;  %v1639_v7 = vpop.f32.mrf.mxu1 }
 0x3e8   :  { %2042 = vst.msk [vmem:[#allocation4 + $0x80] sm:$0xff] %vm2024_vm4, %v4759_v46 }
 0x3e9   :  { %2043 = vst.msk [vmem:[#allocation4 + $0x88] sm:$0x3] %vm2026_vm5, %v4759_v46 }
 0x3ea   :  { %v4313_v38 = vpop.f32.mrf.mxu3  ;;  %2046 = vst.msk [vmem:[#allocation4 + $0xa0] sm:$0xff] %vm2024_vm4, %v4759_v46 }
 0x3eb   :  { %2047 = vst.msk [vmem:[#allocation4 + $0xa8] sm:$0x3] %vm2026_vm5, %v4759_v46 }
 0x3ec   :  { %2048 = vst.msk [vmem:[#allocation4 + $0xb0] sm:$0xff] %vm2024_vm4, %v4759_v46 }
 0x3ed   :  { %2049 = vst.msk [vmem:[#allocation4 + $0xb8] sm:$0x3] %vm2026_vm5, %v4759_v46 }
 0x3ee   :  { %2050 = vst.msk [vmem:[#allocation4 + $0xc0] sm:$0xff] %vm2024_vm4, %v4759_v46 }
 0x3ef   :  { %3134 = vmatmul.msk.f32.gmra.mxu3 %vm569_vm2, %v4088_v14  ;;  %v3156_v14 = vld [vmem:[%s4749_s5 + $0x40] sm:$0xff]  ;;  %v4379_v55 = vpop.f32.mrf.mxu2  ;;  %2051 = vst.msk [vmem:[#allocation4 + $0xc8] sm:$0x3] %vm2026_vm5, %v4759_v46 }
 0x3f0   :  { %2314 = vmatpush.msra.mxu3 %v3156_v14  ;;  %2052 = vst.msk [vmem:[#allocation4 + $0xd0] sm:$0xff] %vm2024_vm4, %v4759_v46 }
 0x3f1   :  { %2053 = vst.msk [vmem:[#allocation4 + $0xd8] sm:$0x3] %vm2026_vm5, %v4759_v46 }
 0x3f2   :  { %v4367_v44 = vpop.f32.mrf.mxu3  ;;  %2054 = vst.msk [vmem:[#allocation4 + $0xe0] sm:$0xff] %vm2024_vm4, %v4759_v46 }
 0x3f3   :  { %2055 = vst.msk [vmem:[#allocation4 + $0xe8] sm:$0x3] %vm2026_vm5, %v4759_v46 }
 0x3f4   :  { %2056 = vst.msk [vmem:[#allocation4 + $0xf0] sm:$0xff] %vm2024_vm4, %v4759_v46 }
 0x3f5   :  { %2057 = vst.msk [vmem:[#allocation4 + $0xf8] sm:$0x3] %vm2026_vm5, %v4759_v46 }
 0x3f6   :  { %2058 = vst.msk [vmem:[#allocation4 + $0x100] sm:$0xff] %vm2024_vm4, %v4759_v46 }
 0x3f7   :  { %3135 = vmatmul.msk.f32.gmra.mxu3 %vm569_vm2, %v1855_v53  ;;  %v1788_v24 = vpop.f32.mrf.mxu2  ;;  %v1642_v53 = vpop.f32.mrf.mxu1  ;;  %2059 = vst.msk [vmem:[#allocation4 + $0x108] sm:$0x3] %vm2026_vm5, %v4759_v46 }
 0x3f8   :  { %2060 = vst.msk [vmem:[#allocation4 + $0x110] sm:$0xff] %vm2024_vm4, %v4759_v46 }
 0x3f9   :  { %2061 = vst.msk [vmem:[#allocation4 + $0x118] sm:$0x3] %vm2026_vm5, %v4759_v46 }
 0x3fa   :  { %v4393_v36 = vpop.f32.mrf.mxu3  ;;  %2062 = vst.msk [vmem:[#allocation4 + $0x120] sm:$0xff] %vm2024_vm4, %v4759_v46 }
 0x3fb   :  { %4760 = vst [vmem:[#allocation7_spill] sm:$0xff] %v4393_v36 }
 0x3fc   :  { %2063 = vst.msk [vmem:[#allocation4 + $0x128] sm:$0x3] %vm2026_vm5, %v4759_v46 }
 0x3ff   :  { %3160 = vmatmul.msk.f32.vlgmr.msra.gmra.mxu3 %vm2024_vm4, %v2254_v29  ;;  %v1791_v4 = vpop.f32.mrf.mxu2  ;;  %v1645_v33 = vpop.f32.mrf.mxu1 }
 0x402   :  { %v1924_v20 = vpop.f32.mrf.mxu3 }
 0x403   :  { %v1972_v14 = vadd.f32 %v1924_v20, %v1824_v43  ;;  %v1826_v20 = vadd.f32 %v4324_v48, %v1677_v8  ;;  %v1679_v8 = vadd.f32 %v1639_v7, %v4229_v2 }
 0x405   :  { %v1992_v6 = vadd.f32 %v4412_v62, %v1972_v14 }
 0x407   :  { %v2008_v42 = vmax.f32 %v1992_v6, 0.0 }
 0x409   :  { %2067 = vst.msk [vmem:[#allocation4 + $0x11] sm:$0xff] %vm2024_vm4, %v2008_v42  ;;  %v1794_v42 = vpop.f32.mrf.mxu2 }
 0x40a   :  { %v1927_v15 = vpop.f32.mrf.mxu3 }
 0x40b   :  { %v1973_v29 = vadd.f32 %v1927_v15, %v1825_v26  ;;  %v1678_v26 = vadd.f32 %v1636_v32, %v4220_v45  ;;  %v1648_v32 = vpop.f32.mrf.mxu1 }
 0x40d   :  { %v1993_v60 = vadd.f32 %v4412_v62, %v1973_v29  ;;  %v1827_v46 = vadd.f32 %v4379_v55, %v1678_v26  ;;  %v1680_v55 = vadd.f32 %v1642_v53, %v4238_v31  ;;  %v1681_v53 = vadd.f32 %v1645_v33, %v4247_v34 }
 0x40f   :  { %v2009_v43 = vmax.f32 %v1993_v60, 0.0  ;;  %v1829_v7 = vadd.f32 %v1791_v4, %v1680_v55  ;;  %v962_v4 = vadd.f32 %v4010_v11, %v3952_v50  ;;  %v1682_v55 = vadd.f32 %v1648_v32, %v4258_v39 }
 0x411   :  { %2068 = vst.msk [vmem:[#allocation4 + $0x21] sm:$0xff] %vm2024_vm4, %v2009_v43  ;;  %v1797_v43 = vpop.f32.mrf.mxu2 }
 0x412   :  { %v1930_v14 = vpop.f32.mrf.mxu3  ;;  %v1831_v50 = vadd.f32 %v1797_v43, %v1682_v55  ;;  %v2091_v43 = vld [vmem:[#allocation4 + $0xa0] sm:$0xff] }
 0x413   :  { %v1974_v6 = vadd.f32 %v1930_v14, %v1826_v20  ;;  %v1828_v14 = vadd.f32 %v1788_v24, %v1679_v8 }
 0x415   :  { %v1994_v40 = vadd.f32 %v4412_v62, %v1974_v6 }
 0x417   :  { %v2010_v49 = vmax.f32 %v1994_v40, 0.0 }
 0x418   :  { %v4452_v15 = vld [vmem:[#allocation4 + $0x21] sm:$0xff] }
 0x419   :  { %v2085_v29 = vld [vmem:[#allocation4 + $0x20] sm:$0xff]  ;;  %2069 = vst.msk [vmem:[#allocation4 + $0x31] sm:$0xff] %vm2024_vm4, %v2010_v49  ;;  %3141 = vmatmul.msk.f32.gmra.mxu1 %vm2024_vm4, %v4452_v15  ;;  %v1651_v49 = vpop.f32.mrf.mxu1 }
 0x41a   :  { %v4454_v36 = vld [vmem:[#allocation4 + $0x22] sm:$0xff]  ;;  %3149 = vmatmul.msk.f32.gmra.mxu2 %vm2024_vm4, %v2085_v29  ;;  %3208 = vmatmul.msk.f32.vlgmr.msrb.gmra.mxu0 %vm2024_vm4, %v2085_v29  ;;  %v1933_v45 = vpop.f32.mrf.mxu3 }
 0x41b   :  { %4761 = vst [vmem:[#allocation8_spill] sm:$0xff] %v4454_v36  ;;  %3161 = vmatmul.msk.f32.gmra.mxu3 %vm2024_vm4, %v4454_v36  ;;  %v1975_v48 = vadd.f32 %v1933_v45, %v1827_v46  ;;  %v1800_v36 = vpop.f32.mrf.mxu2 }
 0x41d   :  { %v1995_v60 = vadd.f32 %v4412_v62, %v1975_v48 }
 0x41f   :  { %v2011_v20 = vmax.f32 %v1995_v60, 0.0 }
 0x421   :  { %2070 = vst.msk [vmem:[#allocation4 + $0x41] sm:$0xff] %vm2024_vm4, %v2011_v20  ;;  %v1654_v60 = vpop.f32.mrf.mxu1  ;;  %v1830_v20 = vadd.f32 %v1794_v42, %v1681_v53 }
 0x422   :  { %v1936_v6 = vpop.f32.mrf.mxu3 }
 0x423   :  { %v1976_v40 = vadd.f32 %v1936_v6, %v1828_v14  ;;  %v1803_v14 = vpop.f32.mrf.mxu2 }
 0x425   :  { %v1996_v26 = vadd.f32 %v4412_v62, %v1976_v40 }
 0x427   :  { %v2012_v29 = vmax.f32 %v1996_v26, 0.0 }
 0x428   :  { %v4469_v46 = vld [vmem:[#allocation4 + $0x41] sm:$0xff] }
 0x429   :  { %v2087_v45 = vld [vmem:[#allocation4 + $0x40] sm:$0xff]  ;;  %2071 = vst.msk [vmem:[#allocation4 + $0x51] sm:$0xff] %vm2024_vm4, %v2012_v29  ;;  %3142 = vmatmul.msk.f32.gmra.mxu1 %vm2024_vm4, %v4469_v46  ;;  %v1139_v29 = vadd.f32 %v4167_v37, %v962_v4  ;;  %v1657_v39 = vpop.f32.mrf.mxu1 }
 0x42a   :  { %v4471_v2 = vld [vmem:[#allocation4 + $0x42] sm:$0xff]  ;;  %3150 = vmatmul.msk.f32.gmra.mxu2 %vm2024_vm4, %v2087_v45  ;;  %3209 = vmatmul.msk.f32.gmra.mxu0 %vm2024_vm4, %v2087_v45  ;;  %v1939_v31 = vpop.f32.mrf.mxu3 }
 0x42b   :  { %3162 = vmatmul.msk.f32.gmra.mxu3 %vm2024_vm4, %v4471_v2  ;;  %v1977_v24 = vadd.f32 %v1939_v31, %v1829_v7  ;;  %v1271_v37 = vadd.f32 %v4224_v28, %v1139_v29  ;;  %v1806_v32 = vpop.f32.mrf.mxu2  ;;  %v965_v31 = vadd.f32 %v4024_v19, %v3963_v54 }
 0x42d   :  { %v1997_v48 = vadd.f32 %v4412_v62, %v1977_v24  ;;  %v1683_v24 = vadd.f32 %v1651_v49, %v4264_v3 }
 0x42f   :  { %v2013_v8 = vmax.f32 %v1997_v48, 0.0  ;;  %v2111_v48 = vld [vmem:[#allocation4 + $0xa1] sm:$0xff]  ;;  %v1832_v4 = vadd.f32 %v1800_v36, %v1683_v24 }
 0x431   :  { %2072 = vst.msk [vmem:[#allocation4 + $0x61] sm:$0xff] %vm2024_vm4, %v2013_v8  ;;  %v1140_v8 = vadd.f32 %v4174_v61, %v965_v31  ;;  %v968_v61 = vadd.f32 %v4041_v30, %v3974_v58 }
 0x432   :  { %v1942_v6 = vpop.f32.mrf.mxu3 }
 0x433   :  { %v1978_v40 = vadd.f32 %v1942_v6, %v1830_v20  ;;  %v1403_v20 = vadd.f32 %v4212_v12, %v1271_v37  ;;  %v1272_v19 = vadd.f32 %v4231_v27, %v1140_v8  ;;  %v1660_v12 = vpop.f32.mrf.mxu1  ;;  %v1809_v55 = vpop.f32.mrf.mxu2  ;;  %v1141_v36 = vadd.f32 %v4178_v23, %v968_v61  ;;  %v3170_v61 = vld [vmem:[%s4749_s5 + $0x70] sm:$0xff] }
 0x435   :  { %v1998_v26 = vadd.f32 %v4412_v62, %v1978_v40  ;;  %v2262_v40 = vld [vmem:[#allocation4 + $0xa2] sm:$0xff]  ;;  %v1535_v28 = vadd.f32 %v4272_v1, %v1403_v20  ;;  %v1273_v58 = vadd.f32 %v4240_v47, %v1141_v36 }
 0x436   :  { %v3181_v36 = vld [vmem:[%s4749_s5 + $0x88] sm:$0xff] }
 0x437   :  { %v2014_v34 = vmax.f32 %v1998_v26, 0.0  ;;  %v1684_v49 = vadd.f32 %v1654_v60, %v1535_v28  ;;  %v1404_v26 = vadd.f32 %v4222_v56, %v1272_v19  ;;  %v971_v60 = vadd.f32 %v4055_v41, %v3985_v0  ;;  %v4762_v0 = vld [vmem:[#allocation5_spill] sm:$0xff]  ;;  %v4763_v41 = vld [vmem:[#allocation6_spill] sm:$0xff] }
 0x438   :  { %v4488_v33 = vld [vmem:[#allocation4 + $0x61] sm:$0xff] }
 0x439   :  { %v2089_v45 = vld [vmem:[#allocation4 + $0x60] sm:$0xff]  ;;  %2073 = vst.msk [vmem:[#allocation4 + $0x71] sm:$0xff] %vm2024_vm4, %v2014_v34  ;;  %3143 = vmatmul.msk.f32.gmra.mxu1 %vm2024_vm4, %v4488_v33  ;;  %v1833_v27 = vadd.f32 %v1803_v14, %v1684_v49  ;;  %v1142_v56 = vadd.f32 %v4185_v59, %v971_v60  ;;  %v3194_v49 = vld [vmem:[%s4749_s5 + $0xb0] sm:$0xff]  ;;  %v1276_v60 = vadd.f32 %v4268_v21, %v4194_v52 }
 0x43a   :  { %v4490_v7 = vld [vmem:[#allocation4 + $0x62] sm:$0xff]  ;;  %3151 = vmatmul.msk.f32.gmra.mxu2 %vm2024_vm4, %v2089_v45  ;;  %3210 = vmatmul.msk.f32.gmra.mxu0 %vm2024_vm4, %v2089_v45  ;;  %v1945_v11 = vpop.f32.mrf.mxu3  ;;  %v1536_v45 = vadd.f32 %v4280_v13, %v1404_v26  ;;  %v1405_v13 = vadd.f32 %v4233_v51, %v1273_v58  ;;  %v1277_v21 = vadd.f32 %v4274_v22, %v4198_v35 }
 0x43b   :  { %3163 = vmatmul.msk.f32.gmra.mxu3 %vm2024_vm4, %v4490_v7  ;;  %v1979_v42 = vadd.f32 %v1945_v11, %v1831_v50  ;;  %v1663_v37 = vpop.f32.mrf.mxu1  ;;  %v1812_v31 = vpop.f32.mrf.mxu2  ;;  %v3193_v26 = vld [vmem:[%s4749_s5 + $0xa8] sm:$0xff] }
 0x43c   :  { %v1685_v11 = vadd.f32 %v1657_v39, %v1536_v45  ;;  %v1537_v24 = vadd.f32 %v4297_v9, %v1405_v13  ;;  %v974_v39 = vadd.f32 %v4763_v41, %v4762_v0  ;;  %v3168_v45 = vld [vmem:[%s4749_s5 + $0x60] sm:$0xff] }
 0x43d   :  { %v1999_v53 = vadd.f32 %v4412_v62, %v1979_v42 }
 0x43e   :  { %v1834_v14 = vadd.f32 %v1806_v32, %v1685_v11  ;;  %v1143_v8 = vadd.f32 %v4189_v10, %v974_v39  ;;  %v3183_v10 = vld [vmem:[%s4749_s5 + $0x98] sm:$0xff]  ;;  %v1409_v39 = vadd.f32 %v4276_v57, %v1277_v21 }
 0x43f   :  { %v2015_v6 = vmax.f32 %v1999_v53, 0.0  ;;  %v1274_v53 = vadd.f32 %v4251_v25, %v1142_v56  ;;  %2467 = vmatpush.msra.mxu2 %v3183_v10 }
 0x440   :  { %v1275_v19 = vadd.f32 %v4260_v16, %v1143_v8  ;;  %v3169_v16 = vld [vmem:[%s4749_s5 + $0x68] sm:$0xff] }
 0x441   :  { %2074 = vst.msk [vmem:[#allocation4 + $0x81] sm:$0xff] %vm2024_vm4, %v2015_v6  ;;  %3144 = vmatmul.msk.f32.gmra.mxu1 %vm2024_vm4, %v2111_v48  ;;  %v1406_v51 = vadd.f32 %v4244_v18, %v1274_v53  ;;  %v3171_v18 = vld [vmem:[%s4749_s5 + $0x78] sm:$0xff] }
 0x442   :  { %3152 = vmatmul.msk.f32.gmra.mxu2 %vm2024_vm4, %v2091_v43  ;;  %v1948_v54 = vpop.f32.mrf.mxu3  ;;  %v1686_v43 = vadd.f32 %v1660_v12, %v1537_v24  ;;  %2389 = vmatpush.msra.mxu1 %v3171_v18  ;;  %v3182_v12 = vld [vmem:[%s4749_s5 + $0x90] sm:$0xff] }
 0x443   :  { %3164 = vmatmul.msk.f32.gmra.mxu3 %vm2024_vm4, %v2262_v40  ;;  %v1980_v3 = vadd.f32 %v1948_v54, %v1832_v4  ;;  %v1666_v32 = vpop.f32.mrf.mxu1  ;;  %v1538_v25 = vadd.f32 %v4305_v63, %v1406_v51  ;;  %v1815_v4 = vpop.f32.mrf.mxu2  ;;  %v3195_v54 = vld [vmem:[%s4749_s5 + $0xb8] sm:$0xff]  ;;  %2468 = vmatpush.msra.mxu2 %v3182_v12  ;;  %v2084_v12 = vld [vmem:[#allocation4 + $0x10] sm:$0xff] }
 0x444   :  { %v1835_v28 = vadd.f32 %v1809_v55, %v1686_v43  ;;  %2545 = vmatpush.msrb.mxu3 %v3195_v54  ;;  %2390 = vmatpush.msra.mxu1 %v3170_v61 }
 0x445   :  { %v2000_v1 = vadd.f32 %v4412_v62, %v1980_v3  ;;  %2469 = vmatpush.msra.mxu2 %v3181_v36  ;;  %v2086_v36 = vld [vmem:[#allocation4 + $0x30] sm:$0xff] }
 0x446   :  { %2546 = vmatpush.msrb.mxu3 %v3194_v49  ;;  %2391 = vmatpush.msra.mxu1 %v3169_v16  ;;  %v2104_v49 = vld [vmem:[#allocation4 + $0x11] sm:$0xff] }
 0x447   :  { %v2016_v29 = vmax.f32 %v2000_v1, 0.0  ;;  %v1687_v1 = vadd.f32 %v1663_v37, %v1538_v25 }
 0x448   :  { %v2586_v34 = vld [vmem:[#allocation4 + $0x80] sm:$0xff]  ;;  %2547 = vmatpush.msrb.mxu3 %v3193_v26  ;;  %2392 = vmatpush.msra.mxu1 %v3168_v45  ;;  %v2106_v26 = vld [vmem:[#allocation4 + $0x31] sm:$0xff] }
 0x449   :  { %2075 = vst.msk [vmem:[#allocation4 + $0xb1] sm:$0xff] %vm2024_vm4, %v2016_v29  ;;  %3211 = vmatmul.msk.f32.gmra.mxu0 %vm2024_vm4, %v2586_v34  ;;  %v1407_v29 = vadd.f32 %v4255_v5, %v1275_v19  ;;  %v1836_v5 = vadd.f32 %v1812_v31, %v1687_v1  ;;  %v2255_v1 = vld [vmem:[#allocation4 + $0x12] sm:$0xff] }
 0x44a   :  { %v1951_v50 = vpop.f32.mrf.mxu3  ;;  %v2108_v45 = vld [vmem:[#allocation4 + $0x51] sm:$0xff] }
 0x44b   :  { %v1981_v30 = vadd.f32 %v1951_v50, %v1833_v27  ;;  %v3180_v27 = vld [vmem:[%s4749_s5 + $0x80] sm:$0xff]  ;;  %v1539_v58 = vadd.f32 %v4313_v38, %v1407_v29  ;;  %v1818_v56 = vpop.f32.mrf.mxu2 }
 0x44c   :  { %v3192_v50 = vld [vmem:[%s4749_s5 + $0xa0] sm:$0xff]  ;;  %2470 = vmatpush.msra.mxu2 %v3180_v27  ;;  %v2259_v27 = vld [vmem:[#allocation4 + $0x52] sm:$0xff] }
 0x44d   :  { %v2001_v23 = vadd.f32 %v4412_v62, %v1981_v30  ;;  %2548 = vmatpush.msrb.mxu3 %v3192_v50  ;;  %v1688_v37 = vadd.f32 %v1666_v32, %v1539_v58  ;;  %v3231_v50 = vld [vmem:[%s4749_s5 + $0x118] sm:$0xff] }
 0x44e   :  { %2804 = vmatpush.msrb.mxu2 %v3231_v50  ;;  %v3219_v58 = vld [vmem:[%s4749_s5 + $0xf8] sm:$0xff] }
 0x44f   :  { %v2017_v42 = vmax.f32 %v2001_v23, 0.0  ;;  %v1669_v23 = vpop.f32.mrf.mxu1  ;;  %v1837_v52 = vadd.f32 %v1815_v4, %v1688_v37  ;;  %2718 = vmatpush.msrb.mxu1 %v3219_v58  ;;  %v3230_v37 = vld [vmem:[%s4749_s5 + $0x110] sm:$0xff] }
 0x450   :  { %2805 = vmatpush.msrb.mxu2 %v3230_v37  ;;  %v2112_v21 = vld [vmem:[#allocation4 + $0xb1] sm:$0xff] }
 0x451   :  { %2076 = vst.msk [vmem:[#allocation4 + $0xc1] sm:$0xff] %vm2024_vm4, %v2017_v42  ;;  %v1408_v42 = vadd.f32 %v4266_v17, %v1276_v60  ;;  %v2261_v60 = vld [vmem:[#allocation4 + $0x72] sm:$0xff] }
 0x452   :  { %v1954_v47 = vpop.f32.mrf.mxu3 }
 0x453   :  { %v1982_v48 = vadd.f32 %v1954_v47, %v1834_v14  ;;  %v1540_v47 = vadd.f32 %v4367_v44, %v1408_v42  ;;  %v1821_v41 = vpop.f32.mrf.mxu2 }
 0x455   :  { %v2002_v59 = vadd.f32 %v4412_v62, %v1982_v48  ;;  %v1689_v48 = vadd.f32 %v1669_v23, %v1540_v47 }
 0x457   :  { %v2018_v20 = vmax.f32 %v2002_v59, 0.0  ;;  %v1672_v0 = vpop.f32.mrf.mxu1  ;;  %v4764_v59 = vld [vmem:[#allocation7_spill] sm:$0xff]  ;;  %v1838_v51 = vadd.f32 %v1818_v56, %v1689_v48 }
 0x458   :  { %v4534_v6 = vld [vmem:[#allocation4 + $0xc1] sm:$0xff]  ;;  %v1541_v8 = vadd.f32 %v4764_v59, %v1409_v39  ;;  %v3218_v56 = vld [vmem:[%s4749_s5 + $0xf0] sm:$0xff] }
 0x459   :  { %v2093_v9 = vld [vmem:[#allocation4 + $0xc0] sm:$0xff]  ;;  %2077 = vst.msk [vmem:[#allocation4 + $0xd1] sm:$0xff] %vm2024_vm4, %v2018_v20  ;;  %3145 = vmatmul.msk.f32.gmra.mxu1 %vm2024_vm4, %v4534_v6  ;;  %v2263_v48 = vld [vmem:[#allocation4 + $0xb2] sm:$0xff] }
 0x45a   :  { %v4536_v40 = vld [vmem:[#allocation4 + $0xc2] sm:$0xff]  ;;  %3153 = vmatmul.msk.f32.gmra.mxu2 %vm2024_vm4, %v2093_v9  ;;  %3212 = vmatmul.msk.f32.gmra.mxu0 %vm2024_vm4, %v2093_v9  ;;  %v1957_v63 = vpop.f32.mrf.mxu3  ;;  %v1690_v32 = vadd.f32 %v1672_v0, %v1541_v8 }
 0x45b   :  { %3165 = vmatmul.msk.f32.gmra.mxu3 %vm2024_vm4, %v4536_v40  ;;  %v1983_v3 = vadd.f32 %v1957_v63, %v1835_v28  ;;  %2719 = vmatpush.msrb.mxu1 %v3218_v56 }
 0x45c   :  { %v1839_v57 = vadd.f32 %v1821_v41, %v1690_v32 }
 0x45d   :  { %v2003_v55 = vadd.f32 %v4412_v62, %v1983_v3 }
 0x45f   :  { %v2019_v34 = vmax.f32 %v2003_v55, 0.0 }
 0x460   :  { %v2165_v35 = vpop.f32.mrf.mxu1  ;;  %v2114_v0 = vld [vmem:[#allocation4 + $0xd1] sm:$0xff] }
 0x461   :  { %2078 = vst.msk [vmem:[#allocation4 + $0xe1] sm:$0xff] %vm2024_vm4, %v2019_v34  ;;  %v2088_v34 = vld [vmem:[#allocation4 + $0x50] sm:$0xff] }
 0x462   :  { %v1960_v30 = vpop.f32.mrf.mxu3  ;;  %v2265_v41 = vld [vmem:[#allocation4 + $0xd2] sm:$0xff] }
 0x463   :  { %v1984_v11 = vadd.f32 %v1960_v30, %v1836_v5  ;;  %v2090_v5 = vld [vmem:[#allocation4 + $0x70] sm:$0xff] }
 0x464   :  { %v2110_v30 = vld [vmem:[#allocation4 + $0x71] sm:$0xff] }
 0x465   :  { %v2004_v13 = vadd.f32 %v4412_v62, %v1984_v11  ;;  %v2230_v22 = vpop.f32.mrf.mxu2 }
 0x466   :  { %v2231_v10 = vadd.f32 %v2230_v22, %v2165_v35 }
 0x467   :  { %v2020_v24 = vmax.f32 %v2004_v13, 0.0 }
 0x468   :  { %v4591_v38 = vld [vmem:[#allocation4 + $0xe1] sm:$0xff] }
 0x469   :  { %v2095_v14 = vld [vmem:[#allocation4 + $0xe0] sm:$0xff]  ;;  %2079 = vst.msk [vmem:[#allocation4 + $0xf1] sm:$0xff] %vm2024_vm4, %v2020_v24  ;;  %3146 = vmatmul.msk.f32.gmra.mxu1 %vm2024_vm4, %v4591_v38  ;;  %v3217_v24 = vld [vmem:[%s4749_s5 + $0xe8] sm:$0xff] }
 0x46a   :  { %v4593_v31 = vld [vmem:[#allocation4 + $0xe2] sm:$0xff]  ;;  %3154 = vmatmul.msk.f32.gmra.mxu2 %vm2024_vm4, %v2095_v14  ;;  %3213 = vmatmul.msk.f32.gmra.mxu0 %vm2024_vm4, %v2095_v14  ;;  %v1963_v17 = vpop.f32.mrf.mxu3 }
 0x46b   :  { %3166 = vmatmul.msk.f32.gmra.mxu3 %vm2024_vm4, %v4593_v31  ;;  %v1985_v53 = vadd.f32 %v1963_v17, %v1837_v52  ;;  %v3229_v14 = vld [vmem:[%s4749_s5 + $0x108] sm:$0xff]  ;;  %2720 = vmatpush.msrb.mxu1 %v3217_v24  ;;  %v3216_v52 = vld [vmem:[%s4749_s5 + $0xe0] sm:$0xff]  ;;  %v2092_v17 = vld [vmem:[#allocation4 + $0xb0] sm:$0xff] }
 0x46c   :  { %2806 = vmatpush.msrb.mxu2 %v3229_v14 }
 0x46d   :  { %v2005_v44 = vadd.f32 %v4412_v62, %v1985_v53  ;;  %v3228_v53 = vld [vmem:[%s4749_s5 + $0x100] sm:$0xff]  ;;  %2721 = vmatpush.msrb.mxu1 %v3216_v52 }
 0x46e   :  { %2807 = vmatpush.msrb.mxu2 %v3228_v53 }
 0x46f   :  { %v2021_v43 = vmax.f32 %v2005_v44, 0.0  ;;  %v2094_v44 = vld [vmem:[#allocation4 + $0xd0] sm:$0xff] }
 0x470   :  { %v2267_v32 = vld [vmem:[#allocation4 + $0xf2] sm:$0xff] }
 0x471   :  { %2080 = vst.msk [vmem:[#allocation4 + $0x101] sm:$0xff] %vm2024_vm4, %v2021_v43 }
 0x472   :  { %v1966_v20 = vpop.f32.mrf.mxu3 }
 0x473   :  { %v1986_v9 = vadd.f32 %v1966_v20, %v1838_v51  ;;  %v2096_v20 = vld [vmem:[#allocation4 + $0xf0] sm:$0xff] }
 0x475   :  { %v2006_v25 = vadd.f32 %v4412_v62, %v1986_v9  ;;  %v2116_v9 = vld [vmem:[#allocation4 + $0xf1] sm:$0xff] }
 0x477   :  { %v2022_v28 = vmax.f32 %v2006_v25, 0.0 }
 0x478   :  { %v4610_v18 = vld [vmem:[#allocation4 + $0x101] sm:$0xff] }
 0x479   :  { %v2097_v4 = vld [vmem:[#allocation4 + $0x100] sm:$0xff]  ;;  %2081 = vst.msk [vmem:[#allocation4 + $0x111] sm:$0xff] %vm2024_vm4, %v2022_v28  ;;  %3147 = vmatmul.msk.f32.gmra.mxu1 %vm2024_vm4, %v4610_v18 }
 0x47a   :  { %v4612_v63 = vld [vmem:[#allocation4 + $0x102] sm:$0xff]  ;;  %3155 = vmatmul.msk.f32.gmra.mxu2 %vm2024_vm4, %v2097_v4  ;;  %3214 = vmatmul.msk.f32.gmra.mxu0 %vm2024_vm4, %v2097_v4  ;;  %v1969_v54 = vpop.f32.mrf.mxu3 }
 0x47b   :  { %3167 = vmatmul.msk.f32.gmra.mxu3 %vm2024_vm4, %v4612_v63  ;;  %v1987_v19 = vadd.f32 %v1969_v54, %v1839_v57 }
 0x47d   :  { %v2007_v3 = vadd.f32 %v4412_v62, %v1987_v19  ;;  %v2257_v62 = vld [vmem:[#allocation4 + $0x32] sm:$0xff] }
 0x47e   :  { %v4765_v19 = vld [vmem:[#allocation8_spill] sm:$0xff] }
 0x47f   :  { %v2023_v61 = vmax.f32 %v2007_v3, 0.0 }
 0x480   :  { %v2098_v25 = vld [vmem:[#allocation4 + $0x110] sm:$0xff] }
 0x481   :  { %2082 = vst.msk [vmem:[#allocation4 + $0x121] sm:$0xff] %vm2024_vm4, %v2023_v61  ;;  %3172 = vmatmul.msk.f32.vlgmr.msra.gmra.mxu1 %vm2024_vm4, %v2084_v12  ;;  %v2118_v35 = vld [vmem:[#allocation4 + $0x111] sm:$0xff] }
 0x482   :  { %3184 = vmatmul.msk.f32.vlgmr.msra.gmra.mxu2 %vm2024_vm4, %v2104_v49  ;;  %v2316_v55 = vpop.f32.mrf.mxu3  ;;  %v2269_v22 = vld [vmem:[#allocation4 + $0x112] sm:$0xff] }
 0x483   :  { %3196 = vmatmul.msk.f32.vlgmr.msrb.gmra.mxu3 %vm2024_vm4, %v2255_v1  ;;  %v4626_v16 = vadd.f32 %v2316_v55, %v2231_v10  ;;  %v2758_v55 = vld [vmem:[#allocation4 + $0x82] sm:$0xff] }
 0x488   :  { %v2590_v29 = vld [vmem:[#allocation4 + $0x120] sm:$0xff] }
 0x489   :  { %3173 = vmatmul.msk.f32.gmra.mxu1 %vm2024_vm4, %v2086_v36  ;;  %3215 = vmatmul.msk.f32.gmra.mxu0 %vm2024_vm4, %v2590_v29 }
 0x48a   :  { %3185 = vmatmul.msk.f32.gmra.mxu2 %vm2024_vm4, %v2106_v26 }
 0x48b   :  { %3197 = vmatmul.msk.f32.gmra.mxu3 %vm2024_vm4, %v2257_v62 }
 0x491   :  { %3174 = vmatmul.msk.f32.gmra.mxu1 %vm2024_vm4, %v2088_v34 }
 0x492   :  { %3186 = vmatmul.msk.f32.gmra.mxu2 %vm2024_vm4, %v2108_v45 }
 0x493   :  { %3198 = vmatmul.msk.f32.gmra.mxu3 %vm2024_vm4, %v2259_v27  ;;  %v2676_v27 = vld [vmem:[#allocation4 + $0x121] sm:$0xff] }
 0x496   :  { %v2168_v11 = vpop.f32.mrf.mxu1 }
 0x497   :  { %v2637_v56 = vpop.f32.mrf.mxu0 }
 0x499   :  { %3175 = vmatmul.msk.f32.gmra.mxu1 %vm2024_vm4, %v2090_v5 }
 0x49a   :  { %3187 = vmatmul.msk.f32.gmra.mxu2 %vm2024_vm4, %v2110_v30 }
 0x49b   :  { %3199 = vmatmul.msk.f32.gmra.mxu3 %vm2024_vm4, %v2261_v60 }
 0x49d   :  { %v2233_v23 = vpop.f32.mrf.mxu2 }
 0x49e   :  { %v2234_v13 = vadd.f32 %v2233_v23, %v2168_v11  ;;  %v2319_v42 = vpop.f32.mrf.mxu3 }
 0x4a0   :  { %v4656_v47 = vadd.f32 %v2319_v42, %v2234_v13 }
 0x4a1   :  { %3176 = vmatmul.msk.f32.gmra.mxu1 %vm2024_vm4, %v2092_v17 }
 0x4a2   :  { %3188 = vmatmul.msk.f32.gmra.mxu2 %vm2024_vm4, %v2112_v21 }
 0x4a3   :  { %3200 = vmatmul.msk.f32.gmra.mxu3 %vm2024_vm4, %v2263_v48 }
 0x4a6   :  { %v2171_v39 = vpop.f32.mrf.mxu1 }
 0x4a9   :  { %3177 = vmatmul.msk.f32.gmra.mxu1 %vm2024_vm4, %v2094_v44 }
 0x4aa   :  { %3189 = vmatmul.msk.f32.gmra.mxu2 %vm2024_vm4, %v2114_v0 }
 0x4ab   :  { %3201 = vmatmul.msk.f32.gmra.mxu3 %vm2024_vm4, %v2265_v41 }
 0x4ad   :  { %v2236_v43 = vpop.f32.mrf.mxu2 }
 0x4ae   :  { %v2237_v59 = vadd.f32 %v2236_v43, %v2171_v39  ;;  %v2322_v8 = vpop.f32.mrf.mxu3 }
 0x4b0   :  { %v4670_v51 = vadd.f32 %v2322_v8, %v2237_v59 }
 0x4b1   :  { %3178 = vmatmul.msk.f32.gmra.mxu1 %vm2024_vm4, %v2096_v20 }
 0x4b2   :  { %3190 = vmatmul.msk.f32.gmra.mxu2 %vm2024_vm4, %v2116_v9 }
 0x4b3   :  { %3202 = vmatmul.msk.f32.gmra.mxu3 %vm2024_vm4, %v2267_v32 }
 0x4b6   :  { %v2174_v28 = vpop.f32.mrf.mxu1 }
 0x4b9   :  { %3179 = vmatmul.msk.f32.gmra.mxu1 %vm2024_vm4, %v2098_v25 }
 0x4ba   :  { %3191 = vmatmul.msk.f32.gmra.mxu2 %vm2024_vm4, %v2118_v35 }
 0x4bb   :  { %3203 = vmatmul.msk.f32.gmra.mxu3 %vm2024_vm4, %v2269_v22 }
 0x4bd   :  { %v2239_v10 = vpop.f32.mrf.mxu2 }
 0x4be   :  { %v2240_v4 = vadd.f32 %v2239_v10, %v2174_v28  ;;  %v2325_v57 = vpop.f32.mrf.mxu3  ;;  %v2177_v3 = vpop.f32.mrf.mxu1 }
 0x4c0   :  { %v2343_v54 = vadd.f32 %v2325_v57, %v2240_v4 }
 0x4c1   :  { %3220 = vmatmul.msk.f32.vlgmr.msrb.gmra.mxu1 %vm2024_vm4, %v4452_v15  ;;  %v2672_v15 = vld [vmem:[#allocation4 + $0x81] sm:$0xff] }
 0x4c2   :  { %3232 = vmatmul.msk.f32.vlgmr.msrb.gmra.mxu2 %vm2024_vm4, %v4765_v19 }
 0x4c5   :  { %v2242_v61 = vpop.f32.mrf.mxu2 }
 0x4c6   :  { %v2243_v12 = vadd.f32 %v2242_v61, %v2177_v3  ;;  %v2328_v49 = vpop.f32.mrf.mxu3  ;;  %v2640_v3 = vpop.f32.mrf.mxu0 }
 0x4c8   :  { %v2344_v1 = vadd.f32 %v2328_v49, %v2243_v12 }
 0x4c9   :  { %3221 = vmatmul.msk.f32.gmra.mxu1 %vm2024_vm4, %v4469_v46 }
 0x4ca   :  { %3233 = vmatmul.msk.f32.gmra.mxu2 %vm2024_vm4, %v4471_v2 }
 0x4d1   :  { %3222 = vmatmul.msk.f32.gmra.mxu1 %vm2024_vm4, %v4488_v33 }
 0x4d2   :  { %3234 = vmatmul.msk.f32.gmra.mxu2 %vm2024_vm4, %v4490_v7 }
 0x4d6   :  { %v2180_v36 = vpop.f32.mrf.mxu1 }
 0x4d9   :  { %3223 = vmatmul.msk.f32.gmra.mxu1 %vm2024_vm4, %v2672_v15 }
 0x4da   :  { %3235 = vmatmul.msk.f32.gmra.mxu2 %vm2024_vm4, %v2758_v55 }
 0x4dd   :  { %v2245_v26 = vpop.f32.mrf.mxu2 }
 0x4de   :  { %v2246_v29 = vadd.f32 %v2245_v26, %v2180_v36  ;;  %v2331_v62 = vpop.f32.mrf.mxu3 }
 0x4e0   :  { %v2345_v46 = vadd.f32 %v2331_v62, %v2246_v29 }
 0x4e1   :  { %3224 = vmatmul.msk.f32.gmra.mxu1 %vm2024_vm4, %v4534_v6 }
 0x4e2   :  { %3236 = vmatmul.msk.f32.gmra.mxu2 %vm2024_vm4, %v4536_v40  ;;  %v2762_v40 = vld [vmem:[#allocation4 + $0x122] sm:$0xff] }
 0x4e6   :  { %v2183_v2 = vpop.f32.mrf.mxu1 }
 0x4e9   :  { %3225 = vmatmul.msk.f32.gmra.mxu1 %vm2024_vm4, %v4591_v38 }
 0x4ea   :  { %3237 = vmatmul.msk.f32.gmra.mxu2 %vm2024_vm4, %v4593_v31 }
 0x4ed   :  { %v2248_v33 = vpop.f32.mrf.mxu2 }
 0x4ee   :  { %v2249_v7 = vadd.f32 %v2248_v33, %v2183_v2  ;;  %v2334_v34 = vpop.f32.mrf.mxu3 }
 0x4f0   :  { %v2346_v45 = vadd.f32 %v2334_v34, %v2249_v7 }
 0x4f1   :  { %3226 = vmatmul.msk.f32.gmra.mxu1 %vm2024_vm4, %v4610_v18 }
 0x4f2   :  { %3238 = vmatmul.msk.f32.gmra.mxu2 %vm2024_vm4, %v4612_v63 }
 0x4f6   :  { %v2186_v6 = vpop.f32.mrf.mxu1 }
 0x4f9   :  { %3227 = vmatmul.msk.f32.gmra.mxu1 %vm2024_vm4, %v2676_v27 }
 0x4fa   :  { %3239 = vmatmul.msk.f32.gmra.mxu2 %vm2024_vm4, %v2762_v40 }
 0x4fd   :  { %v2251_v38 = vpop.f32.mrf.mxu2 }
 0x4fe   :  { %v2252_v31 = vadd.f32 %v2251_v38, %v2186_v6  ;;  %v2337_v50 = vpop.f32.mrf.mxu3  ;;  %v2394_v58 = vpop.f32.mrf.mxu1 }
 0x4ff   :  { %v2418_v5 = vadd.f32 %v2394_v58, %v4626_v16 }
 0x500   :  { %v2347_v27 = vadd.f32 %v2337_v50, %v2252_v31 }
 0x505   :  { %v2472_v30 = vpop.f32.mrf.mxu2 }
 0x506   :  { %v2496_v60 = vadd.f32 %v2472_v30, %v2418_v5  ;;  %v2550_v11 = vpop.f32.mrf.mxu3  ;;  %v2397_v18 = vpop.f32.mrf.mxu1 }
 0x507   :  { %v2419_v63 = vadd.f32 %v2397_v18, %v4656_v47 }
 0x508   :  { %v2574_v23 = vadd.f32 %v2550_v11, %v2496_v60 }
 0x50a   :  { %v2661_v37 = vadd.f32 %v2637_v56, %v2574_v23 }
 0x50d   :  { %v2475_v13 = vpop.f32.mrf.mxu2 }
 0x50e   :  { %v4708_v42 = vadd.f32 %v2475_v13, %v2419_v63  ;;  %v2400_v24 = vpop.f32.mrf.mxu1  ;;  %v2553_v35 = vpop.f32.mrf.mxu3 }
 0x50f   :  { %v2420_v14 = vadd.f32 %v2400_v24, %v4670_v51 }
 0x515   :  { %v2478_v52 = vpop.f32.mrf.mxu2 }
 0x516   :  { %v4711_v17 = vadd.f32 %v2478_v52, %v2420_v14  ;;  %v2403_v21 = vpop.f32.mrf.mxu1  ;;  %v2556_v4 = vpop.f32.mrf.mxu3 }
 0x517   :  { %v2421_v16 = vadd.f32 %v2403_v21, %v2343_v54 }
 0x518   :  { %v2576_v50 = vadd.f32 %v2556_v4, %v4711_v17  ;;  %v3254_v4 = vld [vmem:[%s4751_s6] ss:$0 sm:$0xff] }
 0x51d   :  { %v2481_v53 = vpop.f32.mrf.mxu2 }
 0x51e   :  { %v2499_v48 = vadd.f32 %v2481_v53, %v2421_v16  ;;  %v2406_v44 = vpop.f32.mrf.mxu1  ;;  %v2559_v61 = vpop.f32.mrf.mxu3 }
 0x51f   :  { %v2422_v0 = vadd.f32 %v2406_v44, %v2344_v1  ;;  %v2643_v1 = vpop.f32.mrf.mxu0 }
 0x520   :  { %v2577_v21 = vadd.f32 %v2559_v61, %v2499_v48 }
 0x525   :  { %v2484_v41 = vpop.f32.mrf.mxu2 }
 0x526   :  { %v2500_v39 = vadd.f32 %v2484_v41, %v2422_v0  ;;  %v2409_v47 = vpop.f32.mrf.mxu1  ;;  %v2562_v55 = vpop.f32.mrf.mxu3 }
 0x527   :  { %v2423_v43 = vadd.f32 %v2409_v47, %v2345_v46  ;;  %v2646_v26 = vpop.f32.mrf.mxu0  ;;  %v2575_v47 = vadd.f32 %v2553_v35, %v4708_v42  ;;  %v2841_v42 = vld [vmem:[%s4752_s7] sm:$0xff]  ;;  %v2842_v35 = vld [vmem:[%s4752_s7 + $0x8] sm:$0xff] }
 0x528   :  { %v2578_v13 = vadd.f32 %v2562_v55, %v2500_v39  ;;  %v2663_v39 = vadd.f32 %v2643_v1, %v2576_v50 }
 0x529   :  { %v2662_v48 = vadd.f32 %v2640_v3, %v2575_v47 }
 0x52d   :  { %v2487_v59 = vpop.f32.mrf.mxu2 }
 0x52e   :  { %v2501_v8 = vadd.f32 %v2487_v59, %v2423_v43  ;;  %v2412_v20 = vpop.f32.mrf.mxu1  ;;  %v2565_v2 = vpop.f32.mrf.mxu3  ;;  %v2664_v43 = vadd.f32 %v2646_v26, %v2577_v21 }
 0x52f   :  { %v2424_v9 = vadd.f32 %v2412_v20, %v2346_v45  ;;  %v2649_v46 = vpop.f32.mrf.mxu0 }
 0x530   :  { %v2579_v56 = vadd.f32 %v2565_v2, %v2501_v8  ;;  %v2665_v44 = vadd.f32 %v2649_v46, %v2578_v13 }
 0x535   :  { %v2490_v32 = vpop.f32.mrf.mxu2 }
 0x536   :  { %v2502_v25 = vadd.f32 %v2490_v32, %v2424_v9  ;;  %v2415_v51 = vpop.f32.mrf.mxu1  ;;  %v2568_v45 = vpop.f32.mrf.mxu3 }
 0x537   :  { %v2652_v34 = vpop.f32.mrf.mxu0  ;;  %v2425_v38 = vadd.f32 %v2415_v51, %v2347_v27 }
 0x538   :  { %v2580_v18 = vadd.f32 %v2568_v45, %v2502_v25  ;;  %v2666_v16 = vadd.f32 %v2652_v34, %v2579_v56 }
 0x53d   :  { %v2493_v22 = vpop.f32.mrf.mxu2 }
 0x53e   :  { %v2723_v28 = vpop.f32.mrf.mxu1  ;;  %v2503_v5 = vadd.f32 %v2493_v22, %v2425_v38  ;;  %v2571_v30 = vpop.f32.mrf.mxu3 }
 0x53f   :  { %v2747_v10 = vadd.f32 %v2723_v28, %v2661_v37  ;;  %v2655_v58 = vpop.f32.mrf.mxu0  ;;  %v2843_v28 = vld [vmem:[%s4752_s7 + $0x10] sm:$0xff] }
 0x540   :  { %v2581_v11 = vadd.f32 %v2571_v30, %v2503_v5  ;;  %v2667_v24 = vadd.f32 %v2655_v58, %v2580_v18 }
 0x545   :  { %v2809_v57 = vpop.f32.mrf.mxu2 }
 0x546   :  { %v4713_v54 = vadd.f32 %v2809_v57, %v2747_v10  ;;  %v2726_v19 = vpop.f32.mrf.mxu1  ;;  %v2844_v10 = vld [vmem:[%s4752_s7 + $0x18] sm:$0xff] }
 0x547   :  { %v2658_v23 = vpop.f32.mrf.mxu0  ;;  %v2748_v51 = vadd.f32 %v2726_v19, %v2662_v48 }
 0x548   :  { %v2668_v37 = vadd.f32 %v2658_v23, %v2581_v11 }
 0x54d   :  { %v2812_v12 = vpop.f32.mrf.mxu2 }
 0x54e   :  { %v2729_v49 = vpop.f32.mrf.mxu1  ;;  %v2834_v22 = vadd.f32 %v2812_v12, %v2748_v51 }
 0x54f   :  { %v2749_v32 = vadd.f32 %v2729_v49, %v2663_v39 }
 0x555   :  { %v2815_v15 = vpop.f32.mrf.mxu2 }
 0x556   :  { %v2732_v36 = vpop.f32.mrf.mxu1  ;;  %v2835_v17 = vadd.f32 %v2815_v15, %v2749_v32 }
 0x557   :  { %v2750_v20 = vadd.f32 %v2732_v36, %v2664_v43 }
 0x55d   :  { %v2818_v29 = vpop.f32.mrf.mxu2 }
 0x55e   :  { %v2735_v62 = vpop.f32.mrf.mxu1  ;;  %v2836_v25 = vadd.f32 %v2818_v29, %v2750_v20 }
 0x55f   :  { %v2751_v59 = vadd.f32 %v2735_v62, %v2665_v44 }
 0x565   :  { %v2821_v33 = vpop.f32.mrf.mxu2 }
 0x566   :  { %v2738_v7 = vpop.f32.mrf.mxu1  ;;  %v2837_v9 = vadd.f32 %v2821_v33, %v2751_v59 }
 0x567   :  { %v2752_v0 = vadd.f32 %v2738_v7, %v2666_v16 }
 0x56d   :  { %v2824_v6 = vpop.f32.mrf.mxu2 }
 0x56e   :  { %v2741_v40 = vpop.f32.mrf.mxu1  ;;  %v2838_v8 = vadd.f32 %v2824_v6, %v2752_v0 }
 0x56f   :  { %v2753_v53 = vadd.f32 %v2741_v40, %v2667_v24 }
 0x575   :  { %v2827_v60 = vpop.f32.mrf.mxu2 }
 0x576   :  { %v2744_v63 = vpop.f32.mrf.mxu1  ;;  %v2839_v41 = vadd.f32 %v2827_v60, %v2753_v53 }
 0x577   :  { %v2754_v14 = vadd.f32 %v2744_v63, %v2668_v37 }
 0x57d   :  { %v2830_v52 = vpop.f32.mrf.mxu2 }
 0x57e   :  { %v2840_v31 = vadd.f32 %v2830_v52, %v2754_v14 }
 0x580   :  { %2870 = vmatpush.msra.mxu3 %v2840_v31 }
 0x582   :  { %2871 = vmatpush.msra.mxu3 %v2839_v41 }
 0x584   :  { %2872 = vmatpush.msra.mxu3 %v2838_v8 }
 0x586   :  { %2873 = vmatpush.msra.mxu3 %v2837_v9 }
 0x588   :  { %2874 = vmatpush.msra.mxu3 %v2836_v25 }
 0x58a   :  { %2875 = vmatpush.msra.mxu3 %v2835_v17 }
 0x58c   :  { %2876 = vmatpush.msra.mxu3 %v2834_v22 }
 0x58e   :  { %2877 = vmatpush.msra.mxu3 %v4713_v54 }
 0x58f   :  { %3240 = vmatmul.msk.f32.vlgmr.msra.gmra.mxu3 %vm2849_vm6, %v2841_v42 }
 0x597   :  { %3241 = vmatmul.msk.f32.gmra.mxu3 %vm2849_vm6, %v2842_v35 }
 0x59f   :  { %3242 = vmatmul.msk.f32.gmra.mxu3 %vm2849_vm6, %v2843_v28 }
 0x5a7   :  { %3243 = vmatmul.msk.f32.gmra.mxu3 %vm2849_vm6, %v2844_v10 }
 0x612   :  { %v2879_v57 = vpop.f32.mrf.mxu3 }
 0x613   :  { %v2880_v54 = vadd.f32 %v3254_v4, %v2879_v57 }
 0x615   :  { %v2891_v36 = vmax.f32 %v2880_v54, 0.0 }
 0x61a   :  { %v2882_v19 = vpop.f32.mrf.mxu3 }
 0x61b   :  { %v2883_v3 = vadd.f32 %v3254_v4, %v2882_v19 }
 0x61d   :  { %v2892_v61 = vmax.f32 %v2883_v3, 0.0 }
 0x61f   :  { %2896 = vrot.lane.b32.xlu0 %v2892_v61, %s3256_s9 }
 0x622   :  { %v2885_v12 = vpop.f32.mrf.mxu3 }
 0x623   :  { %v2886_v49 = vadd.f32 %v3254_v4, %v2885_v12 }
 0x625   :  { %v2893_v62 = vmax.f32 %v2886_v49, 0.0 }
 0x62a   :  { %v2888_v1 = vpop.f32.mrf.mxu3 }
 0x62b   :  { %v2889_v15 = vadd.f32 %v3254_v4, %v2888_v1 }
 0x62d   :  { %v2894_v55 = vmax.f32 %v2889_v15, 0.0 }
 0x62f   :  { %2900 = vrot.lane.b32.xlu0 %v2894_v55, %s3256_s9 }
 0x691   :  { %v2897_v26 = vpop.permute.xlu0 %2896 }
 0x692   :  { %v2903_v29 = vsel %vm2849_vm6, %v2891_v36, %v2897_v26 }
 0x693   :  { %2905 = vst [vmem:[%s4753_s8] sm:$0xff] %v2903_v29 }
 0x6a1   :  { %v2901_v46 = vpop.permute.xlu0 %2900 }
 0x6a2   :  { %v2904_v2 = vsel %vm2849_vm6, %v2893_v62, %v2901_v46 }
 0x6a3   :  { %2906 = vst [vmem:[%s4753_s8 + $0x8] sm:$0xff] %v2904_v2 }

</bundles_post_ra>
